<compile_context>
chip_gen: v5e
topology: v5e:2x2
jax: 0.10.0
libtpu: 0.0.40
codegen_flags: <defaults>
</compile_context>

<pallas_src>
import jax
import jax.numpy as jnp
from jax import lax
from jax.experimental import pallas as pl
from jax.experimental.pallas import tpu as pltpu

K_CODES = 16
D_LATENT = 64
IN_FEATS = 28 * 28
HIDDEN = 512
MAX_TILE_B = 256   # fits all generations' default scoped VMEM; MXU-filling on v6e/v7x


def vqvae_kernel(
    x_ref,              # (TB, 784)   bf16   input tile
    w1_ref, b1_ref,     # (784, 512) bf16, (1, 512) f32   encoder layer 1
    w2_ref, b2_ref,     # (512, D)   bf16, (1, D)   f32   encoder layer 2
    cb_ref,             # (K, D)     f32                  codebook
    wd1_ref, bd1_ref,   # (D, 512)   bf16, (1, 512) f32   decoder layer 1
    wd2_ref, bd2_ref,   # (512, 784) bf16, (1, 784) f32   decoder layer 2
    xhat_ref,           # (TB, 784)  f32
    z_ref,              # (TB, 2*D)  f32   [ z_e | z_q ]  lane-dense 128-wide slab
    idx_ref,            # (TB, 128)  i32   argmin index broadcast across lanes
):
    # ---- Encoder: Linear(784->512) + ReLU, Linear(512->D) ----
    x = x_ref[...]                                                       # bf16
    h = jnp.dot(x, w1_ref[...], preferred_element_type=jnp.float32) + b1_ref[...]
    h = jnp.maximum(h, 0.0)
    z_e = jnp.dot(h.astype(jnp.bfloat16), w2_ref[...],
                  preferred_element_type=jnp.float32) + b2_ref[...]      # (TB, D) f32

    # ---- Vector quantizer: argmin_k ||z_e - c_k||_2 ----
    # ||z_e||^2 is constant over k, so argmin_k(||c_k||^2 - 2 z_e.c_k) is identical
    # to argmin over the full squared distance (same result as torch.cdist + argmin).
    cb = cb_ref[...]                                                     # (K, D) f32
    cb_sq = jnp.sum(cb * cb, axis=1, keepdims=True)                      # (K, 1)
    cross = lax.dot_general(z_e, cb, (((1,), (1,)), ((), ())),
                            preferred_element_type=jnp.float32)          # (TB, K)
    score = jnp.transpose(cb_sq) - 2.0 * cross                           # (TB, K)

    col = lax.broadcasted_iota(jnp.int32, score.shape, 1)                # (TB, K)
    min_s = jnp.min(score, axis=1, keepdims=True)                        # (TB, 1)
    # first index attaining the minimum (matches torch.argmin tie behaviour)
    idx = jnp.min(jnp.where(score <= min_s, col, K_CODES),
                  axis=1, keepdims=True)                                 # (TB, 1) i32

    # gather codebook rows via one-hot matmul (MXU-friendly, avoids dynamic gather)
    onehot = (col == idx).astype(jnp.float32)                            # (TB, K)
    z_q = jnp.dot(onehot, cb, preferred_element_type=jnp.float32)        # (TB, D)

    # lane-dense output slabs (single 128-wide writeback instead of narrow stores)
    z_ref[:, :D_LATENT] = z_e
    z_ref[:, D_LATENT:] = z_q
    idx_ref[...] = jnp.broadcast_to(idx, idx_ref.shape)

    # ---- Decoder: Linear(D->512) + ReLU, Linear(512->784) + Sigmoid ----
    hd = jnp.dot(z_q.astype(jnp.bfloat16), wd1_ref[...],
                 preferred_element_type=jnp.float32) + bd1_ref[...]
    hd = jnp.maximum(hd, 0.0)
    logits = jnp.dot(hd.astype(jnp.bfloat16), wd2_ref[...],
                     preferred_element_type=jnp.float32) + bd2_ref[...]
    xhat_ref[...] = jax.nn.sigmoid(logits)


def vqvae_forward(x, params):
    """x: (B, 1, 28, 28) f32 NCHW. Returns (x_hat, z_e, z_q, encoding_inds)."""
    B = x.shape[0]
    x_flat = x.reshape(B, IN_FEATS)

    w1, b1, w2, b2, cb, wd1, bd1, wd2, bd2 = params
    # bf16 weights halve the dominant HBM weight traffic and run the MXU at full
    # bf16 rate; biases, codebook and all accumulation stay f32.
    kparams = (
        w1.astype(jnp.bfloat16), b1,
        w2.astype(jnp.bfloat16), b2,
        cb,
        wd1.astype(jnp.bfloat16), bd1,
        wd2.astype(jnp.bfloat16), bd2,
    )

    tile_b = B if B <= MAX_TILE_B else MAX_TILE_B
    n_tiles = (B + tile_b - 1) // tile_b
    b_pad = n_tiles * tile_b

    x_in = x_flat.astype(jnp.bfloat16)
    if b_pad != B:
        x_in = jnp.pad(x_in, ((0, b_pad - B), (0, 0)))

    batch_map = lambda i: (i, 0)
    const_map = lambda i: (0, 0)   # weights resident in VMEM across grid steps
    in_specs = [pl.BlockSpec((tile_b, IN_FEATS), batch_map)] + [
        pl.BlockSpec(p.shape, const_map) for p in kparams
    ]
    out_specs = (
        pl.BlockSpec((tile_b, IN_FEATS), batch_map),
        pl.BlockSpec((tile_b, 2 * D_LATENT), batch_map),
        pl.BlockSpec((tile_b, 128), batch_map),
    )

    weight_bytes = sum(int(p.size) * p.dtype.itemsize for p in kparams)
    flops_per_row = 2 * (IN_FEATS * HIDDEN + HIDDEN * D_LATENT + D_LATENT * K_CODES
                         + K_CODES * D_LATENT + D_LATENT * HIDDEN + HIDDEN * IN_FEATS)
    cost = pl.CostEstimate(
        flops=b_pad * flops_per_row,
        transcendentals=b_pad * IN_FEATS,                 # sigmoid
        bytes_accessed=weight_bytes + b_pad * (IN_FEATS * 2      # x (bf16)
                                               + IN_FEATS * 4    # x_hat
                                               + 2 * D_LATENT * 4
                                               + 128 * 4),
    )

    xhat_flat, z_cat, idx_slab = pl.pallas_call(
        vqvae_kernel,
        grid=(n_tiles,),
        out_shape=(
            jax.ShapeDtypeStruct((b_pad, IN_FEATS), jnp.float32),
            jax.ShapeDtypeStruct((b_pad, 2 * D_LATENT), jnp.float32),
            jax.ShapeDtypeStruct((b_pad, 128), jnp.int32),
        ),
        in_specs=in_specs,
        out_specs=out_specs,
        compiler_params=pltpu.CompilerParams(dimension_semantics=("parallel",)),
        cost_estimate=cost,
    )(x_in, *kparams)

    x_hat = xhat_flat[:B].reshape(B, 1, 28, 28)
    z_e = z_cat[:B, :D_LATENT]
    z_q = z_cat[:B, D_LATENT:]
    # NOTE: torch.argmin returns int64; the TPU kernel produces int32 indices.
    encoding_inds = idx_slab[:B, 0]
    return x_hat, z_e, z_q, encoding_inds


def init_params(key):
    """Deterministic init mirroring PyTorch defaults (uniform +/- 1/sqrt(fan_in);
    codebook uniform +/- 1/K). Linear weights stored as (in, out)."""
    def linear(k, fan_in, fan_out):
        kw, kb = jax.random.split(k)
        bound = 1.0 / (fan_in ** 0.5)
        w = jax.random.uniform(kw, (fan_in, fan_out), jnp.float32, -bound, bound)
        b = jax.random.uniform(kb, (1, fan_out), jnp.float32, -bound, bound)
        return w, b

    k = jax.random.split(key, 5)
    w1, b1 = linear(k[0], IN_FEATS, HIDDEN)       # encoder Linear(784, 512)
    w2, b2 = linear(k[1], HIDDEN, D_LATENT)       # encoder Linear(512, D)
    codebook = jax.random.uniform(
        k[2], (K_CODES, D_LATENT), jnp.float32, -1.0 / K_CODES, 1.0 / K_CODES)
    wd1, bd1 = linear(k[3], D_LATENT, HIDDEN)     # decoder Linear(D, 512)
    wd2, bd2 = linear(k[4], HIDDEN, IN_FEATS)     # decoder Linear(512, 784)
    return (w1, b1, w2, b2, codebook, wd1, bd1, wd2, bd2)


if __name__ == "__main__":
    key = jax.random.PRNGKey(0)
    k_params, k_x = jax.random.split(key)

    params = init_params(k_params)
    x = jax.random.uniform(k_x, (2, 1, 28, 28), jnp.float32)  # MNIST-like input in [0, 1]

    x_hat, z_e, z_q, encoding_inds = jax.jit(vqvae_forward)(x, params)
    jax.block_until_ready((x_hat, z_e, z_q, encoding_inds))

    assert x_hat.shape == (2, 1, 28, 28)
    assert z_e.shape == (2, D_LATENT)
    assert z_q.shape == (2, D_LATENT)
    assert encoding_inds.shape == (2,)
    assert bool(jnp.all((x_hat >= 0.0) & (x_hat <= 1.0)))
    assert bool(jnp.all((encoding_inds >= 0) & (encoding_inds < K_CODES)))

    print("KERNEL_OK")
</pallas_src>

<mosaic_0001>
module attributes {stable_mosaic.version = 11 : i64} {
  func.func @vqvae_kernel(%arg0: i32, %arg1: memref<2x784xbf16, #tpu.memory_space<vmem>>, %arg2: memref<784x512xbf16, #tpu.memory_space<vmem>>, %arg3: memref<1x512xf32, #tpu.memory_space<vmem>>, %arg4: memref<512x64xbf16, #tpu.memory_space<vmem>>, %arg5: memref<1x64xf32, #tpu.memory_space<vmem>>, %arg6: memref<16x64xf32, #tpu.memory_space<vmem>>, %arg7: memref<64x512xbf16, #tpu.memory_space<vmem>>, %arg8: memref<1x512xf32, #tpu.memory_space<vmem>>, %arg9: memref<512x784xbf16, #tpu.memory_space<vmem>>, %arg10: memref<1x784xf32, #tpu.memory_space<vmem>>, %arg11: memref<2x784xf32, #tpu.memory_space<vmem>>, %arg12: memref<2x128xf32, #tpu.memory_space<vmem>>, %arg13: memref<2x128xi32, #tpu.memory_space<vmem>>) attributes {dimension_semantics = [#tpu.dimension_semantics<parallel>], iteration_bounds = array<i64: 1>, scalar_prefetch = 0 : i64, scratch_operands = 0 : i64, tpu.core_type = #tpu.core_type<tc>, window_params = [{transform_indices = @transform_0, window_bounds = array<i64: 2, 784>}, {pipeline_mode = #tpu.pipeline_mode<synchronous>, transform_indices = @transform_1, window_bounds = array<i64: 784, 512>}, {pipeline_mode = #tpu.pipeline_mode<synchronous>, transform_indices = @transform_2, window_bounds = array<i64: 1, 512>}, {pipeline_mode = #tpu.pipeline_mode<synchronous>, transform_indices = @transform_3, window_bounds = array<i64: 512, 64>}, {pipeline_mode = #tpu.pipeline_mode<synchronous>, transform_indices = @transform_4, window_bounds = array<i64: 1, 64>}, {pipeline_mode = #tpu.pipeline_mode<synchronous>, transform_indices = @transform_5, window_bounds = array<i64: 16, 64>}, {pipeline_mode = #tpu.pipeline_mode<synchronous>, transform_indices = @transform_6, window_bounds = array<i64: 64, 512>}, {pipeline_mode = #tpu.pipeline_mode<synchronous>, transform_indices = @transform_7, window_bounds = array<i64: 1, 512>}, {pipeline_mode = #tpu.pipeline_mode<synchronous>, transform_indices = @transform_8, window_bounds = array<i64: 512, 784>}, {pipeline_mode = #tpu.pipeline_mode<synchronous>, transform_indices = @transform_9, window_bounds = array<i64: 1, 784>}, {transform_indices = @transform_10, window_bounds = array<i64: 2, 784>}, {transform_indices = @transform_11, window_bounds = array<i64: 2, 128>}, {transform_indices = @transform_12, window_bounds = array<i64: 2, 128>}]} {
    %c0 = arith.constant 0 : index
    %c0_0 = arith.constant 0 : index
    %0 = vector.load %arg1[%c0, %c0_0] : memref<2x784xbf16, #tpu.memory_space<vmem>>, vector<2x784xbf16>
    %c0_1 = arith.constant 0 : index
    %c0_2 = arith.constant 0 : index
    %1 = vector.load %arg2[%c0_1, %c0_2] : memref<784x512xbf16, #tpu.memory_space<vmem>>, vector<784x512xbf16>
    %cst = arith.constant dense<0.000000e+00> : vector<2x512xf32>
    %2 = tpu.matmul %0, %1, %cst {dimension_numbers = #tpu.dot_dimension_numbers<[1], [0], [0], [1], [0, 0, 1, 1], [], []>} : vector<2x784xbf16>, vector<784x512xbf16>, vector<2x512xf32> -> vector<2x512xf32>
    %c0_3 = arith.constant 0 : index
    %c0_4 = arith.constant 0 : index
    %3 = vector.load %arg3[%c0_3, %c0_4] : memref<1x512xf32, #tpu.memory_space<vmem>>, vector<1x512xf32>
    %4 = vector.broadcast %3 : vector<1x512xf32> to vector<2x512xf32>
    %5 = arith.addf %2, %4 : vector<2x512xf32>
    %cst_5 = arith.constant 0.000000e+00 : f32
    %6 = vector.broadcast %cst_5 : f32 to vector<2x512xf32>
    %7 = arith.maximumf %5, %6 : vector<2x512xf32>
    %8 = arith.truncf %7 : vector<2x512xf32> to vector<2x512xbf16>
    %c0_6 = arith.constant 0 : index
    %c0_7 = arith.constant 0 : index
    %9 = vector.load %arg4[%c0_6, %c0_7] : memref<512x64xbf16, #tpu.memory_space<vmem>>, vector<512x64xbf16>
    %cst_8 = arith.constant dense<0.000000e+00> : vector<2x64xf32>
    %10 = tpu.matmul %8, %9, %cst_8 {dimension_numbers = #tpu.dot_dimension_numbers<[1], [0], [0], [1], [0, 0, 1, 1], [], []>} : vector<2x512xbf16>, vector<512x64xbf16>, vector<2x64xf32> -> vector<2x64xf32>
    %c0_9 = arith.constant 0 : index
    %c0_10 = arith.constant 0 : index
    %11 = vector.load %arg5[%c0_9, %c0_10] : memref<1x64xf32, #tpu.memory_space<vmem>>, vector<1x64xf32>
    %12 = vector.broadcast %11 : vector<1x64xf32> to vector<2x64xf32>
    %13 = arith.addf %10, %12 : vector<2x64xf32>
    %c0_11 = arith.constant 0 : index
    %c0_12 = arith.constant 0 : index
    %14 = vector.load %arg6[%c0_11, %c0_12] : memref<16x64xf32, #tpu.memory_space<vmem>>, vector<16x64xf32>
    %15 = arith.mulf %14, %14 : vector<16x64xf32>
    %cst_13 = arith.constant dense<0.000000e+00> : vector<16xf32>
    %16 = vector.multi_reduction <add>, %15, %cst_13 [1] : vector<16x64xf32> to vector<16xf32>
    %17 = vector.shape_cast %16 : vector<16xf32> to vector<16x1xf32>
    %cst_14 = arith.constant dense<0.000000e+00> : vector<2x16xf32>
    %18 = tpu.matmul %13, %14, %cst_14 {dimension_numbers = #tpu.dot_dimension_numbers<[1], [1], [0], [0], [0, 0, 1, 0], [], []>} : vector<2x64xf32>, vector<16x64xf32>, vector<2x16xf32> -> vector<2x16xf32>
    %19 = tpu.transpose %17, [1, 0] : vector<16x1xf32> -> vector<1x16xf32>
    %cst_15 = arith.constant 2.000000e+00 : f32
    %20 = vector.broadcast %cst_15 : f32 to vector<2x16xf32>
    %21 = arith.mulf %20, %18 : vector<2x16xf32>
    %22 = vector.broadcast %19 : vector<1x16xf32> to vector<2x16xf32>
    %23 = arith.subf %22, %21 : vector<2x16xf32>
    %24 = tpu.iota {dimensions = array<i32: 1>} : vector<2x16xi32>
    %cst_16 = arith.constant dense<0x7F800000> : vector<2xf32>
    %25 = vector.multi_reduction <minimumf>, %23, %cst_16 [1] : vector<2x16xf32> to vector<2xf32>
    %26 = vector.shape_cast %25 : vector<2xf32> to vector<2x1xf32>
    %27 = vector.broadcast %26 : vector<2x1xf32> to vector<2x16xf32>
    %28 = arith.cmpf ole, %23, %27 : vector<2x16xf32>
    %c16_i32 = arith.constant 16 : i32
    %29 = vector.broadcast %c16_i32 : i32 to vector<2x16xi32>
    %30 = arith.select %28, %24, %29 : vector<2x16xi1>, vector<2x16xi32>
    %cst_17 = arith.constant dense<2147483647> : vector<2xi32>
    %31 = vector.multi_reduction <minsi>, %30, %cst_17 [1] : vector<2x16xi32> to vector<2xi32>
    %32 = vector.shape_cast %31 : vector<2xi32> to vector<2x1xi32>
    %33 = vector.broadcast %32 : vector<2x1xi32> to vector<2x16xi32>
    %34 = arith.cmpi eq, %24, %33 : vector<2x16xi32>
    %35 = arith.extui %34 : vector<2x16xi1> to vector<2x16xi32>
    %36 = arith.sitofp %35 : vector<2x16xi32> to vector<2x16xf32>
    %cst_18 = arith.constant dense<0.000000e+00> : vector<2x64xf32>
    %37 = tpu.matmul %36, %14, %cst_18 {dimension_numbers = #tpu.dot_dimension_numbers<[1], [0], [0], [1], [0, 0, 1, 1], [], []>} : vector<2x16xf32>, vector<16x64xf32>, vector<2x64xf32> -> vector<2x64xf32>
    %c0_19 = arith.constant 0 : index
    %c0_20 = arith.constant 0 : index
    %38 = vector.load %arg12[%c0_19, %c0_20] : memref<2x128xf32, #tpu.memory_space<vmem>>, vector<2x64xf32>
    tpu.vector_store %arg12[%c0_19, %c0_20], %13 {strides = array<i32>} : memref<2x128xf32, #tpu.memory_space<vmem>>, vector<2x64xf32>,
    %c0_21 = arith.constant 0 : index
    %c64 = arith.constant 64 : index
    %39 = vector.load %arg12[%c0_21, %c64] : memref<2x128xf32, #tpu.memory_space<vmem>>, vector<2x64xf32>
    tpu.vector_store %arg12[%c0_21, %c64], %37 {strides = array<i32>} : memref<2x128xf32, #tpu.memory_space<vmem>>, vector<2x64xf32>,
    %40 = vector.shape_cast %32 : vector<2x1xi32> to vector<2x1xi32>
    %41 = vector.broadcast %40 : vector<2x1xi32> to vector<2x128xi32>
    %c0_22 = arith.constant 0 : index
    %c0_23 = arith.constant 0 : index
    %42 = vector.load %arg13[%c0_22, %c0_23] : memref<2x128xi32, #tpu.memory_space<vmem>>, vector<2x128xi32>
    tpu.vector_store %arg13[%c0_22, %c0_23], %41 {strides = array<i32>} : memref<2x128xi32, #tpu.memory_space<vmem>>, vector<2x128xi32>,
    %43 = arith.truncf %37 : vector<2x64xf32> to vector<2x64xbf16>
    %c0_24 = arith.constant 0 : index
    %c0_25 = arith.constant 0 : index
    %44 = vector.load %arg7[%c0_24, %c0_25] : memref<64x512xbf16, #tpu.memory_space<vmem>>, vector<64x512xbf16>
    %cst_26 = arith.constant dense<0.000000e+00> : vector<2x512xf32>
    %45 = tpu.matmul %43, %44, %cst_26 {dimension_numbers = #tpu.dot_dimension_numbers<[1], [0], [0], [1], [0, 0, 1, 1], [], []>} : vector<2x64xbf16>, vector<64x512xbf16>, vector<2x512xf32> -> vector<2x512xf32>
    %c0_27 = arith.constant 0 : index
    %c0_28 = arith.constant 0 : index
    %46 = vector.load %arg8[%c0_27, %c0_28] : memref<1x512xf32, #tpu.memory_space<vmem>>, vector<1x512xf32>
    %47 = vector.broadcast %46 : vector<1x512xf32> to vector<2x512xf32>
    %48 = arith.addf %45, %47 : vector<2x512xf32>
    %cst_29 = arith.constant 0.000000e+00 : f32
    %49 = vector.broadcast %cst_29 : f32 to vector<2x512xf32>
    %50 = arith.maximumf %48, %49 : vector<2x512xf32>
    %51 = arith.truncf %50 : vector<2x512xf32> to vector<2x512xbf16>
    %c0_30 = arith.constant 0 : index
    %c0_31 = arith.constant 0 : index
    %52 = vector.load %arg9[%c0_30, %c0_31] : memref<512x784xbf16, #tpu.memory_space<vmem>>, vector<512x784xbf16>
    %cst_32 = arith.constant dense<0.000000e+00> : vector<2x784xf32>
    %53 = tpu.matmul %51, %52, %cst_32 {dimension_numbers = #tpu.dot_dimension_numbers<[1], [0], [0], [1], [0, 0, 1, 1], [], []>} : vector<2x512xbf16>, vector<512x784xbf16>, vector<2x784xf32> -> vector<2x784xf32>
    %c0_33 = arith.constant 0 : index
    %c0_34 = arith.constant 0 : index
    %54 = vector.load %arg10[%c0_33, %c0_34] : memref<1x784xf32, #tpu.memory_space<vmem>>, vector<1x784xf32>
    %55 = vector.broadcast %54 : vector<1x784xf32> to vector<2x784xf32>
    %56 = arith.addf %53, %55 : vector<2x784xf32>
    %57 = arith.negf %56 : vector<2x784xf32>
    %58 = math.exp %57 : vector<2x784xf32>
    %cst_35 = arith.constant 1.000000e+00 : f32
    %59 = vector.broadcast %cst_35 : f32 to vector<2x784xf32>
    %60 = arith.addf %59, %58 : vector<2x784xf32>
    %61 = arith.divf %59, %60 : vector<2x784xf32>
    %c0_36 = arith.constant 0 : index
    %c0_37 = arith.constant 0 : index
    %62 = vector.load %arg11[%c0_36, %c0_37] : memref<2x784xf32, #tpu.memory_space<vmem>>, vector<2x784xf32>
    tpu.vector_store %arg11[%c0_36, %c0_37], %61 {strides = array<i32>} : memref<2x784xf32, #tpu.memory_space<vmem>>, vector<2x784xf32>,
    return
  }
  func.func @transform_0(%arg0: i32) -> (i32, i32) {
    %c0_i32 = arith.constant 0 : i32
    %c0_i32_0 = arith.constant 0 : i32
    return %arg0, %c0_i32 : i32, i32
  }
  func.func @transform_1(%arg0: i32) -> (i32, i32) {
    %c0_i32 = arith.constant 0 : i32
    %c0_i32_0 = arith.constant 0 : i32
    %c0_i32_1 = arith.constant 0 : i32
    return %c0_i32, %c0_i32_0 : i32, i32
  }
  func.func @transform_2(%arg0: i32) -> (i32, i32) {
    %c0_i32 = arith.constant 0 : i32
    %c0_i32_0 = arith.constant 0 : i32
    %c0_i32_1 = arith.constant 0 : i32
    return %c0_i32, %c0_i32_0 : i32, i32
  }
  func.func @transform_3(%arg0: i32) -> (i32, i32) {
    %c0_i32 = arith.constant 0 : i32
    %c0_i32_0 = arith.constant 0 : i32
    %c0_i32_1 = arith.constant 0 : i32
    return %c0_i32, %c0_i32_0 : i32, i32
  }
  func.func @transform_4(%arg0: i32) -> (i32, i32) {
    %c0_i32 = arith.constant 0 : i32
    %c0_i32_0 = arith.constant 0 : i32
    %c0_i32_1 = arith.constant 0 : i32
    return %c0_i32, %c0_i32_0 : i32, i32
  }
  func.func @transform_5(%arg0: i32) -> (i32, i32) {
    %c0_i32 = arith.constant 0 : i32
    %c0_i32_0 = arith.constant 0 : i32
    %c0_i32_1 = arith.constant 0 : i32
    return %c0_i32, %c0_i32_0 : i32, i32
  }
  func.func @transform_6(%arg0: i32) -> (i32, i32) {
    %c0_i32 = arith.constant 0 : i32
    %c0_i32_0 = arith.constant 0 : i32
    %c0_i32_1 = arith.constant 0 : i32
    return %c0_i32, %c0_i32_0 : i32, i32
  }
  func.func @transform_7(%arg0: i32) -> (i32, i32) {
    %c0_i32 = arith.constant 0 : i32
    %c0_i32_0 = arith.constant 0 : i32
    %c0_i32_1 = arith.constant 0 : i32
    return %c0_i32, %c0_i32_0 : i32, i32
  }
  func.func @transform_8(%arg0: i32) -> (i32, i32) {
    %c0_i32 = arith.constant 0 : i32
    %c0_i32_0 = arith.constant 0 : i32
    %c0_i32_1 = arith.constant 0 : i32
    return %c0_i32, %c0_i32_0 : i32, i32
  }
  func.func @transform_9(%arg0: i32) -> (i32, i32) {
    %c0_i32 = arith.constant 0 : i32
    %c0_i32_0 = arith.constant 0 : i32
    %c0_i32_1 = arith.constant 0 : i32
    return %c0_i32, %c0_i32_0 : i32, i32
  }
  func.func @transform_10(%arg0: i32) -> (i32, i32) {
    %c0_i32 = arith.constant 0 : i32
    %c0_i32_0 = arith.constant 0 : i32
    return %arg0, %c0_i32 : i32, i32
  }
  func.func @transform_11(%arg0: i32) -> (i32, i32) {
    %c0_i32 = arith.constant 0 : i32
    %c0_i32_0 = arith.constant 0 : i32
    return %arg0, %c0_i32 : i32, i32
  }
  func.func @transform_12(%arg0: i32) -> (i32, i32) {
    %c0_i32 = arith.constant 0 : i32
    %c0_i32_0 = arith.constant 0 : i32
    return %arg0, %c0_i32 : i32, i32
  }
}

</mosaic_0001>

<bundles_post_ra>
// kernel: vqvae_forward.1
= control target key start
LH: loop header
LB: loop body
LE: loop exit
PB: predicated region body
PF: predicated region fallthrough
CT: control target
= control target key end

     0   :  { %vm1241_vm0 = vcmask 130048   ;;  %vm1932_vm1 = vcmask 523264   ;;  %vm2052_vm2 = vcmask 517120   ;;  %vm2005_vm3 = vcmask 123904   ;;  %s9580_s1 = inlined_call_operand.vmem [shape: bf16[784,512], index: 1, kind: input, shape index: {}]   ;;  %s9581_s0 = inlined_call_operand.vmem [shape: bf16[2,784], index: 0, kind: input, shape index: {}]   ;;  %s9582_s2 = inlined_call_operand.vmem [shape: f32[1,512], index: 2, kind: input, shape index: {}]   ;;  %s9583_s3 = inlined_call_operand.vmem [shape: bf16[512,64], index: 3, kind: input, shape index: {}]   ;;  %s9584_s4 = inlined_call_operand.vmem [shape: f32[1,64], index: 4, kind: input, shape index: {}]   ;;  %s9585_s5 = inlined_call_operand.vmem [shape: f32[16,64], index: 5, kind: input, shape index: {}]   ;;  %s9586_s11 = inlined_call_operand.vmem [shape: f32[2,128], index: 11, kind: output, shape index: {1}]   ;;  %s9587_s6 = inlined_call_operand.vmem [shape: bf16[64,512], index: 6, kind: input, shape index: {}]   ;;  %s9588_s12 = inlined_call_operand.vmem [shape: s32[2,128], index: 12, kind: output, shape index: {2}]   ;;  %s9589_s8 = inlined_call_operand.vmem [shape: bf16[512,784], index: 8, kind: input, shape index: {}]   ;;  %s9590_s7 = inlined_call_operand.vmem [shape: f32[1,512], index: 7, kind: input, shape index: {}]   ;;  %s9591_s9 = inlined_call_operand.vmem [shape: f32[1,784], index: 9, kind: input, shape index: {}]   ;;  %s9592_s10 = inlined_call_operand.vmem [shape: f32[2,784], index: 10, kind: output, shape index: {0}]  }
   0x1   :  { %v4306_v0 = vld [vmem:[%s9580_s1 + $0xe0] sm:$0xf]  ;;  %v6114_v1 = vld [vmem:[%s9580_s1 + $0xec] sm:$0xf0]  ;;  %vm2058_vm7 = vcmask 1041920  }
   0x2   :  { %v4434_v2 = vld [vmem:[%s9580_s1 + $0x1e0] sm:$0xf]  ;;  %v4307_v3 = vor.u32 %v6114_v1, %v4306_v0  ;;  %v6146_v4 = vld [vmem:[%s9580_s1 + $0x1ec] sm:$0xf0] }
   0x3   :  { %v4562_v5 = vld [vmem:[%s9580_s1 + $0x2e0] sm:$0xf]  ;;  %v6178_v6 = vld [vmem:[%s9580_s1 + $0x2ec] sm:$0xf0]  ;;  %v4435_v7 = vor.u32 %v6146_v4, %v4434_v2 }
   0x4   :  { %v4563_v8 = vor.u32 %v6178_v6, %v4562_v5  ;;  %v4690_v9 = vld [vmem:[%s9580_s1 + $0x3e0] sm:$0xf]  ;;  %v6210_v10 = vld [vmem:[%s9580_s1 + $0x3ec] sm:$0xf0]  ;;  %1244 = vmatpush.bf16.msra.mxu0 %v4307_v3 }
   0x5   :  { %v4290_v11 = vld [vmem:[%s9580_s1 + $0xc0] sm:$0xf]  ;;  %v4691_v12 = vor.u32 %v6210_v10, %v4690_v9  ;;  %v6110_v13 = vld [vmem:[%s9580_s1 + $0xcc] sm:$0xf0]  ;;  %1257 = vmatpush.bf16.msra.mxu1 %v4435_v7 }
   0x6   :  { %v4418_v14 = vld [vmem:[%s9580_s1 + $0x1c0] sm:$0xf]  ;;  %v6142_v15 = vld [vmem:[%s9580_s1 + $0x1cc] sm:$0xf0]  ;;  %1270 = vmatpush.bf16.msra.mxu2 %v4563_v8  ;;  %v4291_v16 = vor.u32 %v6110_v13, %v4290_v11 }
   0x7   :  { %v4419_v17 = vor.u32 %v6142_v15, %v4418_v14  ;;  %v4546_v18 = vld [vmem:[%s9580_s1 + $0x2c0] sm:$0xf]  ;;  %v6174_v19 = vld [vmem:[%s9580_s1 + $0x2cc] sm:$0xf0]  ;;  %1283 = vmatpush.bf16.msra.mxu3 %v4691_v12 }
   0x8   :  { %v4674_v20 = vld [vmem:[%s9580_s1 + $0x3c0] sm:$0xf]  ;;  %v4547_v21 = vor.u32 %v6174_v19, %v4546_v18  ;;  %v6206_v22 = vld [vmem:[%s9580_s1 + $0x3cc] sm:$0xf0]  ;;  %1245 = vmatpush.bf16.msra.mxu0 %v4291_v16 }
   0x9   :  { %v4274_v23 = vld [vmem:[%s9580_s1 + $0xa0] sm:$0xf]  ;;  %v6106_v24 = vld [vmem:[%s9580_s1 + $0xac] sm:$0xf0]  ;;  %v4675_v25 = vor.u32 %v6206_v22, %v4674_v20  ;;  %1258 = vmatpush.bf16.msra.mxu1 %v4419_v17 }
   0xa   :  { %v4402_v26 = vld [vmem:[%s9580_s1 + $0x1a0] sm:$0xf]  ;;  %v6138_v27 = vld [vmem:[%s9580_s1 + $0x1ac] sm:$0xf0]  ;;  %v4275_v29 = vor.u32 %v6106_v24, %v4274_v23  ;;  %1271 = vmatpush.bf16.msra.mxu2 %v4547_v21 }
   0xb   :  { %v4530_v28 = vld [vmem:[%s9580_s1 + $0x2a0] sm:$0xf]  ;;  %v6170_v30 = vld [vmem:[%s9580_s1 + $0x2ac] sm:$0xf0]  ;;  %v4403_v33 = vor.u32 %v6138_v27, %v4402_v26  ;;  %1284 = vmatpush.bf16.msra.mxu3 %v4675_v25 }
   0xc   :  { %v4658_v31 = vld [vmem:[%s9580_s1 + $0x3a0] sm:$0xf]  ;;  %v6202_v32 = vld [vmem:[%s9580_s1 + $0x3ac] sm:$0xf0]  ;;  %v4531_v34 = vor.u32 %v6170_v30, %v4530_v28  ;;  %1246 = vmatpush.bf16.msra.mxu0 %v4275_v29 }
   0xd   :  { %v4258_v35 = vld [vmem:[%s9580_s1 + $0x80] sm:$0xf]  ;;  %v6102_v36 = vld [vmem:[%s9580_s1 + $0x8c] sm:$0xf0]  ;;  %v4659_v38 = vor.u32 %v6202_v32, %v4658_v31  ;;  %1259 = vmatpush.bf16.msra.mxu1 %v4403_v33 }
   0xe   :  { %v4386_v37 = vld [vmem:[%s9580_s1 + $0x180] sm:$0xf]  ;;  %v6134_v39 = vld [vmem:[%s9580_s1 + $0x18c] sm:$0xf0]  ;;  %v4259_v44 = vor.u32 %v6102_v36, %v4258_v35  ;;  %1272 = vmatpush.bf16.msra.mxu2 %v4531_v34  ;;  %v6112_v34 = vld [vmem:[%s9580_s1 + $0xe4] sm:$0xf] }
   0xf   :  { %v4514_v40 = vld [vmem:[%s9580_s1 + $0x280] sm:$0xf]  ;;  %v6166_v41 = vld [vmem:[%s9580_s1 + $0x28c] sm:$0xf0]  ;;  %v4387_v45 = vor.u32 %v6134_v39, %v4386_v37  ;;  %1285 = vmatpush.bf16.msra.mxu3 %v4659_v38  ;;  %v4308_v35 = vld [vmem:[%s9580_s1 + $0xf0] sm:$0xf0] }
  0x10   :  { %v4642_v42 = vld [vmem:[%s9580_s1 + $0x380] sm:$0xf]  ;;  %v6198_v43 = vld [vmem:[%s9580_s1 + $0x38c] sm:$0xf0]  ;;  %v4515_v46 = vor.u32 %v6166_v41, %v4514_v40  ;;  %1247 = vmatpush.bf16.msra.mxu0 %v4259_v44 }
  0x11   :  { %v4242_v47 = vld [vmem:[%s9580_s1 + $0x60] sm:$0xf]  ;;  %v6098_v48 = vld [vmem:[%s9580_s1 + $0x6c] sm:$0xf0]  ;;  %v4643_v50 = vor.u32 %v6198_v43, %v4642_v42  ;;  %1260 = vmatpush.bf16.msra.mxu1 %v4387_v45  ;;  %v6144_v42 = vld [vmem:[%s9580_s1 + $0x1e4] sm:$0xf]  ;;  %v4311_v45 = vor.u32 %v6112_v34, %v4308_v35 }
  0x12   :  { %v4370_v49 = vld [vmem:[%s9580_s1 + $0x160] sm:$0xf]  ;;  %v6130_v51 = vld [vmem:[%s9580_s1 + $0x16c] sm:$0xf0]  ;;  %v4243_v56 = vor.u32 %v6098_v48, %v4242_v47  ;;  %1273 = vmatpush.bf16.msra.mxu2 %v4515_v46  ;;  %v4436_v43 = vld [vmem:[%s9580_s1 + $0x1f0] sm:$0xf0] }
  0x13   :  { %v4498_v52 = vld [vmem:[%s9580_s1 + $0x260] sm:$0xf]  ;;  %v6162_v53 = vld [vmem:[%s9580_s1 + $0x26c] sm:$0xf0]  ;;  %v4371_v57 = vor.u32 %v6130_v51, %v4370_v49  ;;  %1286 = vmatpush.bf16.msra.mxu3 %v4643_v50  ;;  %v6108_v50 = vld [vmem:[%s9580_s1 + $0xc4] sm:$0xf] }
  0x14   :  { %v4626_v54 = vld [vmem:[%s9580_s1 + $0x360] sm:$0xf]  ;;  %v6194_v55 = vld [vmem:[%s9580_s1 + $0x36c] sm:$0xf0]  ;;  %v4499_v58 = vor.u32 %v6162_v53, %v4498_v52  ;;  %1248 = vmatpush.bf16.msra.mxu0 %v4243_v56  ;;  %v4292_v51 = vld [vmem:[%s9580_s1 + $0xd0] sm:$0xf0] }
  0x15   :  { %v4226_v59 = vld [vmem:[%s9580_s1 + $0x40] sm:$0xf]  ;;  %v6094_v60 = vld [vmem:[%s9580_s1 + $0x4c] sm:$0xf0]  ;;  %v4627_v62 = vor.u32 %v6194_v55, %v4626_v54  ;;  %1261 = vmatpush.bf16.msra.mxu1 %v4371_v57  ;;  %v4439_v55 = vor.u32 %v6144_v42, %v4436_v43  ;;  %v6140_v57 = vld [vmem:[%s9580_s1 + $0x1c4] sm:$0xf] }
  0x16   :  { %v4354_v61 = vld [vmem:[%s9580_s1 + $0x140] sm:$0xf]  ;;  %v6126_v63 = vld [vmem:[%s9580_s1 + $0x14c] sm:$0xf0]  ;;  %v4227_v4 = vor.u32 %v6094_v60, %v4226_v59  ;;  %1274 = vmatpush.bf16.msra.mxu2 %v4499_v58  ;;  %v4420_v58 = vld [vmem:[%s9580_s1 + $0x1d0] sm:$0xf0] }
  0x17   :  { %v4482_v0 = vld [vmem:[%s9580_s1 + $0x240] sm:$0xf]  ;;  %v6158_v1 = vld [vmem:[%s9580_s1 + $0x24c] sm:$0xf0]  ;;  %v4355_v5 = vor.u32 %v6126_v63, %v4354_v61  ;;  %1287 = vmatpush.bf16.msra.mxu3 %v4627_v62  ;;  %v4295_v61 = vor.u32 %v6108_v50, %v4292_v51 }
  0x18   :  { %v4610_v2 = vld [vmem:[%s9580_s1 + $0x340] sm:$0xf]  ;;  %v6190_v3 = vld [vmem:[%s9580_s1 + $0x34c] sm:$0xf0]  ;;  %v4483_v6 = vor.u32 %v6158_v1, %v4482_v0  ;;  %1249 = vmatpush.bf16.msra.mxu0 %v4227_v4 }
  0x19   :  { %v4210_v7 = vld [vmem:[%s9580_s1 + $0x20] sm:$0xf]  ;;  %v6090_v8 = vld [vmem:[%s9580_s1 + $0x2c] sm:$0xf0]  ;;  %v4611_v10 = vor.u32 %v6190_v3, %v4610_v2  ;;  %1262 = vmatpush.bf16.msra.mxu1 %v4355_v5  ;;  %v6104_v2 = vld [vmem:[%s9580_s1 + $0xa4] sm:$0xf]  ;;  %v4423_v5 = vor.u32 %v6140_v57, %v4420_v58 }
  0x1a   :  { %v4338_v9 = vld [vmem:[%s9580_s1 + $0x120] sm:$0xf]  ;;  %v6122_v11 = vld [vmem:[%s9580_s1 + $0x12c] sm:$0xf0]  ;;  %v4211_v17 = vor.u32 %v6090_v8, %v4210_v7  ;;  %1275 = vmatpush.bf16.msra.mxu2 %v4483_v6  ;;  %v4276_v3 = vld [vmem:[%s9580_s1 + $0xb0] sm:$0xf0] }
  0x1b   :  { %v4466_v12 = vld [vmem:[%s9580_s1 + $0x220] sm:$0xf]  ;;  %v6154_v13 = vld [vmem:[%s9580_s1 + $0x22c] sm:$0xf0]  ;;  %v4339_v21 = vor.u32 %v6122_v11, %v4338_v9  ;;  %1288 = vmatpush.bf16.msra.mxu3 %v4611_v10  ;;  %v6136_v7 = vld [vmem:[%s9580_s1 + $0x1a4] sm:$0xf]  ;;  %v4279_v10 = vor.u32 %v6104_v2, %v4276_v3 }
  0x1c   :  { %v4594_v14 = vld [vmem:[%s9580_s1 + $0x320] sm:$0xf]  ;;  %v6186_v15 = vld [vmem:[%s9580_s1 + $0x32c] sm:$0xf0]  ;;  %v4467_v22 = vor.u32 %v6154_v13, %v4466_v12  ;;  %1250 = vmatpush.bf16.msra.mxu0 %v4211_v17  ;;  %v4404_v8 = vld [vmem:[%s9580_s1 + $0x1b0] sm:$0xf0] }
  0x1d   :  { %v4194_v16 = vld [vmem:[%s9580_s1] sm:$0xf]  ;;  %v6086_v18 = vld [vmem:[%s9580_s1 + $0xc] sm:$0xf0]  ;;  %v4595_v25 = vor.u32 %v6186_v15, %v4594_v14  ;;  %1263 = vmatpush.bf16.msra.mxu1 %v4339_v21  ;;  %v6100_v15 = vld [vmem:[%s9580_s1 + $0x84] sm:$0xf]  ;;  %v4407_v17 = vor.u32 %v6136_v7, %v4404_v8 }
  0x1e   :  { %v4322_v19 = vld [vmem:[%s9580_s1 + $0x100] sm:$0xf]  ;;  %v6118_v23 = vld [vmem:[%s9580_s1 + $0x10c] sm:$0xf0]  ;;  %v4195_v32 = vor.u32 %v6086_v18, %v4194_v16  ;;  %1276 = vmatpush.bf16.msra.mxu2 %v4467_v22  ;;  %v4260_v16 = vld [vmem:[%s9580_s1 + $0x90] sm:$0xf0] }
  0x1f   :  { %v39_v20 = vld [vmem:[%s9581_s0] sm:$0x7f]  ;;  %v6150_v26 = vld [vmem:[%s9580_s1 + $0x20c] sm:$0xf0]  ;;  %v4323_v36 = vor.u32 %v6118_v23, %v4322_v19  ;;  %1289 = vmatpush.bf16.msra.mxu3 %v4595_v25  ;;  %v4263_v22 = vor.u32 %v6100_v15, %v4260_v16  ;;  %v4564_v7 = vld [vmem:[%s9580_s1 + $0x2f0] sm:$0xf0] }
  0x20   :  { %v4450_v24 = vld [vmem:[%s9580_s1 + $0x200] sm:$0xf]  ;;  %247 = vst [vmem:[#allocation1] ss:$9 sm:$0xff] %v39_v20  ;;  %v6182_v28 = vld [vmem:[%s9580_s1 + $0x30c] sm:$0xf0]  ;;  %1251 = vmatpush.bf16.msra.mxu0 %v4195_v32 }
  0x21   :  { %v4578_v27 = vld [vmem:[%s9580_s1 + $0x300] sm:$0xf]  ;;  %v6242_v30 = vld [vmem:[%s9580_s1 + $0x4ec] sm:$0xf0]  ;;  %v4451_v37 = vor.u32 %v6150_v26, %v4450_v24  ;;  %1264 = vmatpush.bf16.msra.mxu1 %v4323_v36  ;;  %v6132_v19 = vld [vmem:[%s9580_s1 + $0x184] sm:$0xf] }
  0x22   :  { %v4818_v29 = vld [vmem:[%s9580_s1 + $0x4e0] sm:$0xf]  ;;  %v6274_v33 = vld [vmem:[%s9580_s1 + $0x5ec] sm:$0xf0]  ;;  %v4579_v39 = vor.u32 %v6182_v28, %v4578_v27  ;;  %v4388_v20 = vld [vmem:[%s9580_s1 + $0x190] sm:$0xf0] }
  0x23   :  { %v4946_v31 = vld [vmem:[%s9580_s1 + $0x5e0] sm:$0xf]  ;;  %v4819_v40 = vor.u32 %v6242_v30, %v4818_v29  ;;  %v6278_v41 = vld [vmem:[%s9580_s1 + $0x60c] sm:$0xf0]  ;;  %1277 = vmatpush.bf16.msra.mxu2 %v4451_v37  ;;  %v6096_v27 = vld [vmem:[%s9580_s1 + $0x64] sm:$0xf]  ;;  %v4391_v29 = vor.u32 %v6132_v19, %v4388_v20 }
  0x24   :  { %v4962_v38 = vld [vmem:[%s9580_s1 + $0x600] sm:$0xf]  ;;  %v4947_v44 = vor.u32 %v6274_v33, %v4946_v31  ;;  %v6238_v47 = vld [vmem:[%s9580_s1 + $0x4cc] sm:$0xf0]  ;;  %1290 = vmatpush.bf16.msra.mxu3 %v4579_v39  ;;  %v4244_v28 = vld [vmem:[%s9580_s1 + $0x70] sm:$0xf0] }
  0x25   :  { %v4802_v46 = vld [vmem:[%s9580_s1 + $0x4c0] sm:$0xf]  ;;  %v6270_v49 = vld [vmem:[%s9580_s1 + $0x5cc] sm:$0xf0]  ;;  %v4963_v53 = vor.u32 %v6278_v41, %v4962_v38  ;;  %1296 = vmatpush.bf16.msrb.mxu0 %v4819_v40  ;;  %v6128_v31 = vld [vmem:[%s9580_s1 + $0x164] sm:$0xf]  ;;  %v4247_v34 = vor.u32 %v6096_v27, %v4244_v28 }
  0x26   :  { %v4930_v48 = vld [vmem:[%s9580_s1 + $0x5c0] sm:$0xf]  ;;  %v4803_v56 = vor.u32 %v6238_v47, %v4802_v46  ;;  %1309 = vmatpush.bf16.msrb.mxu1 %v4947_v44  ;;  %v6234_v63 = vld [vmem:[%s9580_s1 + $0x4ac] sm:$0xf0]  ;;  %v4372_v32 = vld [vmem:[%s9580_s1 + $0x170] sm:$0xf0] }
  0x27   :  { %v6900_v52 = vld [vmem:[#allocation1 + $0x12] sm:$0xff]  ;;  %v6902_v54 = vld [vmem:[#allocation1] sm:$0xff]  ;;  %v4931_v60 = vor.u32 %v6270_v49, %v4930_v48  ;;  %1329 = vmatpush.bf16.msrb.mxu2 %v4963_v53  ;;  %v6933_v4 = vld [vmem:[#allocation1 + $0x9] sm:$0xff]  ;;  %v4375_v42 = vor.u32 %v6128_v31, %v4372_v32 }
  0x28   :  { %v6910_v59 = vld [vmem:[#allocation1 + $0x1b] sm:$0xff]  ;;  %1335 = vmatpush.bf16.msrb.mxu3 %v4311_v45  ;;  %1278 = vmatmul.bf16.vlgmr.msra.gmra.mxu2 %v6900_v52  ;;  %v6266_v1 = vld [vmem:[%s9580_s1 + $0x5ac] sm:$0xf0]  ;;  %v6092_v39 = vld [vmem:[%s9580_s1 + $0x44] sm:$0xf] }
  0x29   :  { %v4786_v62 = vld [vmem:[%s9580_s1 + $0x4a0] sm:$0xf]  ;;  %1252 = vmatmul.bf16.vlgmr.msra.gmra.mxu0 %v6902_v54  ;;  %1291 = vmatmul.bf16.vlgmr.msra.gmra.mxu3 %v6910_v59  ;;  %v6230_v12 = vld [vmem:[%s9580_s1 + $0x48c] sm:$0xf0]  ;;  %v4228_v40 = vld [vmem:[%s9580_s1 + $0x50] sm:$0xf0] }
  0x2a   :  { %v4914_v0 = vld [vmem:[%s9580_s1 + $0x5a0] sm:$0xf]  ;;  %1297 = vmatpush.bf16.msrb.mxu0 %v4803_v56  ;;  %v4787_v6 = vor.u32 %v6234_v63, %v4786_v62  ;;  %1310 = vmatpush.bf16.msrb.mxu1 %v4931_v60  ;;  %v6262_v14 = vld [vmem:[%s9580_s1 + $0x58c] sm:$0xf0]  ;;  %v7008_v41 = vld [vmem:[#allocation1 + $0x36] sm:$0xff]  ;;  %v4231_v47 = vor.u32 %v6092_v39, %v4228_v40 }
  0x2b   :  { %1348 = vmatpush.bf16.msra.mxu2 %v4439_v55  ;;  %v4915_v9 = vor.u32 %v6266_v1, %v4914_v0  ;;  %v4770_v11 = vld [vmem:[%s9580_s1 + $0x480] sm:$0xf]  ;;  %1265 = vmatmul.bf16.vlgmr.msra.gmra.mxu1 %v6933_v4  ;;  %v6226_v24 = vld [vmem:[%s9580_s1 + $0x46c] sm:$0xf0]  ;;  %v6124_v44 = vld [vmem:[%s9580_s1 + $0x144] sm:$0xf] }
  0x2c   :  { %1336 = vmatpush.bf16.msrb.mxu3 %v4295_v61  ;;  %v4898_v13 = vld [vmem:[%s9580_s1 + $0x580] sm:$0xf]  ;;  %v4771_v18 = vor.u32 %v6230_v12, %v4770_v11  ;;  %v6258_v26 = vld [vmem:[%s9580_s1 + $0x56c] sm:$0xf0]  ;;  %v4356_v45 = vld [vmem:[%s9580_s1 + $0x150] sm:$0xf0] }
  0x2d   :  { %v4899_v21 = vor.u32 %v6262_v14, %v4898_v13  ;;  %v4754_v23 = vld [vmem:[%s9580_s1 + $0x460] sm:$0xf]  ;;  %v6222_v36 = vld [vmem:[%s9580_s1 + $0x44c] sm:$0xf0]  ;;  %v6088_v53 = vld [vmem:[%s9580_s1 + $0x24] sm:$0xf]  ;;  %v4359_v56 = vor.u32 %v6124_v44, %v4356_v45 }
  0x2e   :  { %1298 = vmatpush.bf16.msrb.mxu0 %v4787_v6  ;;  %1311 = vmatpush.bf16.msrb.mxu1 %v4915_v9  ;;  %v4882_v25 = vld [vmem:[%s9580_s1 + $0x560] sm:$0xf]  ;;  %v4755_v30 = vor.u32 %v6226_v24, %v4754_v23  ;;  %v6254_v38 = vld [vmem:[%s9580_s1 + $0x54c] sm:$0xf0]  ;;  %v4212_v55 = vld [vmem:[%s9580_s1 + $0x30] sm:$0xf0] }
  0x2f   :  { %1349 = vmatpush.bf16.msra.mxu2 %v4423_v5  ;;  %v4883_v33 = vor.u32 %v6258_v26, %v4882_v25  ;;  %v4738_v35 = vld [vmem:[%s9580_s1 + $0x440] sm:$0xf]  ;;  %v6218_v49 = vld [vmem:[%s9580_s1 + $0x42c] sm:$0xf0]  ;;  %v6120_v58 = vld [vmem:[%s9580_s1 + $0x124] sm:$0xf]  ;;  %v4215_v63 = vor.u32 %v6088_v53, %v4212_v55 }
  0x30   :  { %1337 = vmatpush.bf16.msrb.mxu3 %v4279_v10  ;;  %v4866_v37 = vld [vmem:[%s9580_s1 + $0x540] sm:$0xf]  ;;  %v4739_v43 = vor.u32 %v6222_v36, %v4738_v35  ;;  %v6250_v51 = vld [vmem:[%s9580_s1 + $0x52c] sm:$0xf0]  ;;  %v4340_v60 = vld [vmem:[%s9580_s1 + $0x130] sm:$0xf0] }
  0x31   :  { %v4867_v46 = vor.u32 %v6254_v38, %v4866_v37  ;;  %v4722_v48 = vld [vmem:[%s9580_s1 + $0x420] sm:$0xf]  ;;  %v6214_v0 = vld [vmem:[%s9580_s1 + $0x40c] sm:$0xf0]  ;;  %v6084_v3 = vld [vmem:[%s9580_s1 + $0x4] sm:$0xf]  ;;  %v4343_v10 = vor.u32 %v6120_v58, %v4340_v60 }
  0x32   :  { %1299 = vmatpush.bf16.msrb.mxu0 %v4771_v18  ;;  %1312 = vmatpush.bf16.msrb.mxu1 %v4899_v21  ;;  %v4850_v50 = vld [vmem:[%s9580_s1 + $0x520] sm:$0xf]  ;;  %v4723_v57 = vor.u32 %v6218_v49, %v4722_v48  ;;  %v6246_v2 = vld [vmem:[%s9580_s1 + $0x50c] sm:$0xf0]  ;;  %v4196_v5 = vld [vmem:[%s9580_s1 + $0x10] sm:$0xf0] }
  0x33   :  { %1350 = vmatpush.bf16.msra.mxu2 %v4407_v17  ;;  %v4706_v61 = vld [vmem:[%s9580_s1 + $0x400] sm:$0xf]  ;;  %v4851_v62 = vor.u32 %v6250_v51, %v4850_v50  ;;  %v6176_v6 = vld [vmem:[%s9580_s1 + $0x2e4] sm:$0xf]  ;;  %v4692_v9 = vld [vmem:[%s9580_s1 + $0x3f0] sm:$0xf0]  ;;  %v4199_v15 = vor.u32 %v6084_v3, %v4196_v5 }
  0x34   :  { %1338 = vmatpush.bf16.msrb.mxu3 %v4263_v22  ;;  %v4834_v1 = vld [vmem:[%s9580_s1 + $0x500] sm:$0xf]  ;;  %v6208_v8 = vld [vmem:[%s9580_s1 + $0x3e4] sm:$0xf]  ;;  %v4707_v11 = vor.u32 %v6214_v0, %v4706_v61  ;;  %v4820_v13 = vld [vmem:[%s9580_s1 + $0x4f0] sm:$0xf0]  ;;  %v4567_v18 = vor.u32 %v6176_v6, %v4564_v7 }
  0x35   :  { %v6240_v12 = vld [vmem:[%s9580_s1 + $0x4e4] sm:$0xf]  ;;  %v4835_v14 = vor.u32 %v6246_v2, %v4834_v1  ;;  %v4324_v17 = vld [vmem:[%s9580_s1 + $0x110] sm:$0xf0]  ;;  %v4695_v19 = vor.u32 %v6208_v8, %v4692_v9 }
  0x36   :  { %1300 = vmatpush.bf16.msrb.mxu0 %v4755_v30  ;;  %1313 = vmatpush.bf16.msrb.mxu1 %v4883_v33  ;;  %v6116_v16 = vld [vmem:[%s9580_s1 + $0x104] sm:$0xf]  ;;  %v4948_v21 = vld [vmem:[%s9580_s1 + $0x5f0] sm:$0xf0]  ;;  %v4823_v23 = vor.u32 %v6240_v12, %v4820_v13 }
  0x37   :  { %1351 = vmatpush.bf16.msra.mxu2 %v4391_v29  ;;  %v6272_v20 = vld [vmem:[%s9580_s1 + $0x5e4] sm:$0xf]  ;;  %v4548_v24 = vld [vmem:[%s9580_s1 + $0x2d0] sm:$0xf0]  ;;  %v4327_v28 = vor.u32 %v6116_v16, %v4324_v17 }
  0x38   :  { %1339 = vmatpush.bf16.msrb.mxu3 %v4247_v34  ;;  %4976 = vmatmul.msk.bf16.vlgmr.msrb.gmra.mxu2 %vm1241_vm0, %v7008_v41  ;;  %v6172_v22 = vld [vmem:[%s9580_s1 + $0x2c4] sm:$0xf]  ;;  %v4676_v26 = vld [vmem:[%s9580_s1 + $0x3d0] sm:$0xf0]  ;;  %v4951_v31 = vor.u32 %v6272_v20, %v4948_v21 }
  0x39   :  { %v6204_v25 = vld [vmem:[%s9580_s1 + $0x3c4] sm:$0xf]  ;;  %v4804_v30 = vld [vmem:[%s9580_s1 + $0x4d0] sm:$0xf0]  ;;  %v4551_v33 = vor.u32 %v6172_v22, %v4548_v24 }
  0x3a   :  { %1301 = vmatpush.bf16.msrb.mxu0 %v4739_v43  ;;  %1314 = vmatpush.bf16.msrb.mxu1 %v4867_v46  ;;  %v7102_v27 = vld [vmem:[#allocation1 + $0x24] sm:$0xff]  ;;  %v7110_v32 = vld [vmem:[#allocation1 + $0x2d] sm:$0xff]  ;;  %v4679_v34 = vor.u32 %v6204_v25, %v4676_v26 }
  0x3b   :  { %1352 = vmatpush.bf16.msra.mxu2 %v4375_v42  ;;  %v6236_v29 = vld [vmem:[%s9580_s1 + $0x4c4] sm:$0xf]  ;;  %v4932_v36 = vld [vmem:[%s9580_s1 + $0x5d0] sm:$0xf0] }
  0x3c   :  { %1340 = vmatpush.bf16.msrb.mxu3 %v4231_v47  ;;  %v6268_v35 = vld [vmem:[%s9580_s1 + $0x5c4] sm:$0xf]  ;;  %v4807_v38 = vor.u32 %v6236_v29, %v4804_v30  ;;  %v4532_v39 = vld [vmem:[%s9580_s1 + $0x2b0] sm:$0xf0] }
  0x3d   :  { %v6168_v37 = vld [vmem:[%s9580_s1 + $0x2a4] sm:$0xf]  ;;  %v4660_v42 = vld [vmem:[%s9580_s1 + $0x3b0] sm:$0xf0]  ;;  %v4935_v45 = vor.u32 %v6268_v35, %v4932_v36 }
  0x3e   :  { %1302 = vmatpush.bf16.msrb.mxu0 %v4723_v57  ;;  %1315 = vmatpush.bf16.msrb.mxu1 %v4851_v62  ;;  %v6200_v40 = vld [vmem:[%s9580_s1 + $0x3a4] sm:$0xf]  ;;  %v4788_v44 = vld [vmem:[%s9580_s1 + $0x4b0] sm:$0xf0]  ;;  %v4535_v46 = vor.u32 %v6168_v37, %v4532_v39 }
  0x3f   :  { %1353 = vmatpush.bf16.msra.mxu2 %v4359_v56  ;;  %v6232_v43 = vld [vmem:[%s9580_s1 + $0x4a4] sm:$0xf]  ;;  %v4663_v47 = vor.u32 %v6200_v40, %v4660_v42  ;;  %v4916_v49 = vld [vmem:[%s9580_s1 + $0x5b0] sm:$0xf0] }
  0x40   :  { %1341 = vmatpush.bf16.msrb.mxu3 %v4215_v63  ;;  %v6264_v48 = vld [vmem:[%s9580_s1 + $0x5a4] sm:$0xf]  ;;  %v4791_v51 = vor.u32 %v6232_v43, %v4788_v44  ;;  %v4516_v53 = vld [vmem:[%s9580_s1 + $0x290] sm:$0xf0] }
  0x41   :  { %v6164_v50 = vld [vmem:[%s9580_s1 + $0x284] sm:$0xf]  ;;  %v4644_v56 = vld [vmem:[%s9580_s1 + $0x390] sm:$0xf0]  ;;  %v4919_v60 = vor.u32 %v6264_v48, %v4916_v49  ;;  %v4314_v48 = vld [vmem:[%s9580_s1 + $0xe8] sm:$0xf] }
  0x42   :  { %1303 = vmatpush.bf16.msrb.mxu0 %v4707_v11  ;;  %1316 = vmatpush.bf16.msrb.mxu1 %v4835_v14  ;;  %v6196_v55 = vld [vmem:[%s9580_s1 + $0x384] sm:$0xf]  ;;  %v4772_v58 = vld [vmem:[%s9580_s1 + $0x490] sm:$0xf0]  ;;  %v4519_v61 = vor.u32 %v6164_v50, %v4516_v53  ;;  %v6115_v49 = vld [vmem:[%s9580_s1 + $0xf4] sm:$0xf0] }
  0x43   :  { %1354 = vmatpush.bf16.msra.mxu2 %v4343_v10  ;;  %v6228_v57 = vld [vmem:[%s9580_s1 + $0x484] sm:$0xf]  ;;  %v4647_v62 = vor.u32 %v6196_v55, %v4644_v56  ;;  %v4900_v0 = vld [vmem:[%s9580_s1 + $0x590] sm:$0xf0]  ;;  %v4442_v50 = vld [vmem:[%s9580_s1 + $0x1e8] sm:$0xf] }
  0x44   :  { %1342 = vmatpush.bf16.msrb.mxu3 %v4199_v15  ;;  %v6260_v63 = vld [vmem:[%s9580_s1 + $0x584] sm:$0xf]  ;;  %v4775_v2 = vor.u32 %v6228_v57, %v4772_v58  ;;  %v4500_v3 = vld [vmem:[%s9580_s1 + $0x270] sm:$0xf0]  ;;  %v6147_v53 = vld [vmem:[%s9580_s1 + $0x1f4] sm:$0xf0] }
  0x45   :  { %1304 = vmatmul.bf16.vlgmr.msrb.gmra.mxu0 %v7102_v27  ;;  %1317 = vmatmul.bf16.vlgmr.msrb.gmra.mxu1 %v7110_v32  ;;  %v6160_v1 = vld [vmem:[%s9580_s1 + $0x264] sm:$0xf]  ;;  %v4628_v6 = vld [vmem:[%s9580_s1 + $0x370] sm:$0xf0]  ;;  %v4903_v9 = vor.u32 %v6260_v63, %v4900_v0  ;;  %v4315_v0 = vor.u32 %v6115_v49, %v4314_v48  ;;  %v6099_v48 = vld [vmem:[%s9580_s1 + $0x74] sm:$0xf0] }
  0x46   :  { %1361 = vmatpush.bf16.msra.mxu0 %v4567_v18  ;;  %1374 = vmatpush.bf16.msra.mxu1 %v4695_v19  ;;  %v6192_v5 = vld [vmem:[%s9580_s1 + $0x364] sm:$0xf]  ;;  %v4756_v8 = vld [vmem:[%s9580_s1 + $0x470] sm:$0xf0]  ;;  %v4503_v10 = vor.u32 %v6160_v1, %v4500_v3  ;;  %v6179_v1 = vld [vmem:[%s9580_s1 + $0x2f4] sm:$0xf0] }
  0x47   :  { %1355 = vmatpush.bf16.msra.mxu2 %v4327_v28  ;;  %1343 = vmatmul.bf16.vlgmr.msrb.gmra.mxu3 %v6902_v54  ;;  %v6224_v7 = vld [vmem:[%s9580_s1 + $0x464] sm:$0xf]  ;;  %v4631_v11 = vor.u32 %v6192_v5, %v4628_v6  ;;  %v4884_v13 = vld [vmem:[%s9580_s1 + $0x570] sm:$0xf0]  ;;  %v6211_v3 = vld [vmem:[%s9580_s1 + $0x3f4] sm:$0xf0]  ;;  %v4443_v5 = vor.u32 %v6147_v53, %v4442_v50 }
  0x48   :  { %1387 = vmatpush.bf16.msra.mxu3 %v4823_v23  ;;  %v6256_v12 = vld [vmem:[%s9580_s1 + $0x564] sm:$0xf]  ;;  %v4759_v15 = vor.u32 %v6224_v7, %v4756_v8  ;;  %v4484_v16 = vld [vmem:[%s9580_s1 + $0x250] sm:$0xf0]  ;;  %v4298_v7 = vld [vmem:[%s9580_s1 + $0xc8] sm:$0xf] }
  0x49   :  { %v6156_v14 = vld [vmem:[%s9580_s1 + $0x244] sm:$0xf]  ;;  %v4612_v18 = vld [vmem:[%s9580_s1 + $0x350] sm:$0xf0]  ;;  %v4887_v21 = vor.u32 %v6256_v12, %v4884_v13  ;;  %v6111_v8 = vld [vmem:[%s9580_s1 + $0xd4] sm:$0xf0] }
  0x4a   :  { %1362 = vmatpush.bf16.msra.mxu0 %v4551_v33  ;;  %1375 = vmatpush.bf16.msra.mxu1 %v4679_v34  ;;  %v6188_v17 = vld [vmem:[%s9580_s1 + $0x344] sm:$0xf]  ;;  %v4740_v20 = vld [vmem:[%s9580_s1 + $0x450] sm:$0xf0]  ;;  %v4487_v22 = vor.u32 %v6156_v14, %v4484_v16  ;;  %v4554_v14 = vld [vmem:[%s9580_s1 + $0x2c8] sm:$0xf] }
  0x4b   :  { %1400 = vmatpush.bf16.msrb.mxu2 %v4951_v31  ;;  %v6220_v19 = vld [vmem:[%s9580_s1 + $0x444] sm:$0xf]  ;;  %v4615_v23 = vor.u32 %v6188_v17, %v4612_v18  ;;  %v4868_v25 = vld [vmem:[%s9580_s1 + $0x550] sm:$0xf0]  ;;  %v6175_v16 = vld [vmem:[%s9580_s1 + $0x2d4] sm:$0xf0] }
  0x4c   :  { %1388 = vmatpush.bf16.msra.mxu3 %v4807_v38  ;;  %1356 = vmatmul.bf16.vlgmr.msra.gmra.mxu2 %v6933_v4  ;;  %v6252_v24 = vld [vmem:[%s9580_s1 + $0x544] sm:$0xf]  ;;  %v4743_v28 = vor.u32 %v6220_v19, %v4740_v20  ;;  %v4468_v29 = vld [vmem:[%s9580_s1 + $0x230] sm:$0xf0]  ;;  %v4682_v17 = vld [vmem:[%s9580_s1 + $0x3c8] sm:$0xf] }
  0x4d   :  { %v6152_v26 = vld [vmem:[%s9580_s1 + $0x224] sm:$0xf]  ;;  %v4596_v31 = vld [vmem:[%s9580_s1 + $0x330] sm:$0xf0]  ;;  %v4871_v35 = vor.u32 %v6252_v24, %v4868_v25  ;;  %v6207_v18 = vld [vmem:[%s9580_s1 + $0x3d4] sm:$0xf0]  ;;  %v4555_v24 = vor.u32 %v6175_v16, %v4554_v14 }
  0x4e   :  { %1363 = vmatpush.bf16.msra.mxu0 %v4535_v46  ;;  %1376 = vmatpush.bf16.msra.mxu1 %v4663_v47  ;;  %v6184_v30 = vld [vmem:[%s9580_s1 + $0x324] sm:$0xf]  ;;  %v4724_v34 = vld [vmem:[%s9580_s1 + $0x430] sm:$0xf0]  ;;  %v4471_v38 = vor.u32 %v6152_v26, %v4468_v29  ;;  %v4282_v20 = vld [vmem:[%s9580_s1 + $0xa8] sm:$0xf]  ;;  %v4683_v25 = vor.u32 %v6207_v18, %v4682_v17 }
  0x4f   :  { %1401 = vmatpush.bf16.msrb.mxu2 %v4935_v45  ;;  %v6216_v33 = vld [vmem:[%s9580_s1 + $0x424] sm:$0xf]  ;;  %v4852_v37 = vld [vmem:[%s9580_s1 + $0x530] sm:$0xf0]  ;;  %v4599_v39 = vor.u32 %v6184_v30, %v4596_v31  ;;  %v4538_v26 = vld [vmem:[%s9580_s1 + $0x2a8] sm:$0xf] }
  0x50   :  { %1389 = vmatpush.bf16.msra.mxu3 %v4791_v51  ;;  %v6248_v36 = vld [vmem:[%s9580_s1 + $0x524] sm:$0xf]  ;;  %v4452_v42 = vld [vmem:[%s9580_s1 + $0x210] sm:$0xf0]  ;;  %v4727_v44 = vor.u32 %v6216_v33, %v4724_v34  ;;  %v6171_v29 = vld [vmem:[%s9580_s1 + $0x2b4] sm:$0xf0] }
  0x51   :  { %v6148_v40 = vld [vmem:[%s9580_s1 + $0x204] sm:$0xf]  ;;  %v4580_v45 = vld [vmem:[%s9580_s1 + $0x310] sm:$0xf0]  ;;  %v4855_v51 = vor.u32 %v6248_v36, %v4852_v37  ;;  %v4666_v30 = vld [vmem:[%s9580_s1 + $0x3a8] sm:$0xf] }
  0x52   :  { %1364 = vmatpush.bf16.msra.mxu0 %v4519_v61  ;;  %1377 = vmatpush.bf16.msra.mxu1 %v4647_v62  ;;  %v6180_v43 = vld [vmem:[%s9580_s1 + $0x304] sm:$0xf]  ;;  %v4708_v47 = vld [vmem:[%s9580_s1 + $0x410] sm:$0xf0]  ;;  %v4455_v57 = vor.u32 %v6148_v40, %v4452_v42  ;;  %v4570_v62 = vld [vmem:[%s9580_s1 + $0x2e8] sm:$0xf] }
  0x53   :  { %1402 = vmatpush.bf16.msrb.mxu2 %v4919_v60  ;;  %v6212_v46 = vld [vmem:[%s9580_s1 + $0x404] sm:$0xf]  ;;  %v4964_v56 = vld [vmem:[%s9580_s1 + $0x610] sm:$0xf0]  ;;  %v4583_v58 = vor.u32 %v6180_v43, %v4580_v45  ;;  %v4571_v12 = vor.u32 %v6179_v1, %v4570_v62  ;;  %v6203_v31 = vld [vmem:[%s9580_s1 + $0x3b4] sm:$0xf0] }
  0x54   :  { %1390 = vmatpush.bf16.msra.mxu3 %v4775_v2  ;;  %v6276_v55 = vld [vmem:[%s9580_s1 + $0x604] sm:$0xf]  ;;  %v4836_v61 = vld [vmem:[%s9580_s1 + $0x510] sm:$0xf0]  ;;  %v4711_v63 = vor.u32 %v6212_v46, %v4708_v47  ;;  %v4698_v2 = vld [vmem:[%s9580_s1 + $0x3e8] sm:$0xf] }
  0x55   :  { %v6244_v60 = vld [vmem:[%s9580_s1 + $0x504] sm:$0xf]  ;;  %v4967_v6 = vor.u32 %v6276_v55, %v4964_v56  ;;  %v4699_v13 = vor.u32 %v6211_v3, %v4698_v2  ;;  %v4266_v34 = vld [vmem:[%s9580_s1 + $0x88] sm:$0xf]  ;;  %v6135_v37 = vld [vmem:[%s9580_s1 + $0x194] sm:$0xf0] }
  0x56   :  { %1365 = vmatpush.bf16.msra.mxu0 %v4503_v10  ;;  %1378 = vmatpush.bf16.msra.mxu1 %v4631_v11  ;;  %v4426_v10 = vld [vmem:[%s9580_s1 + $0x1c8] sm:$0xf]  ;;  %v6143_v11 = vld [vmem:[%s9580_s1 + $0x1d4] sm:$0xf0] }
  0x57   :  { %1403 = vmatpush.bf16.msrb.mxu2 %v4903_v9  ;;  %v4839_v9 = vor.u32 %v6244_v60, %v4836_v61  ;;  %v4427_v19 = vor.u32 %v6143_v11, %v4426_v10  ;;  %v4394_v36 = vld [vmem:[%s9580_s1 + $0x188] sm:$0xf]  ;;  %v6167_v43 = vld [vmem:[%s9580_s1 + $0x294] sm:$0xf0] }
  0x58   :  { %1391 = vmatpush.bf16.msra.mxu3 %v4759_v15  ;;  %v4299_v15 = vor.u32 %v6111_v8, %v4298_v7  ;;  %v4522_v40 = vld [vmem:[%s9580_s1 + $0x288] sm:$0xf]  ;;  %v6199_v45 = vld [vmem:[%s9580_s1 + $0x394] sm:$0xf0]  ;;  %v4395_v46 = vor.u32 %v6135_v37, %v4394_v36 }
  0x59   :  { %v4250_v47 = vld [vmem:[%s9580_s1 + $0x68] sm:$0xf]  ;;  %v6131_v50 = vld [vmem:[%s9580_s1 + $0x174] sm:$0xf0] }
  0x5a   :  { %1366 = vmatpush.bf16.msra.mxu0 %v4487_v22  ;;  %1379 = vmatpush.bf16.msra.mxu1 %v4615_v23  ;;  %v4410_v22 = vld [vmem:[%s9580_s1 + $0x1a8] sm:$0xf]  ;;  %v6139_v23 = vld [vmem:[%s9580_s1 + $0x1b4] sm:$0xf0]  ;;  %v4251_v56 = vor.u32 %v6099_v48, %v4250_v47 }
  0x5b   :  { %1404 = vmatpush.bf16.msrb.mxu2 %v4887_v21  ;;  %v6107_v21 = vld [vmem:[%s9580_s1 + $0xb4] sm:$0xf0]  ;;  %v4411_v33 = vor.u32 %v6139_v23, %v4410_v22  ;;  %v4378_v49 = vld [vmem:[%s9580_s1 + $0x168] sm:$0xf] }
  0x5c   :  { %1392 = vmatpush.bf16.msra.mxu3 %v4743_v28  ;;  %v4283_v28 = vor.u32 %v6107_v21, %v4282_v20  ;;  %v4506_v55 = vld [vmem:[%s9580_s1 + $0x268] sm:$0xf]  ;;  %v6195_v60 = vld [vmem:[%s9580_s1 + $0x374] sm:$0xf0]  ;;  %v4379_v61 = vor.u32 %v6131_v50, %v4378_v49 }
  0x5d   :  { %v4234_v62 = vld [vmem:[%s9580_s1 + $0x48] sm:$0xf]  ;;  %v6127_v1 = vld [vmem:[%s9580_s1 + $0x154] sm:$0xf0] }
  0x5e   :  { %1367 = vmatpush.bf16.msra.mxu0 %v4471_v38  ;;  %1380 = vmatpush.bf16.msra.mxu1 %v4599_v39  ;;  %v4539_v38 = vor.u32 %v6171_v29, %v4538_v26  ;;  %v4667_v39 = vor.u32 %v6203_v31, %v4666_v30  ;;  %v6159_v7 = vld [vmem:[%s9580_s1 + $0x254] sm:$0xf0]  ;;  %v4618_v8 = vld [vmem:[%s9580_s1 + $0x348] sm:$0xf] }
  0x5f   :  { %1405 = vmatpush.bf16.msrb.mxu2 %v4871_v35  ;;  %v6103_v35 = vld [vmem:[%s9580_s1 + $0x94] sm:$0xf0]  ;;  %v4218_v11 = vld [vmem:[%s9580_s1 + $0x28] sm:$0xf] }
  0x60   :  { %1393 = vmatpush.bf16.msra.mxu3 %v4727_v44  ;;  %v4267_v42 = vor.u32 %v6103_v35, %v4266_v34  ;;  %v4650_v44 = vld [vmem:[%s9580_s1 + $0x388] sm:$0xf]  ;;  %v6123_v14 = vld [vmem:[%s9580_s1 + $0x134] sm:$0xf0] }
  0x61   :  { %v4651_v53 = vor.u32 %v6199_v45, %v4650_v44  ;;  %v4474_v17 = vld [vmem:[%s9580_s1 + $0x228] sm:$0xf]  ;;  %v6155_v18 = vld [vmem:[%s9580_s1 + $0x234] sm:$0xf0]  ;;  %v4316_v44 = vld [vmem:[%s9580_s1 + $0xf8] sm:$0xf0] }
  0x62   :  { %1368 = vmatpush.bf16.msra.mxu0 %v4455_v57  ;;  %1381 = vmatpush.bf16.msra.mxu1 %v4583_v58  ;;  %v6163_v57 = vld [vmem:[%s9580_s1 + $0x274] sm:$0xf0]  ;;  %v4634_v58 = vld [vmem:[%s9580_s1 + $0x368] sm:$0xf]  ;;  %v4475_v31 = vor.u32 %v6155_v18, %v4474_v17  ;;  %v6137_v18 = vld [vmem:[%s9580_s1 + $0x1ac] sm:$0xf] }
  0x63   :  { %1406 = vmatpush.bf16.msrb.mxu2 %v4855_v51  ;;  %v4523_v51 = vor.u32 %v6167_v43, %v4522_v40  ;;  %v4507_v2 = vor.u32 %v6163_v57, %v4506_v55  ;;  %v4635_v3 = vor.u32 %v6195_v60, %v4634_v58  ;;  %v4602_v20 = vld [vmem:[%s9580_s1 + $0x328] sm:$0xf]  ;;  %v6187_v21 = vld [vmem:[%s9580_s1 + $0x334] sm:$0xf0]  ;;  %v6113_v40 = vld [vmem:[%s9580_s1 + $0xec] sm:$0xf] }
  0x64   :  { %1394 = vmatpush.bf16.msra.mxu3 %v4711_v63  ;;  %v6095_v63 = vld [vmem:[%s9580_s1 + $0x54] sm:$0xf0]  ;;  %v4202_v22 = vld [vmem:[%s9580_s1 + $0x8] sm:$0xf]  ;;  %v6145_v58 = vld [vmem:[%s9580_s1 + $0x1ec] sm:$0xf] }
  0x65   :  { %1369 = vmatmul.bf16.vlgmr.msra.gmra.mxu0 %v6900_v52  ;;  %1382 = vmatmul.bf16.vlgmr.msra.gmra.mxu1 %v6910_v59  ;;  %v6119_v26 = vld [vmem:[%s9580_s1 + $0x114] sm:$0xf0]  ;;  %v4954_v30 = vld [vmem:[%s9580_s1 + $0x5e8] sm:$0xf]  ;;  %v4444_v60 = vld [vmem:[%s9580_s1 + $0x1f8] sm:$0xf0] }
  0x66   :  { %1426 = vmatpush.bf16.msrb.mxu1 %v4315_v0  ;;  %1420 = vmatpush.bf16.msrb.mxu0 %v4967_v6  ;;  %v4362_v0 = vld [vmem:[%s9580_s1 + $0x148] sm:$0xf]  ;;  %v4235_v6 = vor.u32 %v6095_v63, %v4234_v62  ;;  %v6243_v29 = vld [vmem:[%s9580_s1 + $0x4f4] sm:$0xf0]  ;;  %v6109_v62 = vld [vmem:[%s9580_s1 + $0xcc] sm:$0xf] }
  0x67   :  { %1407 = vmatpush.bf16.msrb.mxu2 %v4839_v9  ;;  %1395 = vmatmul.bf16.vlgmr.msra.gmra.mxu3 %v7102_v27  ;;  %v6191_v9 = vld [vmem:[%s9580_s1 + $0x354] sm:$0xf0]  ;;  %v4363_v10 = vor.u32 %v6127_v1, %v4362_v0  ;;  %v4458_v35 = vld [vmem:[%s9580_s1 + $0x208] sm:$0xf]  ;;  %v4300_v63 = vld [vmem:[%s9580_s1 + $0xd8] sm:$0xf0] }
  0x68   :  { %1439 = vmatpush.bf16.msrb.mxu3 %v4443_v5  ;;  %v4490_v5 = vld [vmem:[%s9580_s1 + $0x248] sm:$0xf]  ;;  %v4619_v16 = vor.u32 %v6191_v9, %v4618_v8  ;;  %v6275_v34 = vld [vmem:[%s9580_s1 + $0x5f4] sm:$0xf0]  ;;  %v6141_v8 = vld [vmem:[%s9580_s1 + $0x1cc] sm:$0xf] }
  0x69   :  { %v6151_v36 = vld [vmem:[%s9580_s1 + $0x214] sm:$0xf0]  ;;  %v4970_v45 = vld [vmem:[%s9580_s1 + $0x608] sm:$0xf]  ;;  %v4955_v47 = vor.u32 %v6275_v34, %v4954_v30  ;;  %v4428_v9 = vld [vmem:[%s9580_s1 + $0x1d8] sm:$0xf0] }
  0x6a   :  { %1452 = vmatpush.bf16.msra.mxu0 %v4571_v12  ;;  %1427 = vmatpush.bf16.msrb.mxu1 %v4299_v15  ;;  %v6091_v12 = vld [vmem:[%s9580_s1 + $0x34] sm:$0xf0]  ;;  %v4491_v15 = vor.u32 %v6159_v7, %v4490_v5  ;;  %v4810_v48 = vld [vmem:[%s9580_s1 + $0x4c8] sm:$0xf]  ;;  %v4459_v50 = vor.u32 %v6151_v36, %v4458_v35  ;;  %v4303_v7 = vor.u32 %v6109_v62, %v4300_v63  ;;  %v4396_v30 = vld [vmem:[%s9580_s1 + $0x198] sm:$0xf0] }
  0x6b   :  { %1465 = vmatpush.bf16.msra.mxu2 %v4699_v13  ;;  %v4346_v13 = vld [vmem:[%s9580_s1 + $0x128] sm:$0xf]  ;;  %v6239_v49 = vld [vmem:[%s9580_s1 + $0x4d4] sm:$0xf0]  ;;  %v4252_v34 = vld [vmem:[%s9580_s1 + $0x78] sm:$0xf0] }
  0x6c   :  { %1440 = vmatpush.bf16.msrb.mxu3 %v4427_v19  ;;  %1408 = vmatmul.bf16.vlgmr.msrb.gmra.mxu2 %v7110_v32  ;;  %v4219_v19 = vor.u32 %v6091_v12, %v4218_v11  ;;  %v4347_v23 = vor.u32 %v6123_v14, %v4346_v13  ;;  %v6271_v55 = vld [vmem:[%s9580_s1 + $0x5d4] sm:$0xf0]  ;;  %v4794_v1 = vld [vmem:[%s9580_s1 + $0x4a8] sm:$0xf]  ;;  %v6105_v11 = vld [vmem:[%s9580_s1 + $0xac] sm:$0xf] }
  0x6d   :  { %v4922_v5 = vld [vmem:[%s9580_s1 + $0x5a8] sm:$0xf]  ;;  %v4284_v12 = vld [vmem:[%s9580_s1 + $0xb8] sm:$0xf0] }
  0x6e   :  { %1453 = vmatpush.bf16.msra.mxu0 %v4555_v24  ;;  %1428 = vmatpush.bf16.msrb.mxu1 %v4283_v28  ;;  %v6087_v24 = vld [vmem:[%s9580_s1 + $0x14] sm:$0xf0]  ;;  %v4826_v28 = vld [vmem:[%s9580_s1 + $0x4e8] sm:$0xf]  ;;  %v4287_v17 = vor.u32 %v6105_v11, %v4284_v12  ;;  %v4220_v62 = vld [vmem:[%s9580_s1 + $0x38] sm:$0xf0] }
  0x6f   :  { %1466 = vmatpush.bf16.msra.mxu2 %v4683_v25  ;;  %v4330_v25 = vld [vmem:[%s9580_s1 + $0x108] sm:$0xf]  ;;  %v4203_v37 = vor.u32 %v6087_v24, %v4202_v22  ;;  %v4827_v43 = vor.u32 %v6243_v29, %v4826_v28  ;;  %v6227_v24 = vld [vmem:[%s9580_s1 + $0x474] sm:$0xf0]  ;;  %v6133_v29 = vld [vmem:[%s9580_s1 + $0x18c] sm:$0xf] }
  0x70   :  { %1441 = vmatpush.bf16.msrb.mxu3 %v4411_v33  ;;  %v4603_v33 = vor.u32 %v6187_v21, %v4602_v20  ;;  %v4778_v14 = vld [vmem:[%s9580_s1 + $0x488] sm:$0xf]  ;;  %v6101_v20 = vld [vmem:[%s9580_s1 + $0x8c] sm:$0xf]  ;;  %v4268_v21 = vld [vmem:[%s9580_s1 + $0x98] sm:$0xf0] }
  0x71   :  { %v4271_v28 = vor.u32 %v6101_v20, %v4268_v21  ;;  %v4746_v36 = vld [vmem:[%s9580_s1 + $0x448] sm:$0xf]  ;;  %v4348_v11 = vld [vmem:[%s9580_s1 + $0x138] sm:$0xf0]  ;;  %v6205_v20 = vld [vmem:[%s9580_s1 + $0x3cc] sm:$0xf] }
  0x72   :  { %1454 = vmatpush.bf16.msra.mxu0 %v4539_v38  ;;  %1429 = vmatpush.bf16.msrb.mxu1 %v4267_v42  ;;  %v4586_v38 = vld [vmem:[%s9580_s1 + $0x308] sm:$0xf]  ;;  %v4331_v42 = vor.u32 %v6119_v26, %v4330_v25  ;;  %v6259_v26 = vld [vmem:[%s9580_s1 + $0x574] sm:$0xf0] }
  0x73   :  { %1467 = vmatpush.bf16.msra.mxu2 %v4667_v39  ;;  %v6183_v39 = vld [vmem:[%s9580_s1 + $0x314] sm:$0xf0]  ;;  %v4890_v25 = vld [vmem:[%s9580_s1 + $0x568] sm:$0xf] }
  0x74   :  { %1442 = vmatpush.bf16.msrb.mxu3 %v4395_v46  ;;  %v6279_v46 = vld [vmem:[%s9580_s1 + $0x614] sm:$0xf0]  ;;  %v4891_v35 = vor.u32 %v6259_v26, %v4890_v25  ;;  %v4714_v63 = vld [vmem:[%s9580_s1 + $0x408] sm:$0xf]  ;;  %v6273_v25 = vld [vmem:[%s9580_s1 + $0x5ec] sm:$0xf] }
  0x75   :  { %4977 = vmatmul.msk.bf16.vlgmr.msrb.gmra.mxu0 %vm1241_vm0, %v7008_v41  ;;  %v4971_v57 = vor.u32 %v6279_v46, %v4970_v45  ;;  %v6093_v46 = vld [vmem:[%s9580_s1 + $0x4c] sm:$0xf]  ;;  %v4956_v26 = vld [vmem:[%s9580_s1 + $0x5f8] sm:$0xf0] }
  0x76   :  { %1455 = vmatpush.bf16.msra.mxu0 %v4523_v51  ;;  %1430 = vmatpush.bf16.msrb.mxu1 %v4251_v56  ;;  %v4587_v51 = vor.u32 %v6183_v39, %v4586_v38  ;;  %v4319_v56 = vor.u32 %v6113_v40, %v4316_v44  ;;  %v4399_v38 = vor.u32 %v6133_v29, %v4396_v30  ;;  %v4874_v39 = vld [vmem:[%s9580_s1 + $0x548] sm:$0xf]  ;;  %v6255_v40 = vld [vmem:[%s9580_s1 + $0x554] sm:$0xf0]  ;;  %v4380_v44 = vld [vmem:[%s9580_s1 + $0x178] sm:$0xf0] }
  0x77   :  { %1468 = vmatpush.bf16.msra.mxu2 %v4651_v53  ;;  %v4938_v53 = vld [vmem:[%s9580_s1 + $0x5c8] sm:$0xf]  ;;  %v6237_v29 = vld [vmem:[%s9580_s1 + $0x4cc] sm:$0xf]  ;;  %v4812_v30 = vld [vmem:[%s9580_s1 + $0x4d8] sm:$0xf0] }
  0x78   :  { %1443 = vmatpush.bf16.msrb.mxu3 %v4379_v61  ;;  %v4811_v61 = vor.u32 %v6239_v49, %v4810_v48  ;;  %v4939_v0 = vor.u32 %v6271_v55, %v4938_v53  ;;  %v4875_v48 = vor.u32 %v6255_v40, %v4874_v39  ;;  %v4730_v49 = vld [vmem:[%s9580_s1 + $0x428] sm:$0xf]  ;;  %v6251_v55 = vld [vmem:[%s9580_s1 + $0x534] sm:$0xf0]  ;;  %v4815_v39 = vor.u32 %v6237_v29, %v4812_v30  ;;  %v6269_v40 = vld [vmem:[%s9580_s1 + $0x5cc] sm:$0xf] }
  0x79   :  { %v4858_v53 = vld [vmem:[%s9580_s1 + $0x528] sm:$0xf]  ;;  %v6253_v30 = vld [vmem:[%s9580_s1 + $0x54c] sm:$0xf] }
  0x7a   :  { %1456 = vmatpush.bf16.msra.mxu0 %v4507_v2  ;;  %1431 = vmatpush.bf16.msrb.mxu1 %v4235_v6  ;;  %v6235_v2 = vld [vmem:[%s9580_s1 + $0x4b4] sm:$0xf0] }
  0x7b   :  { %1469 = vmatpush.bf16.msra.mxu2 %v4635_v3  ;;  %v4447_v3 = vor.u32 %v6145_v58, %v4444_v60  ;;  %v6267_v6 = vld [vmem:[%s9580_s1 + $0x5b4] sm:$0xf0]  ;;  %v4364_v58 = vld [vmem:[%s9580_s1 + $0x158] sm:$0xf0] }
  0x7c   :  { %1444 = vmatpush.bf16.msrb.mxu3 %v4363_v10  ;;  %v4795_v10 = vor.u32 %v6235_v2, %v4794_v1  ;;  %v4923_v13 = vor.u32 %v6267_v6, %v4922_v5  ;;  %v6215_v1 = vld [vmem:[%s9580_s1 + $0x414] sm:$0xf0]  ;;  %v4842_v2 = vld [vmem:[%s9580_s1 + $0x508] sm:$0xf]  ;;  %v6177_v6 = vld [vmem:[%s9580_s1 + $0x2ec] sm:$0xf] }
  0x7d   :  { %v4715_v12 = vor.u32 %v6215_v1, %v4714_v63  ;;  %v4508_v63 = vld [vmem:[%s9580_s1 + $0x278] sm:$0xf0]  ;;  %v6193_v1 = vld [vmem:[%s9580_s1 + $0x36c] sm:$0xf] }
  0x7e   :  { %1457 = vmatpush.bf16.msra.mxu0 %v4491_v15  ;;  %1432 = vmatpush.bf16.msrb.mxu1 %v4219_v19  ;;  %v4431_v15 = vor.u32 %v6141_v8, %v4428_v9  ;;  %v4412_v19 = vld [vmem:[%s9580_s1 + $0x1b8] sm:$0xf0]  ;;  %v6209_v8 = vld [vmem:[%s9580_s1 + $0x3ec] sm:$0xf] }
  0x7f   :  { %1470 = vmatpush.bf16.msra.mxu2 %v4619_v16  ;;  %v4906_v16 = vld [vmem:[%s9580_s1 + $0x588] sm:$0xf] }
  0x80   :  { %1445 = vmatpush.bf16.msrb.mxu3 %v4347_v23  ;;  %v4762_v23 = vld [vmem:[%s9580_s1 + $0x468] sm:$0xf] }
  0x82   :  { %1458 = vmatpush.bf16.msra.mxu0 %v4475_v31  ;;  %1433 = vmatpush.bf16.msrb.mxu1 %v4203_v37  ;;  %v4763_v31 = vor.u32 %v6227_v24, %v4762_v23  ;;  %v6223_v37 = vld [vmem:[%s9580_s1 + $0x454] sm:$0xf0]  ;;  %v6117_v23 = vld [vmem:[%s9580_s1 + $0x10c] sm:$0xf]  ;;  %v4332_v24 = vld [vmem:[%s9580_s1 + $0x118] sm:$0xf0] }
  0x83   :  { %1471 = vmatpush.bf16.msra.mxu2 %v4603_v33  ;;  %v6097_v33 = vld [vmem:[%s9580_s1 + $0x6c] sm:$0xf]  ;;  %v4747_v45 = vor.u32 %v6223_v37, %v4746_v36  ;;  %v4959_v36 = vor.u32 %v6273_v25, %v4956_v26  ;;  %v4604_v26 = vld [vmem:[%s9580_s1 + $0x338] sm:$0xf0] }
  0x84   :  { %1446 = vmatpush.bf16.msrb.mxu3 %v4331_v42  ;;  %v4255_v42 = vor.u32 %v6097_v33, %v4252_v34  ;;  %v4335_v33 = vor.u32 %v6117_v23, %v4332_v24  ;;  %v6169_v34 = vld [vmem:[%s9580_s1 + $0x2ac] sm:$0xf]  ;;  %v4476_v24 = vld [vmem:[%s9580_s1 + $0x238] sm:$0xf0] }
  0x85   :  { %1434 = vmatmul.bf16.vlgmr.msrb.gmra.mxu1 %v6902_v54  ;;  %v6201_v37 = vld [vmem:[%s9580_s1 + $0x3ac] sm:$0xf] }
  0x86   :  { %1478 = vmatpush.bf16.msra.mxu1 %v4827_v43  ;;  %1459 = vmatpush.bf16.msra.mxu0 %v4459_v50  ;;  %v6129_v43 = vld [vmem:[%s9580_s1 + $0x16c] sm:$0xf]  ;;  %v6219_v50 = vld [vmem:[%s9580_s1 + $0x434] sm:$0xf0] }
  0x87   :  { %1472 = vmatpush.bf16.msra.mxu2 %v4587_v51  ;;  %1447 = vmatmul.bf16.vlgmr.msrb.gmra.mxu3 %v6933_v4  ;;  %v6231_v4 = vld [vmem:[%s9580_s1 + $0x494] sm:$0xf0]  ;;  %v4383_v51 = vor.u32 %v6129_v43, %v4380_v44  ;;  %v4731_v60 = vor.u32 %v6219_v50, %v4730_v49  ;;  %v6233_v43 = vld [vmem:[%s9580_s1 + $0x4ac] sm:$0xf]  ;;  %v4652_v49 = vld [vmem:[%s9580_s1 + $0x398] sm:$0xf0] }
  0x88   :  { %1491 = vmatpush.bf16.msra.mxu3 %v4955_v47  ;;  %v4779_v54 = vor.u32 %v6231_v4, %v4778_v14  ;;  %v4236_v47 = vld [vmem:[%s9580_s1 + $0x58] sm:$0xf0]  ;;  %v6583_v50 = vld [vmem:[#allocation1] sm:$0xff]  ;;  %v6153_v23 = vld [vmem:[%s9580_s1 + $0x22c] sm:$0xf] }
  0x89   :  { %1460 = vmatmul.bf16.vlgmr.msra.gmra.mxu0 %v6900_v52  ;;  %v6263_v52 = vld [vmem:[%s9580_s1 + $0x594] sm:$0xf0]  ;;  %v4204_v14 = vld [vmem:[%s9580_s1 + $0x18] sm:$0xf0]  ;;  %v6185_v25 = vld [vmem:[%s9580_s1 + $0x32c] sm:$0xf] }
  0x8a   :  { %1511 = vmatpush.bf16.msrb.mxu0 %v4971_v57  ;;  %1479 = vmatpush.bf16.msra.mxu1 %v4811_v61  ;;  %v4907_v22 = vor.u32 %v6263_v52, %v4906_v16  ;;  %v6125_v57 = vld [vmem:[%s9580_s1 + $0x14c] sm:$0xf]  ;;  %v4828_v52 = vld [vmem:[%s9580_s1 + $0x4f8] sm:$0xf0] }
  0x8b   :  { %1517 = vmatpush.bf16.msrb.mxu2 %v4319_v56  ;;  %v4239_v56 = vor.u32 %v6093_v46, %v4236_v47  ;;  %v6089_v61 = vld [vmem:[%s9580_s1 + $0x2c] sm:$0xf]  ;;  %v4367_v5 = vor.u32 %v6125_v57, %v4364_v58  ;;  %v4524_v46 = vld [vmem:[%s9580_s1 + $0x298] sm:$0xf0] }
  0x8c   :  { %1492 = vmatpush.bf16.msra.mxu3 %v4939_v0  ;;  %1473 = vmatmul.bf16.vlgmr.msra.gmra.mxu2 %v6910_v59  ;;  %v4415_v59 = vor.u32 %v6137_v18, %v4412_v19  ;;  %v4859_v0 = vor.u32 %v6251_v55, %v4858_v53  ;;  %v4223_v9 = vor.u32 %v6089_v61, %v4220_v62  ;;  %v6241_v16 = vld [vmem:[%s9580_s1 + $0x4ec] sm:$0xf]  ;;  %v4924_v55 = vld [vmem:[%s9580_s1 + $0x5b8] sm:$0xf0] }
  0x8d   :  { %v6173_v19 = vld [vmem:[%s9580_s1 + $0x2cc] sm:$0xf]  ;;  %v4780_v58 = vld [vmem:[%s9580_s1 + $0x498] sm:$0xf0] }
  0x8e   :  { %1530 = vmatpush.bf16.msra.mxu0 %v4447_v3  ;;  %1480 = vmatpush.bf16.msra.mxu1 %v4795_v10  ;;  %v6247_v3 = vld [vmem:[%s9580_s1 + $0x514] sm:$0xf0]  ;;  %v6121_v10 = vld [vmem:[%s9580_s1 + $0x12c] sm:$0xf] }
  0x8f   :  { %1518 = vmatpush.bf16.msrb.mxu2 %v4303_v7  ;;  %v4572_v7 = vld [vmem:[%s9580_s1 + $0x2f8] sm:$0xf0]  ;;  %v4843_v4 = vor.u32 %v6247_v3, %v4842_v2  ;;  %v4351_v18 = vor.u32 %v6121_v10, %v4348_v11  ;;  %v6265_v53 = vld [vmem:[%s9580_s1 + $0x5ac] sm:$0xf] }
  0x90   :  { %1493 = vmatpush.bf16.msra.mxu3 %v4923_v13  ;;  %v6085_v13 = vld [vmem:[%s9580_s1 + $0xc] sm:$0xf]  ;;  %v4636_v2 = vld [vmem:[%s9580_s1 + $0x378] sm:$0xf0] }
  0x91   :  { %v4207_v21 = vor.u32 %v6085_v13, %v4204_v14  ;;  %v6229_v57 = vld [vmem:[%s9580_s1 + $0x48c] sm:$0xf]  ;;  %v4639_v10 = vor.u32 %v6193_v1, %v4636_v2  ;;  %v6286_v2 = vld [vmem:[%s9583_s3 + $0x30] sm:$0xff] }
  0x92   :  { %1531 = vmatpush.bf16.msra.mxu0 %v4431_v15  ;;  %1481 = vmatpush.bf16.msra.mxu1 %v4779_v54  ;;  %v4575_v15 = vor.u32 %v6177_v6, %v4572_v7  ;;  %v4556_v54 = vld [vmem:[%s9580_s1 + $0x2d8] sm:$0xf0]  ;;  %v6161_v62 = vld [vmem:[%s9580_s1 + $0x26c] sm:$0xf] }
  0x93   :  { %1519 = vmatpush.bf16.msrb.mxu2 %v4287_v17  ;;  %v6261_v6 = vld [vmem:[%s9580_s1 + $0x58c] sm:$0xf]  ;;  %v4908_v7 = vld [vmem:[%s9580_s1 + $0x598] sm:$0xf0] }
  0x94   :  { %1494 = vmatpush.bf16.msra.mxu3 %v4907_v22  ;;  %v4684_v22 = vld [vmem:[%s9580_s1 + $0x3d8] sm:$0xf0]  ;;  %v6157_v11 = vld [vmem:[%s9580_s1 + $0x24c] sm:$0xf]  ;;  %v4911_v13 = vor.u32 %v6261_v6, %v4908_v7 }
  0x95   :  { %v6586_v7 = vld [vmem:[#allocation1 + $0x1b] sm:$0xff] }
  0x96   :  { %1532 = vmatpush.bf16.msra.mxu0 %v4415_v59  ;;  %1482 = vmatpush.bf16.msra.mxu1 %v4763_v31  ;;  %v4831_v59 = vor.u32 %v6241_v16, %v4828_v52  ;;  %v4687_v31 = vor.u32 %v6205_v20, %v4684_v22  ;;  %v6257_v52 = vld [vmem:[%s9580_s1 + $0x56c] sm:$0xf]  ;;  %v4748_v20 = vld [vmem:[%s9580_s1 + $0x458] sm:$0xf0] }
  0x97   :  { %1520 = vmatpush.bf16.msrb.mxu2 %v4271_v28  ;;  %v4559_v28 = vor.u32 %v6173_v19, %v4556_v54  ;;  %v6221_v54 = vld [vmem:[%s9580_s1 + $0x44c] sm:$0xf] }
  0x98   :  { %1495 = vmatpush.bf16.msra.mxu3 %v4891_v35  ;;  %v4540_v35 = vld [vmem:[%s9580_s1 + $0x2b8] sm:$0xf0]  ;;  %v4751_v29 = vor.u32 %v6221_v54, %v4748_v20  ;;  %v6282_v20 = vld [vmem:[%s9583_s3 + $0x10] sm:$0xff] }
  0x99   :  { %4978 = vmatmul.msk.bf16.vlgmr.msrb.gmra.mxu0 %vm1241_vm0, %v7008_v41  ;;  %v4700_v41 = vld [vmem:[%s9580_s1 + $0x3f8] sm:$0xf0] }
  0x9a   :  { %1533 = vmatpush.bf16.msra.mxu0 %v4399_v38  ;;  %1483 = vmatpush.bf16.msra.mxu1 %v4747_v45  ;;  %v4703_v17 = vor.u32 %v6209_v8, %v4700_v41  ;;  %v4668_v38 = vld [vmem:[%s9580_s1 + $0x3b8] sm:$0xf0]  ;;  %v6165_v45 = vld [vmem:[%s9580_s1 + $0x28c] sm:$0xf]  ;;  %v4511_v8 = vor.u32 %v6161_v62, %v4508_v63 }
  0x9b   :  { %1521 = vmatpush.bf16.msrb.mxu2 %v4255_v42  ;;  %v4543_v42 = vor.u32 %v6169_v34, %v4540_v35  ;;  %v4671_v44 = vor.u32 %v6201_v37, %v4668_v38  ;;  %v4764_v41 = vld [vmem:[%s9580_s1 + $0x478] sm:$0xf0]  ;;  %v4479_v34 = vor.u32 %v6153_v23, %v4476_v24  ;;  %v6217_v35 = vld [vmem:[%s9580_s1 + $0x42c] sm:$0xf]  ;;  %v4607_v37 = vor.u32 %v6185_v25, %v4604_v26  ;;  %v6290_v25 = vld [vmem:[%s9583_s3 + $0x50] sm:$0xff] }
  0x9c   :  { %1496 = vmatpush.bf16.msra.mxu3 %v4875_v48  ;;  %v6197_v48 = vld [vmem:[%s9580_s1 + $0x38c] sm:$0xf]  ;;  %v4844_v63 = vld [vmem:[%s9580_s1 + $0x518] sm:$0xf0] }
  0x9d   :  { %v4655_v61 = vor.u32 %v6197_v48, %v4652_v49  ;;  %v6149_v38 = vld [vmem:[%s9580_s1 + $0x20c] sm:$0xf]  ;;  %v6291_v54 = vld [vmem:[%s9583_s3 + $0x58] sm:$0xff] }
  0x9e   :  { %1534 = vmatpush.bf16.msra.mxu0 %v4383_v51  ;;  %1484 = vmatpush.bf16.msra.mxu1 %v4731_v60  ;;  %v6584_v60 = vld [vmem:[#allocation1 + $0x9] sm:$0xff]  ;;  %v6589_v23 = vld [vmem:[#allocation1 + $0x36] sm:$0xff] }
  0x9f   :  { %1522 = vmatpush.bf16.msrb.mxu2 %v4239_v56  ;;  %v4527_v56 = vor.u32 %v6165_v45, %v4524_v46  ;;  %v6249_v46 = vld [vmem:[%s9580_s1 + $0x52c] sm:$0xf] }
  0xa0   :  { %1497 = vmatpush.bf16.msra.mxu3 %v4859_v0  ;;  %v4927_v0 = vor.u32 %v6265_v53, %v4924_v55  ;;  %v6245_v62 = vld [vmem:[%s9580_s1 + $0x50c] sm:$0xf] }
  0xa1   :  { %v4847_v6 = vor.u32 %v6245_v62, %v4844_v63 }
  0xa2   :  { %1535 = vmatpush.bf16.msra.mxu0 %v4367_v5  ;;  %1485 = vmatpush.bf16.msra.mxu1 %v4715_v12  ;;  %v4783_v5 = vor.u32 %v6229_v57, %v4780_v58  ;;  %v4492_v12 = vld [vmem:[%s9580_s1 + $0x258] sm:$0xf0] }
  0xa3   :  { %1523 = vmatpush.bf16.msrb.mxu2 %v4223_v9  ;;  %v6225_v9 = vld [vmem:[%s9580_s1 + $0x46c] sm:$0xf]  ;;  %v4495_v19 = vor.u32 %v6157_v11, %v4492_v12  ;;  %v6287_v58 = vld [vmem:[%s9583_s3 + $0x38] sm:$0xff] }
  0xa4   :  { %1498 = vmatpush.bf16.msra.mxu3 %v4843_v4  ;;  %v6189_v4 = vld [vmem:[%s9580_s1 + $0x34c] sm:$0xf]  ;;  %v4767_v16 = vor.u32 %v6225_v9, %v4764_v41  ;;  %v6587_v41 = vld [vmem:[#allocation1 + $0x24] sm:$0xff] }
  0xa5   :  { %1486 = vmatmul.bf16.vlgmr.msra.gmra.mxu1 %v7102_v27  ;;  %v4940_v27 = vld [vmem:[%s9580_s1 + $0x5d8] sm:$0xf0]  ;;  %v6293_v11 = vld [vmem:[%s9583_s3 + $0x68] sm:$0xff] }
  0xa6   :  { %1543 = vmatpush.bf16.msrb.mxu1 %v4575_v15  ;;  %1536 = vmatpush.bf16.msra.mxu0 %v4351_v18  ;;  %v4943_v47 = vor.u32 %v6269_v40, %v4940_v27  ;;  %v7778_v3 = vpop.f32.mrf.mxu0  ;;  %v4620_v15 = vld [vmem:[%s9580_s1 + $0x358] sm:$0xf0]  ;;  %v6181_v40 = vld [vmem:[%s9580_s1 + $0x30c] sm:$0xf] }
  0xa7   :  { %1524 = vmatpush.bf16.msrb.mxu2 %v4207_v21  ;;  %1499 = vmatmul.bf16.vlgmr.msra.gmra.mxu3 %v7110_v32  ;;  %v4796_v32 = vld [vmem:[%s9580_s1 + $0x4b8] sm:$0xf0]  ;;  %v4623_v21 = vor.u32 %v6189_v4, %v4620_v15 }
  0xa8   :  { %1556 = vmatpush.bf16.msrb.mxu3 %v4703_v17  ;;  %v4799_v51 = vor.u32 %v6233_v43, %v4796_v32  ;;  %v7798_v14 = vpop.f32.mrf.mxu1  ;;  %v4892_v17 = vld [vmem:[%s9580_s1 + $0x578] sm:$0xf0]  ;;  %v6277_v32 = vld [vmem:[%s9580_s1 + $0x60c] sm:$0xf] }
  0xaa   :  { %1544 = vmatpush.bf16.msrb.mxu1 %v4559_v28  ;;  %1537 = vmatpush.bf16.msra.mxu0 %v4335_v33  ;;  %v7843_v33 = vld [vmem:[%s9582_s2] sm:$0xf] }
  0xab   :  { %1569 = vmatpush.bf16.msra.mxu2 %v4831_v59  ;;  %v7812_v18 = vpop.f32.mrf.mxu2  ;;  %v4895_v59 = vor.u32 %v6257_v52, %v4892_v17  ;;  %v238_v53 = vperm.slane %v7843_v33, 0  ;;  %v6292_v52 = vld [vmem:[%s9583_s3 + $0x60] sm:$0xff] }
  0xac   :  { %1557 = vmatpush.bf16.msrb.mxu3 %v4687_v31  ;;  %1525 = vmatmul.bf16.vlgmr.msrb.gmra.mxu2 %v6583_v50  ;;  %v7820_v22 = vpop.f32.mrf.mxu3  ;;  %v4876_v31 = vld [vmem:[%s9580_s1 + $0x558] sm:$0xf0]  ;;  %v6213_v50 = vld [vmem:[%s9580_s1 + $0x40c] sm:$0xf] }
  0xad   :  { %1538 = vmatmul.bf16.vlgmr.msra.gmra.mxu0 %v6584_v60  ;;  %v4879_v27 = vor.u32 %v6253_v30, %v4876_v31  ;;  %v1254_v1 = vadd.f32 %v7778_v3, %v238_v53  ;;  %v6294_v3 = vld [vmem:[%s9583_s3 + $0x70] sm:$0xff]  ;;  %v6289_v30 = vld [vmem:[%s9583_s3 + $0x48] sm:$0xff]  ;;  %v6280_v31 = vld [vmem:[%s9583_s3] sm:$0xff] }
  0xae   :  { %1582 = vmatpush.bf16.msrb.mxu0 %v4959_v36  ;;  %1545 = vmatpush.bf16.msrb.mxu1 %v4543_v42  ;;  %v1255_v28 = vpop.f32.mrf.mxu0  ;;  %v4732_v36 = vld [vmem:[%s9580_s1 + $0x438] sm:$0xf0] }
  0xaf   :  { %1570 = vmatpush.bf16.msra.mxu2 %v4815_v39  ;;  %v4460_v39 = vld [vmem:[%s9580_s1 + $0x218] sm:$0xf0]  ;;  %v4735_v45 = vor.u32 %v6217_v35, %v4732_v36  ;;  %v1267_v9 = vadd.f32 %v7798_v14, %v1254_v1  ;;  %v6284_v14 = vld [vmem:[%s9583_s3 + $0x20] sm:$0xff]  ;;  %v6281_v28 = vld [vmem:[%s9583_s3 + $0x8] sm:$0xff] }
  0xb0   :  { %1558 = vmatpush.bf16.msrb.mxu3 %v4671_v44  ;;  %v4588_v42 = vld [vmem:[%s9580_s1 + $0x318] sm:$0xf0]  ;;  %v1268_v43 = vpop.f32.mrf.mxu1  ;;  %v4463_v49 = vor.u32 %v6149_v38, %v4460_v39  ;;  %v6288_v36 = vld [vmem:[%s9583_s3 + $0x40] sm:$0xff]  ;;  %v239_v38 = vperm.slane %v7843_v33, 1 }
  0xb1   :  { %v4972_v44 = vld [vmem:[%s9580_s1 + $0x618] sm:$0xf0]  ;;  %v4591_v55 = vor.u32 %v6181_v40, %v4588_v42  ;;  %v1280_v12 = vadd.f32 %v7812_v18, %v1267_v9 }
  0xb2   :  { %1583 = vmatpush.bf16.msrb.mxu0 %v4943_v47  ;;  %1546 = vmatpush.bf16.msrb.mxu1 %v4527_v56  ;;  %v4860_v47 = vld [vmem:[%s9580_s1 + $0x538] sm:$0xf0]  ;;  %v4975_v56 = vor.u32 %v6277_v32, %v4972_v44 }
  0xb3   :  { %1571 = vmatpush.bf16.msra.mxu2 %v4799_v51  ;;  %v1281_v48 = vpop.f32.mrf.mxu2  ;;  %v4716_v51 = vld [vmem:[%s9580_s1 + $0x418] sm:$0xf0]  ;;  %v4863_v60 = vor.u32 %v6249_v46, %v4860_v47  ;;  %v1293_v17 = vadd.f32 %v7820_v22, %v1280_v12  ;;  %v6310_v12 = vld [vmem:[%s9583_s3 + $0xf0] sm:$0xff] }
  0xb4   :  { %1559 = vmatpush.bf16.msrb.mxu3 %v4655_v61  ;;  %v1294_v57 = vpop.f32.mrf.mxu3  ;;  %v4719_v61 = vor.u32 %v6213_v50, %v4716_v51  ;;  %v6283_v18 = vld [vmem:[%s9583_s3 + $0x18] sm:$0xff]  ;;  %v6302_v50 = vld [vmem:[%s9583_s3 + $0xb0] sm:$0xff] }
  0xb5   :  { %v6303_v47 = vld [vmem:[%s9583_s3 + $0xb8] sm:$0xff] }
  0xb6   :  { %1584 = vmatpush.bf16.msrb.mxu0 %v4927_v0  ;;  %1547 = vmatpush.bf16.msrb.mxu1 %v4511_v8  ;;  %v6295_v0 = vld [vmem:[%s9583_s3 + $0x78] sm:$0xff] }
  0xb7   :  { %1572 = vmatpush.bf16.msra.mxu2 %v4783_v5  ;;  %v6585_v5 = vld [vmem:[#allocation1 + $0x12] sm:$0xff] }
  0xb8   :  { %1560 = vmatpush.bf16.msrb.mxu3 %v4639_v10  ;;  %v6285_v10 = vld [vmem:[%s9583_s3 + $0x28] sm:$0xff]  ;;  %v6299_v1 = vld [vmem:[%s9583_s3 + $0x98] sm:$0xff] }
  0xba   :  { %1585 = vmatpush.bf16.msrb.mxu0 %v4911_v13  ;;  %1548 = vmatpush.bf16.msrb.mxu1 %v4495_v19  ;;  %v6588_v13 = vld [vmem:[#allocation1 + $0x2d] sm:$0xff] }
  0xbb   :  { %1573 = vmatpush.bf16.msra.mxu2 %v4767_v16  ;;  %v1331_v8 = vpop.f32.mrf.mxu2 }
  0xbc   :  { %1561 = vmatpush.bf16.msrb.mxu3 %v4623_v21 }
  0xbe   :  { %1586 = vmatpush.bf16.msrb.mxu0 %v4895_v59  ;;  %1549 = vmatpush.bf16.msrb.mxu1 %v4479_v34 }
  0xbf   :  { %1574 = vmatpush.bf16.msra.mxu2 %v4751_v29 }
  0xc0   :  { %1562 = vmatpush.bf16.msrb.mxu3 %v4607_v37 }
  0xc2   :  { %1587 = vmatpush.bf16.msrb.mxu0 %v4879_v27  ;;  %1550 = vmatpush.bf16.msrb.mxu1 %v4463_v49  ;;  %v1305_v4 = vpop.f32.mrf.mxu0  ;;  %v1318_v15 = vpop.f32.mrf.mxu1 }
  0xc3   :  { %1575 = vmatpush.bf16.msra.mxu2 %v4735_v45  ;;  %v1333_v16 = vpop.f32.mrf.mxu2  ;;  %v1306_v19 = vadd.f32 %v1305_v4, %v1293_v17  ;;  %v6309_v17 = vld [vmem:[%s9583_s3 + $0xe8] sm:$0xff] }
  0xc4   :  { %1563 = vmatpush.bf16.msrb.mxu3 %v4591_v55  ;;  %v6301_v55 = vld [vmem:[%s9583_s3 + $0xa8] sm:$0xff] }
  0xc5   :  { %1551 = vmatmul.bf16.vlgmr.msrb.gmra.mxu1 %v6585_v5  ;;  %v1319_v21 = vadd.f32 %v1318_v15, %v1306_v19 }
  0xc6   :  { %1602 = vmatpush.bf16.msra.mxu1 %v4975_v56  ;;  %1588 = vmatpush.bf16.msrb.mxu0 %v4863_v60 }
  0xc7   :  { %1576 = vmatpush.bf16.msra.mxu2 %v4719_v61  ;;  %1564 = vmatmul.bf16.vlgmr.msrb.gmra.mxu3 %v6586_v7  ;;  %v1332_v29 = vadd.f32 %v1331_v8, %v1319_v21  ;;  %v6300_v61 = vld [vmem:[%s9583_s3 + $0xa0] sm:$0xff]  ;;  %v6297_v7 = vld [vmem:[%s9583_s3 + $0x88] sm:$0xff] }
  0xc8   :  { %1876 = vmatpush.bf16.msra.mxu3 %v6287_v58 }
  0xc9   :  { %v1608_v34 = vmax.f32 %v1332_v29, 0.0 }
  0xca   :  { %1889 = vmatpush.bf16.msrb.mxu1 %v6295_v0  ;;  %1577 = vmatmul.bf16.vlgmr.msra.gmra.mxu2 %v6587_v41  ;;  %v1307_v22 = vpop.f32.mrf.mxu0  ;;  %v1344_v24 = vpop.f32.mrf.mxu3 }
  0xcb   :  { %1589 = vmatpush.bf16.msrb.mxu0 %v4847_v6  ;;  %v1320_v59 = vpop.f32.mrf.mxu1  ;;  %v1612_v39 = vpack.c.bf16 %v1608_v34, %v1608_v34  ;;  %v1345_v40 = vadd.f32 %v1344_v24, %v239_v38  ;;  %1902 = vmatpush.bf16.msrb.mxu2 %v6303_v47  ;;  %v6306_v34 = vld [vmem:[%s9583_s3 + $0xd0] sm:$0xff] }
  0xcc   :  { %1877 = vmatpush.bf16.msra.mxu3 %v6286_v2  ;;  %v6298_v2 = vld [vmem:[%s9583_s3 + $0x90] sm:$0xff]  ;;  %v6307_v59 = vld [vmem:[%s9583_s3 + $0xd8] sm:$0xff] }
  0xce   :  { %1890 = vmatpush.bf16.msrb.mxu1 %v6294_v3  ;;  %1590 = vmatmul.bf16.vlgmr.msrb.gmra.mxu0 %v6588_v13  ;;  %v6296_v3 = vld [vmem:[%s9583_s3 + $0x80] sm:$0xff] }
  0xcf   :  { %v1357_v26 = vpop.f32.mrf.mxu2  ;;  %1903 = vmatpush.bf16.msrb.mxu2 %v6302_v50 }
  0xd0   :  { %1878 = vmatpush.bf16.msra.mxu3 %v6285_v10  ;;  %v1358_v27 = vadd.f32 %v1357_v26, %v1345_v40  ;;  %v6305_v40 = vld [vmem:[%s9583_s3 + $0xc8] sm:$0xff] }
  0xd2   :  { %1891 = vmatpush.bf16.msrb.mxu1 %v6293_v11  ;;  %v1346_v35 = vpop.f32.mrf.mxu3  ;;  %v6311_v11 = vld [vmem:[%s9583_s3 + $0xf8] sm:$0xff] }
  0xd3   :  { %1904 = vmatpush.bf16.msrb.mxu2 %v6301_v55  ;;  %1915 = vmatpush.bf16.msra.mxu0 %v6311_v11 }
  0xd4   :  { %1879 = vmatpush.bf16.msra.mxu3 %v6284_v14  ;;  %v240_v14 = vperm.slane %v7843_v33, 2 }
  0xd5   :  { %4979 = vmatmul.msk.bf16.vlgmr.msra.gmra.mxu1 %vm1241_vm0, %v6589_v23 }
  0xd6   :  { %1892 = vmatpush.bf16.msrb.mxu1 %v6292_v52 }
  0xd7   :  { %v1359_v37 = vpop.f32.mrf.mxu2  ;;  %1905 = vmatpush.bf16.msrb.mxu2 %v6300_v61  ;;  %1916 = vmatpush.bf16.msra.mxu0 %v6310_v12 }
  0xd8   :  { %1880 = vmatpush.bf16.msra.mxu3 %v6283_v18  ;;  %v1928_v18 = vld [vmem:[%s9585_s5] sm:$0xff] }
  0xd9   :  { %v1930_v19 = vmul.f32 %v1928_v18, %v1928_v18 }
  0xda   :  { %1893 = vmatpush.bf16.msrb.mxu1 %v6291_v54 }
  0xdb   :  { %1906 = vmatpush.bf16.msrb.mxu2 %v6299_v1  ;;  %1917 = vmatpush.bf16.msra.mxu0 %v6309_v17  ;;  %v1933_v21 = vsel %vm1932_vm1, %v1930_v19, 0.0 }
  0xdc   :  { %1881 = vmatpush.bf16.msra.mxu3 %v6282_v20  ;;  %v6308_v20 = vld [vmem:[%s9583_s3 + $0xe0] sm:$0xff]  ;;  %1934 = vadd.xlane.f32.xlu0 %v1933_v21  ;;  %v2003_v21 = vlaneseq }
  0xde   :  { %1894 = vmatpush.bf16.msrb.mxu1 %v6290_v25  ;;  %v1929_v25 = vld [vmem:[%s9585_s5 + $0x8] sm:$0xff] }
  0xdf   :  { %1907 = vmatpush.bf16.msrb.mxu2 %v6298_v2  ;;  %1918 = vmatpush.bf16.msra.mxu0 %v6308_v20  ;;  %v1931_v26 = vmul.f32 %v1929_v25, %v1929_v25 }
  0xe0   :  { %1882 = vmatpush.bf16.msra.mxu3 %v6281_v28 }
  0xe2   :  { %1895 = vmatpush.bf16.msrb.mxu1 %v6289_v30  ;;  %v1370_v42 = vpop.f32.mrf.mxu0  ;;  %v1383_v32 = vpop.f32.mrf.mxu1 }
  0xe3   :  { %v1371_v43 = vadd.f32 %v1370_v42, %v1358_v27  ;;  %1908 = vmatpush.bf16.msrb.mxu2 %v6297_v7  ;;  %1919 = vmatpush.bf16.msra.mxu0 %v6307_v59  ;;  %v6554_v7 = vld [vmem:[%s9584_s4] ss:$0 sm:$0xff]  ;;  %s6591_s4 = smov 64  }
  0xe4   :  { %1883 = vmatpush.bf16.msra.mxu3 %v6280_v31  ;;  %v1936_v31 = vsel %vm1932_vm1, %v1931_v26, 0.0 }
  0xe5   :  { %v1384_v44 = vadd.f32 %v1383_v32, %v1371_v43  ;;  %1937 = vadd.xlane.f32.xlu0 %v1936_v31  ;;  %v6304_v32 = vld [vmem:[%s9583_s3 + $0xc0] sm:$0xff] }
  0xe6   :  { %1896 = vmatpush.bf16.msrb.mxu1 %v6288_v36 }
  0xe7   :  { %1884 = vmatmul.bf16.vlgmr.msra.gmra.mxu3 %v1612_v39  ;;  %1909 = vmatpush.bf16.msrb.mxu2 %v6296_v3 }
  0xe8   :  { %5108 = vmatpush.xpose.msk.msrb.mxu3 %vm1932_vm1, %v1929_v25  ;;  %1920 = vmatpush.bf16.msra.mxu0 %v6306_v34  ;;  %v5163_v34 = vld [vmem:[%s9587_s6 + $0x60] sm:$0xf] }
  0xea   :  { %v1372_v45 = vpop.f32.mrf.mxu0  ;;  %v1396_v46 = vpop.f32.mrf.mxu3 }
  0xeb   :  { %v1397_v48 = vadd.f32 %v1396_v46, %v1384_v44  ;;  %v1385_v51 = vpop.f32.mrf.mxu1  ;;  %v241_v45 = vperm.slane %v7843_v33, 3 }
  0xec   :  { %5109 = vmatpush.xpose.msk.msrb.mxu3 %vm1932_vm1, %v1928_v18  ;;  %1921 = vmatpush.bf16.msra.mxu0 %v6305_v40  ;;  %v6327_v40 = vld [vmem:[%s9587_s6 + $0x74] sm:$0xf0] }
  0xef   :  { %v1409_v49 = vpop.f32.mrf.mxu2 }
  0xf0   :  { %v1410_v53 = vadd.f32 %v1409_v49, %v1397_v48  ;;  %2046 = vmatpush.msra.mxu3 %v1929_v25  ;;  %1922 = vmatpush.bf16.msra.mxu0 %v6304_v32  ;;  %v5173_v32 = vld [vmem:[%s9587_s6 + $0x78] sm:$0xf0] }
  0xf2   :  { %v1422_v56 = vpop.f32.mrf.mxu0  ;;  %v1398_v57 = vpop.f32.mrf.mxu3  ;;  %2047 = vmatpush.msra.mxu3 %v1928_v18 }
  0xf3   :  { %v1423_v58 = vadd.f32 %v1422_v56, %v1410_v53 }
  0xf5   :  { %v1609_v62 = vmax.f32 %v1423_v58, 0.0 }
  0xf7   :  { %v1411_v60 = vpop.f32.mrf.mxu2  ;;  %v1613_v63 = vpack.c.bf16 %v1609_v62, %v1609_v62 }
  0xf9   :  { %1897 = vmatmul.bf16.vlgmr.msrb.gmra.mxu1 %v1613_v63 }
  0xfa   :  { %v1424_v0 = vpop.f32.mrf.mxu0 }
 0x102   :  { %v1435_v6 = vpop.f32.mrf.mxu1 }
 0x103   :  { %v1436_v16 = vadd.f32 %v1435_v6, %v240_v14 }
 0x106   :  { %v1461_v5 = vpop.f32.mrf.mxu0 }
 0x10a   :  { %v1448_v8 = vpop.f32.mrf.mxu3  ;;  %v1437_v10 = vpop.f32.mrf.mxu1 }
 0x10b   :  { %v1449_v52 = vadd.f32 %v1448_v8, %v1436_v16 }
 0x10d   :  { %v1462_v23 = vadd.f32 %v1461_v5, %v1449_v52 }
 0x10e   :  { %v1463_v9 = vpop.f32.mrf.mxu0 }
 0x10f   :  { %v1474_v41 = vpop.f32.mrf.mxu2 }
 0x110   :  { %v1475_v24 = vadd.f32 %v1474_v41, %v1462_v23  ;;  %v8009_v23 = vand.u32 127, %v2003_v21  ;;  %v5125_v21 = vld [vmem:[%s9587_s6 + $0x18] sm:$0xf0] }
 0x112   :  { %v1450_v13 = vpop.f32.mrf.mxu3 }
 0x116   :  { %v1513_v4 = vpop.f32.mrf.mxu0 }
 0x117   :  { %v1476_v15 = vpop.f32.mrf.mxu2 }
 0x11e   :  { %v1515_v54 = vpop.f32.mrf.mxu0 }
 0x122   :  { %v1487_v22 = vpop.f32.mrf.mxu1 }
 0x123   :  { %v1488_v28 = vadd.f32 %v1487_v22, %v1475_v24 }
 0x12a   :  { %v1539_v29 = vpop.f32.mrf.mxu0  ;;  %v1500_v30 = vpop.f32.mrf.mxu3 }
 0x12b   :  { %v1501_v35 = vadd.f32 %v1500_v30, %v1488_v28  ;;  %v1489_v36 = vpop.f32.mrf.mxu1 }
 0x12c   :  { %v6324_v36 = vld [vmem:[%s9587_s6 + $0x64] sm:$0xf] }
 0x12d   :  { %v1514_v37 = vadd.f32 %v1513_v4, %v1501_v35  ;;  %v6326_v35 = vld [vmem:[%s9587_s6 + $0x6c] sm:$0xf0] }
 0x12f   :  { %v1526_v38 = vpop.f32.mrf.mxu2  ;;  %v1610_v39 = vmax.f32 %v1514_v37, 0.0  ;;  %v5164_v37 = vor.u32 %v6326_v35, %v5163_v34  ;;  %v6541_v34 = vld [vmem:[%s9589_s8 + $0x6a8] sm:$0xf0]  ;;  %v5603_v35 = vld [vmem:[%s9589_s8 + $0x348] sm:$0xf] }
 0x130   :  { %v1527_v46 = vadd.f32 %v1526_v38, %v241_v45  ;;  %v5165_v38 = vld [vmem:[%s9587_s6 + $0x70] sm:$0xf0] }
 0x131   :  { %v1614_v27 = vpack.c.bf16 %v1610_v39, %v1610_v39  ;;  %v5171_v39 = vld [vmem:[%s9587_s6 + $0x68] sm:$0xf]  ;;  %2175 = vmatpush.bf16.msra.mxu1 %v5164_v37  ;;  %v6436_v37 = vld [vmem:[%s9589_s8 + $0x360] sm:$0xf0] }
 0x132   :  { %v1541_v42 = vpop.f32.mrf.mxu0  ;;  %v1502_v43 = vpop.f32.mrf.mxu3  ;;  %v1540_v48 = vadd.f32 %v1539_v29, %v1527_v46  ;;  %v6322_v46 = vld [vmem:[%s9587_s6 + $0x4c] sm:$0xf0] }
 0x133   :  { %1910 = vmatmul.bf16.vlgmr.msrb.gmra.mxu2 %v1614_v27  ;;  %v5168_v27 = vor.u32 %v6324_v36, %v5165_v38  ;;  %v5172_v42 = vor.u32 %v6327_v40, %v5171_v39  ;;  %v6325_v43 = vld [vmem:[%s9587_s6 + $0x6c] sm:$0xf]  ;;  %v5827_v38 = vld [vmem:[%s9589_s8 + $0x508] sm:$0xf]  ;;  %v6492_v39 = vld [vmem:[%s9589_s8 + $0x520] sm:$0xf0] }
 0x134   :  { %v5176_v45 = vor.u32 %v6325_v43, %v5173_v32  ;;  %v5323_v43 = vld [vmem:[%s9589_s8 + $0x118] sm:$0xf]  ;;  %v6366_v32 = vld [vmem:[%s9589_s8 + $0x130] sm:$0xf0] }
 0x135   :  { %2188 = vmatpush.bf16.msra.mxu2 %v5168_v27  ;;  %v5604_v27 = vor.u32 %v6436_v37, %v5603_v35  ;;  %v5435_v37 = vld [vmem:[%s9589_s8 + $0x1f8] sm:$0xf] }
 0x136   :  { %2214 = vmatpush.bf16.msrb.mxu0 %v5176_v45  ;;  %v6534_v45 = vld [vmem:[%s9589_s8 + $0x670] sm:$0xf0] }
 0x137   :  { %v1528_v44 = vpop.f32.mrf.mxu2 }
 0x138   :  { %v5147_v44 = vld [vmem:[%s9587_s6 + $0x40] sm:$0xf] }
 0x142   :  { %v1552_v47 = vpop.f32.mrf.mxu1 }
 0x143   :  { %v1553_v49 = vadd.f32 %v1552_v47, %v1540_v48  ;;  %v6320_v47 = vld [vmem:[%s9587_s6 + $0x44] sm:$0xf]  ;;  %v5149_v48 = vld [vmem:[%s9587_s6 + $0x50] sm:$0xf0] }
 0x14a   :  { %v1565_v50 = vpop.f32.mrf.mxu3  ;;  %v1554_v55 = vpop.f32.mrf.mxu1 }
 0x14b   :  { %v1591_v51 = vpop.f32.mrf.mxu0  ;;  %v1566_v53 = vadd.f32 %v1565_v50, %v1553_v49  ;;  %v5148_v49 = vor.u32 %v6322_v46, %v5147_v44  ;;  %v5152_v50 = vor.u32 %v6320_v47, %v5149_v48  ;;  %v6321_v55 = vld [vmem:[%s9587_s6 + $0x4c] sm:$0xf]  ;;  %v5995_v44 = vld [vmem:[%s9589_s8 + $0x658] sm:$0xf]  ;;  %v5575_v46 = vld [vmem:[%s9589_s8 + $0x310] sm:$0xf] }
 0x14c   :  { %v6429_v47 = vld [vmem:[%s9589_s8 + $0x328] sm:$0xf0] }
 0x14d   :  { %v1578_v56 = vpop.f32.mrf.mxu2  ;;  %2176 = vmatpush.bf16.msra.mxu1 %v5148_v49  ;;  %2189 = vmatpush.bf16.msra.mxu2 %v5152_v50  ;;  %v5576_v48 = vor.u32 %v6429_v47, %v5575_v46  ;;  %v5799_v49 = vld [vmem:[%s9589_s8 + $0x4d0] sm:$0xf]  ;;  %v6485_v50 = vld [vmem:[%s9589_s8 + $0x4e8] sm:$0xf0]  ;;  %v5381_v47 = vld [vmem:[%s9589_s8 + $0x1a4] sm:$0xf0] }
 0x14e   :  { %v1579_v57 = vadd.f32 %v1578_v56, %v1566_v53  ;;  %v6323_v53 = vld [vmem:[%s9587_s6 + $0x54] sm:$0xf0]  ;;  %v6377_v46 = vld [vmem:[%s9589_s8 + $0x18c] sm:$0xf] }
 0x14f   :  { %v1935_v10 = vpop.xlane.xlu0 %1934 }
 0x150   :  { %v1592_v61 = vadd.f32 %v1591_v51, %v1579_v57  ;;  %1968 = vxpose.xlu1.b32.start [1/2] (short) (narrow) %v1935_v10, 8  ;;  %v5155_v51 = vld [vmem:[%s9587_s6 + $0x48] sm:$0xf]  ;;  %v5157_v57 = vld [vmem:[%s9587_s6 + $0x58] sm:$0xf0] }
 0x151   :  { %v5156_v56 = vor.u32 %v6323_v53, %v5155_v51  ;;  %v5324_v51 = vor.u32 %v6366_v32, %v5323_v43  ;;  %v5800_v53 = vor.u32 %v6485_v50, %v5799_v49  ;;  %v5183_v43 = vld [vmem:[%s9589_s8] sm:$0xf]  ;;  %v6331_v32 = vld [vmem:[%s9589_s8 + $0x18] sm:$0xf0] }
 0x152   :  { %v1567_v58 = vpop.f32.mrf.mxu3  ;;  %v1604_v62 = vpop.f32.mrf.mxu1 }
 0x153   :  { %v1593_v60 = vpop.f32.mrf.mxu0  ;;  %v1605_v63 = vadd.f32 %v1604_v62, %v1592_v61  ;;  %v5131_v58 = vld [vmem:[%s9587_s6 + $0x20] sm:$0xf]  ;;  %v5160_v61 = vor.u32 %v6321_v55, %v5157_v57  ;;  %v6316_v62 = vld [vmem:[%s9587_s6 + $0x24] sm:$0xf]  ;;  %v5996_v57 = vor.u32 %v6534_v45, %v5995_v44  ;;  %v6499_v45 = vld [vmem:[%s9589_s8 + $0x558] sm:$0xf0] }
 0x154   :  { %v6318_v60 = vld [vmem:[%s9587_s6 + $0x2c] sm:$0xf0]  ;;  %v5295_v55 = vld [vmem:[%s9589_s8 + $0xe0] sm:$0xf] }
 0x155   :  { %v1580_v0 = vpop.f32.mrf.mxu2  ;;  %v1611_v1 = vmax.f32 %v1605_v63, 0.0  ;;  %v5133_v63 = vld [vmem:[%s9587_s6 + $0x30] sm:$0xf0]  ;;  %2215 = vmatpush.bf16.msrb.mxu0 %v5160_v61  ;;  %v5771_v61 = vld [vmem:[%s9589_s8 + $0x498] sm:$0xf] }
 0x156   :  { %v5139_v0 = vld [vmem:[%s9587_s6 + $0x28] sm:$0xf]  ;;  %v5855_v44 = vld [vmem:[%s9589_s8 + $0x540] sm:$0xf] }
 0x157   :  { %v1615_v2 = vpack.c.bf16 %v1611_v1, %v1611_v1  ;;  %v5132_v1 = vor.u32 %v6318_v60, %v5131_v58  ;;  %v5547_v58 = vld [vmem:[%s9589_s8 + $0x2d8] sm:$0xf]  ;;  %v6422_v60 = vld [vmem:[%s9589_s8 + $0x2f0] sm:$0xf0] }
 0x158   :  { %v1938_v11 = vpop.xlane.xlu0 %1937 }
 0x159   :  { %1923 = vmatmul.bf16.vlgmr.msra.gmra.mxu0 %v1615_v2  ;;  %1969 = vxpose.xlu1.b32.end [2/2] (short) (narrow) %v1938_v11, 8  ;;  %v6319_v2 = vld [vmem:[%s9587_s6 + $0x34] sm:$0xf0] }
 0x15a   :  { %v1606_v33 = vpop.f32.mrf.mxu1  ;;  %2177 = vmatpush.bf16.msra.mxu1 %v5132_v1  ;;  %v5548_v1 = vor.u32 %v6422_v60, %v5547_v58  ;;  %v6443_v58 = vld [vmem:[%s9589_s8 + $0x398] sm:$0xf0]  ;;  %v6433_v60 = vld [vmem:[%s9589_s8 + $0x34c] sm:$0xf] }
 0x15b   :  { %v6317_v33 = vld [vmem:[%s9587_s6 + $0x2c] sm:$0xf] }
 0x16a   :  { %v1885_v5 = vpop.f32.mrf.mxu3 }
 0x16b   :  { %v1886_v8 = vadd.f32 %v6554_v7, %v1885_v5  ;;  %v5141_v5 = vld [vmem:[%s9587_s6 + $0x38] sm:$0xf0]  ;;  %v5140_v7 = vor.u32 %v6319_v2, %v5139_v0  ;;  %v6478_v0 = vld [vmem:[%s9589_s8 + $0x4b0] sm:$0xf0] }
 0x16c   :  { %v5772_v2 = vor.u32 %v6478_v0, %v5771_v61  ;;  %v5605_v0 = vld [vmem:[%s9589_s8 + $0x364] sm:$0xf0] }
 0x172   :  { %v1887_v6 = vpop.f32.mrf.mxu3 }
 0x173   :  { %v5136_v6 = vor.u32 %v6316_v62, %v5133_v63  ;;  %v5967_v62 = vld [vmem:[%s9589_s8 + $0x620] sm:$0xf]  ;;  %v6527_v63 = vld [vmem:[%s9589_s8 + $0x638] sm:$0xf0] }
 0x175   :  { %2190 = vmatpush.bf16.msra.mxu2 %v5136_v6  ;;  %v6415_v6 = vld [vmem:[%s9589_s8 + $0x2b8] sm:$0xf0] }
 0x176   :  { %v1898_v3 = vpop.f32.mrf.mxu1 }
 0x177   :  { %v1899_v9 = vadd.f32 %v1898_v3, %v1886_v8  ;;  %v5144_v8 = vor.u32 %v6317_v33, %v5141_v5  ;;  %v5519_v33 = vld [vmem:[%s9589_s8 + $0x2a0] sm:$0xf] }
 0x179   :  { %2216 = vmatpush.bf16.msrb.mxu0 %v5144_v8  ;;  %v6471_v8 = vld [vmem:[%s9589_s8 + $0x478] sm:$0xf0] }
 0x17e   :  { %v1900_v41 = vpop.f32.mrf.mxu1 }
 0x1b6   :  { %v1911_v12 = vpop.f32.mrf.mxu2 }
 0x1b7   :  { %v1912_v14 = vadd.f32 %v1911_v12, %v1899_v9  ;;  %v6590_v12 = vmov 0.0  }
 0x1be   :  { %v1913_v13 = vpop.f32.mrf.mxu2 }
 0x1d6   :  { %v1924_v4 = vpop.f32.mrf.mxu0 }
 0x1d7   :  { %v1925_v15 = vadd.f32 %v1924_v4, %v1912_v14  ;;  %v5115_v14 = vld [vmem:[%s9587_s6] sm:$0xf]  ;;  %v6314_v4 = vld [vmem:[%s9587_s6 + $0xc] sm:$0xf0] }
 0x1d9   :  { %2053 = vst.msk [vmem:[%s9586_s11] sm:$0x3] %vm2052_vm2, %v1925_v15  ;;  %5110 = vmatmul.msk.f32.vlgmr.msrb.gmra.mxu3 %vm1932_vm1, %v1925_v15  ;;  %v6312_v15 = vld [vmem:[%s9587_s6 + $0x4] sm:$0xf] }
 0x1da   :  { %2201 = vmatpush.bf16.msrb.mxu3 %v5172_v42  ;;  %v5828_v42 = vor.u32 %v6492_v39, %v5827_v38  ;;  %v6394_v39 = vld [vmem:[%s9589_s8 + $0x210] sm:$0xf0] }
 0x1db   :  { %v5436_v49 = vor.u32 %v6394_v39, %v5435_v37  ;;  %v6517_v39 = vld [vmem:[%s9589_s8 + $0x5ec] sm:$0xf] }
 0x1de   :  { %v1926_v16 = vpop.f32.mrf.mxu0  ;;  %2202 = vmatpush.bf16.msrb.mxu3 %v5156_v56  ;;  %v6359_v56 = vld [vmem:[%s9589_s8 + $0xf8] sm:$0xf0] }
 0x1df   :  { %v5116_v16 = vor.u32 %v6314_v4, %v5115_v14  ;;  %v5296_v5 = vor.u32 %v6359_v56, %v5295_v55  ;;  %v5491_v14 = vld [vmem:[%s9589_s8 + $0x268] sm:$0xf]  ;;  %v6387_v55 = vld [vmem:[%s9589_s8 + $0x1d8] sm:$0xf0] }
 0x1e1   :  { %2178 = vmatpush.bf16.msra.mxu1 %v5116_v16  ;;  %v5715_v16 = vld [vmem:[%s9589_s8 + $0x428] sm:$0xf] }
 0x1e2   :  { %2203 = vmatpush.bf16.msrb.mxu3 %v5140_v7  ;;  %v5743_v7 = vld [vmem:[%s9589_s8 + $0x460] sm:$0xf] }
 0x1f5   :  { %v1984_v52 = vpop.trf.xlu1 }
 0x1f6   :  { %v2001_v17 = vperm.slane %v1984_v52, 0  ;;  %v5117_v52 = vld [vmem:[%s9587_s6 + $0x10] sm:$0xf0] }
 0x25c   :  { %v1965_v18 = vpop.f32.mrf.mxu3 }
 0x25d   :  { %v2000_v19 = vmul.f32 2.0, %v1965_v18  ;;  %v6315_v18 = vld [vmem:[%s9587_s6 + $0x14] sm:$0xf0] }
 0x25f   :  { %v2002_v54 = vsub.f32 %v2001_v17, %v2000_v19  ;;  %v5123_v17 = vld [vmem:[%s9587_s6 + $0x8] sm:$0xf]  ;;  %v5120_v19 = vor.u32 %v6312_v15, %v5117_v52  ;;  %v6408_v15 = vld [vmem:[%s9589_s8 + $0x280] sm:$0xf0] }
 0x260   :  { %v6464_v52 = vld [vmem:[%s9589_s8 + $0x440] sm:$0xf0] }
 0x261   :  { %v2006_v20 = vsel %vm2005_vm3, %v2002_v54, inf  ;;  %2191 = vmatpush.bf16.msra.mxu2 %v5120_v19  ;;  %v6345_v19 = vld [vmem:[%s9589_s8 + $0x88] sm:$0xf0] }
 0x262   :  { %2007 = vmin.xlane.f32.xlu2 %v2006_v20  ;;  %v6313_v20 = vld [vmem:[%s9587_s6 + $0xc] sm:$0xf] }
 0x265   :  { %3668 = vmatpush.bf16.msrb.mxu2 %v5604_v27  ;;  %v6450_v27 = vld [vmem:[%s9589_s8 + $0x3d0] sm:$0xf0] }
 0x269   :  { %3669 = vmatpush.bf16.msrb.mxu2 %v5576_v48  ;;  %v6545_v48 = vld [vmem:[%s9589_s8 + $0x6cc] sm:$0xf] }
 0x26d   :  { %3670 = vmatpush.bf16.msrb.mxu2 %v5548_v1  ;;  %v6489_v1 = vld [vmem:[%s9589_s8 + $0x50c] sm:$0xf] }
 0x2d5   :  { %v2008_v22 = vpop.xlane.xlu2 %2007 }
 0x2d6   :  { %vm2009_vm4 = vcmp.le.f32.partialorder %v2002_v54, %v2008_v22  ;;  %v5124_v54 = vor.u32 %v6315_v18, %v5123_v17  ;;  %v5379_v22 = vld [vmem:[%s9589_s8 + $0x188] sm:$0xf]  ;;  %v5239_v18 = vld [vmem:[%s9589_s8 + $0x70] sm:$0xf] }
 0x2d7   :  { %v2010_v24 = vsel %vm2009_vm4, %v8009_v23, 16 }
 0x2d8   :  { %v2011_v59 = vsel %vm2005_vm3, %v2010_v24, 2147483647  ;;  %2204 = vmatpush.bf16.msrb.mxu3 %v5124_v54  ;;  %v6380_v24 = vld [vmem:[%s9589_s8 + $0x1a0] sm:$0xf0]  ;;  %v5911_v54 = vld [vmem:[%s9589_s8 + $0x5b0] sm:$0xf] }
 0x2d9   :  { %v2013_v25 = vshra.s32 %v2011_v59, 16  ;;  %v2012_v28 = vand.u32 65535, %v2011_v59  ;;  %v6051_v59 = vld [vmem:[%s9589_s8 + $0x6c8] sm:$0xf] }
 0x2db   :  { %v2015_v26 = vcvt.s32.f32 %v2013_v25  ;;  %v2014_v30 = vcvt.s32.f32 %v2012_v28  ;;  %v5380_v25 = vor.u32 %v6380_v24, %v5379_v22  ;;  %v5351_v28 = vld [vmem:[%s9589_s8 + $0x150] sm:$0xf]  ;;  %v5240_v24 = vor.u32 %v6345_v19, %v5239_v18  ;;  %v6426_v18 = vld [vmem:[%s9589_s8 + $0x314] sm:$0xf] }
 0x2dc   :  { %v5463_v22 = vld [vmem:[%s9589_s8 + $0x230] sm:$0xf] }
 0x2dd   :  { %2016 = vmin.xlane.f32.xlu2 %v2015_v26  ;;  %3655 = vmatpush.bf16.msrb.mxu1 %v5380_v25  ;;  %v5687_v25 = vld [vmem:[%s9589_s8 + $0x3f0] sm:$0xf] }
 0x2de   :  { %v5577_v19 = vld [vmem:[%s9589_s8 + $0x32c] sm:$0xf0] }
 0x350   :  { %v2017_v29 = vpop.xlane.xlu2 %2016 }
 0x351   :  { %vm2018_vm5 = vcmp.eq.f32.partialorder %v2015_v26, %v2017_v29  ;;  %v2023_v3 = vcvt.f32.s32 %v2017_v29  ;;  %v6548_v26 = vld [vmem:[%s9589_s8 + $0x6e0] sm:$0xf0]  ;;  %v6373_v29 = vld [vmem:[%s9589_s8 + $0x168] sm:$0xf0] }
 0x352   :  { %v2019_v31 = vsel %vm2018_vm5, %v2014_v30, inf  ;;  %v6052_v30 = vor.u32 %v6548_v26, %v6051_v59  ;;  %v5352_v36 = vor.u32 %v6373_v29, %v5351_v28  ;;  %v6401_v59 = vld [vmem:[%s9589_s8 + $0x248] sm:$0xf0]  ;;  %v5211_v29 = vld [vmem:[%s9589_s8 + $0x38] sm:$0xf]  ;;  %vm4164_vm5 = vcmask 1041408  }
 0x353   :  { %2020 = vmin.xlane.f32.xlu0 %v2019_v31  ;;  %v2024_v41 = vshll.u32 %v2023_v3, 16  ;;  %v6023_v31 = vld [vmem:[%s9589_s8 + $0x690] sm:$0xf]  ;;  %v5968_v3 = vor.u32 %v6527_v63, %v5967_v62  ;;  %v6457_v26 = vld [vmem:[%s9589_s8 + $0x408] sm:$0xf0]  ;;  %v5464_v35 = vor.u32 %v6401_v59, %v5463_v22  ;;  %v5184_v62 = vor.u32 %v6331_v32, %v5183_v43 }
 0x354   :  { %v6024_v40 = vor.u32 %v6541_v34, %v6023_v31  ;;  %3656 = vmatpush.bf16.msrb.mxu1 %v5352_v36  ;;  %v5883_v31 = vld [vmem:[%s9589_s8 + $0x578] sm:$0xf]  ;;  %v6506_v34 = vld [vmem:[%s9589_s8 + $0x590] sm:$0xf0]  ;;  %v5688_v36 = vor.u32 %v6457_v26, %v5687_v25  ;;  %v5856_v63 = vor.u32 %v6499_v45, %v5855_v44  ;;  %v6356_v22 = vld [vmem:[%s9589_s8 + $0xe4] sm:$0xf] }
 0x355   :  { %v6524_v59 = vld [vmem:[%s9589_s8 + $0x624] sm:$0xf]  ;;  %v5969_v26 = vld [vmem:[%s9589_s8 + $0x63c] sm:$0xf0] }
 0x356   :  { %v6412_v43 = vld [vmem:[%s9589_s8 + $0x2a4] sm:$0xf]  ;;  %v5521_v32 = vld [vmem:[%s9589_s8 + $0x2bc] sm:$0xf0] }
 0x357   :  { %v6468_v44 = vld [vmem:[%s9589_s8 + $0x464] sm:$0xf]  ;;  %v5524_v45 = vor.u32 %v6412_v43, %v5521_v32 }
 0x358   :  { %3657 = vmatpush.bf16.msrb.mxu1 %v5324_v51  ;;  %v6053_v51 = vld [vmem:[%s9589_s8 + $0x6e4] sm:$0xf0] }
 0x35c   :  { %3658 = vmatpush.bf16.msrb.mxu1 %v5296_v5  ;;  %v6056_v5 = vor.u32 %v6545_v48, %v6053_v51  ;;  %v5241_v48 = vld [vmem:[%s9589_s8 + $0x8c] sm:$0xf0] }
 0x35d   :  { %v5913_v51 = vld [vmem:[%s9589_s8 + $0x5cc] sm:$0xf0] }
 0x3c6   :  { %v2021_v9 = vpop.xlane.xlu0 %2020 }
 0x3c7   :  { %v2022_v10 = vcvt.f32.s32 %v2021_v9  ;;  %v5267_v9 = vld [vmem:[%s9589_s8 + $0xa8] sm:$0xf] }
 0x3c9   :  { %v2025_v11 = vadd.s32 %v2024_v41, %v2022_v10  ;;  %v6352_v41 = vld [vmem:[%s9589_s8 + $0xc0] sm:$0xf0]  ;;  %v5939_v10 = vld [vmem:[%s9589_s8 + $0x5e8] sm:$0xf] }
 0x3ca   :  { %v5268_v4 = vor.u32 %v6352_v41, %v5267_v9 }
 0x3cb   :  { %vm2026_vm6 = vcmp.eq.s32.totalorder %v8009_v23, %v2025_v11  ;;  %2060 = vst [vmem:[%s9588_s12] sm:$0x3] %v2025_v11  ;;  %v5128_v23 = vor.u32 %v6313_v20, %v5125_v21  ;;  %v6520_v11 = vld [vmem:[%s9589_s8 + $0x600] sm:$0xf0]  ;;  %v6513_v20 = vld [vmem:[%s9589_s8 + $0x5c8] sm:$0xf0]  ;;  %v5492_v21 = vor.u32 %v6408_v15, %v5491_v14 }
 0x3cc   :  { %v5111_v13 = vsel %vm2026_vm6, 1.0, %v6590_v12  ;;  %v5520_v12 = vor.u32 %v6415_v6, %v5519_v33  ;;  %v5940_v17 = vor.u32 %v6520_v11, %v5939_v10  ;;  %3659 = vmatpush.bf16.msrb.mxu1 %v5268_v4  ;;  %v5912_v28 = vor.u32 %v6513_v20, %v5911_v54  ;;  %v6370_v6 = vld [vmem:[%s9589_s8 + $0x154] sm:$0xf]  ;;  %v6363_v14 = vld [vmem:[%s9589_s8 + $0x11c] sm:$0xf] }
 0x3cd   :  { %5112 = vmatmul.msk.f32.vlgmr.msra.gmra.mxu3 %vm1241_vm0, %v5111_v13  ;;  %2217 = vmatpush.bf16.msrb.mxu0 %v5128_v23  ;;  %v5744_v13 = vor.u32 %v6471_v8, %v5743_v7  ;;  %v5716_v23 = vor.u32 %v6464_v52, %v5715_v16  ;;  %v5384_v33 = vor.u32 %v6377_v46, %v5381_v47  ;;  %v5353_v7 = vld [vmem:[%s9589_s8 + $0x16c] sm:$0xf0]  ;;  %v6538_v8 = vld [vmem:[%s9589_s8 + $0x694] sm:$0xf]  ;;  %v5325_v4 = vld [vmem:[%s9589_s8 + $0x134] sm:$0xf0] }
 0x3ce   :  { %3681 = vmatpush.bf16.msra.mxu3 %v5828_v42  ;;  %3671 = vmatpush.bf16.msrb.mxu2 %v5520_v12  ;;  %v5884_v42 = vor.u32 %v6506_v34, %v5883_v31  ;;  %v5608_v10 = vor.u32 %v6433_v60, %v5605_v0  ;;  %v5356_v12 = vor.u32 %v6370_v6, %v5353_v7  ;;  %v6531_v15 = vld [vmem:[%s9589_s8 + $0x65c] sm:$0xf]  ;;  %v5997_v16 = vld [vmem:[%s9589_s8 + $0x674] sm:$0xf0]  ;;  %v6482_v54 = vld [vmem:[%s9589_s8 + $0x4d4] sm:$0xf] }
 0x3cf   :  { %v5328_v52 = vor.u32 %v6363_v14, %v5325_v4  ;;  %v5580_v20 = vor.u32 %v6426_v18, %v5577_v19  ;;  %v6475_v34 = vld [vmem:[%s9589_s8 + $0x49c] sm:$0xf]  ;;  %v5745_v46 = vld [vmem:[%s9589_s8 + $0x47c] sm:$0xf0]  ;;  %v6342_v47 = vld [vmem:[%s9589_s8 + $0x74] sm:$0xf] }
 0x3d0   :  { %3660 = vmatpush.bf16.msrb.mxu1 %v5240_v24  ;;  %v5297_v24 = vld [vmem:[%s9589_s8 + $0xfc] sm:$0xf0]  ;;  %v5213_v0 = vld [vmem:[%s9589_s8 + $0x54] sm:$0xf0]  ;;  %v6398_v6 = vld [vmem:[%s9589_s8 + $0x234] sm:$0xf] }
 0x3d1   :  { %3694 = vmatpush.bf16.msra.mxu0 %v6052_v30  ;;  %v6338_v30 = vld [vmem:[%s9589_s8 + $0x50] sm:$0xf0]  ;;  %v5300_v25 = vor.u32 %v6356_v22, %v5297_v24  ;;  %v5465_v7 = vld [vmem:[%s9589_s8 + $0x24c] sm:$0xf0]  ;;  %v5857_v14 = vld [vmem:[%s9589_s8 + $0x55c] sm:$0xf0] }
 0x3d2   :  { %3682 = vmatpush.bf16.msra.mxu3 %v5800_v53  ;;  %3672 = vmatpush.bf16.msrb.mxu2 %v5492_v21  ;;  %v5212_v38 = vor.u32 %v6338_v30, %v5211_v29  ;;  %v5407_v53 = vld [vmem:[%s9589_s8 + $0x1c0] sm:$0xf]  ;;  %v5801_v21 = vld [vmem:[%s9589_s8 + $0x4ec] sm:$0xf0]  ;;  %v5549_v29 = vld [vmem:[%s9589_s8 + $0x2f4] sm:$0xf0]  ;;  %v5972_v30 = vor.u32 %v6524_v59, %v5969_v26 }
 0x3d3   :  { %v5408_v9 = vor.u32 %v6387_v55, %v5407_v53  ;;  %v5244_v53 = vor.u32 %v6342_v47, %v5241_v48  ;;  %v5661_v18 = vld [vmem:[%s9589_s8 + $0x3d4] sm:$0xf0]  ;;  %v5633_v22 = vld [vmem:[%s9589_s8 + $0x39c] sm:$0xf0] }
 0x3d4   :  { %3661 = vmatpush.bf16.msrb.mxu1 %v5212_v38  ;;  %v5269_v38 = vld [vmem:[%s9589_s8 + $0xc4] sm:$0xf0] }
 0x3d5   :  { %3695 = vmatpush.bf16.msra.mxu0 %v6024_v40  ;;  %v5659_v40 = vld [vmem:[%s9589_s8 + $0x3b8] sm:$0xf] }
 0x3d6   :  { %3683 = vmatpush.bf16.msra.mxu3 %v5772_v2  ;;  %3673 = vmatpush.bf16.msrb.mxu2 %v5464_v35  ;;  %v5660_v50 = vor.u32 %v6450_v27, %v5659_v40  ;;  %v5829_v2 = vld [vmem:[%s9589_s8 + $0x524] sm:$0xf0]  ;;  %v5773_v35 = vld [vmem:[%s9589_s8 + $0x4b4] sm:$0xf0] }
 0x3d7   :  { %v5832_v11 = vor.u32 %v6489_v1, %v5829_v2  ;;  %v5776_v37 = vor.u32 %v6475_v34, %v5773_v35  ;;  %v5941_v40 = vld [vmem:[%s9589_s8 + $0x604] sm:$0xf0]  ;;  %v6503_v2 = vld [vmem:[%s9589_s8 + $0x57c] sm:$0xf]  ;;  %v5387_v34 = vld [vmem:[%s9589_s8 + $0x190] sm:$0xf] }
 0x3d8   :  { %3662 = vmatpush.bf16.msrb.mxu1 %v5184_v62  ;;  %v6381_v35 = vld [vmem:[%s9589_s8 + $0x1a8] sm:$0xf0] }
 0x3d9   :  { %3696 = vmatpush.bf16.msra.mxu0 %v5996_v57  ;;  %v5631_v57 = vld [vmem:[%s9589_s8 + $0x380] sm:$0xf]  ;;  %v5388_v43 = vor.u32 %v6381_v35, %v5387_v34  ;;  %v5527_v35 = vld [vmem:[%s9589_s8 + $0x2a8] sm:$0xf] }
 0x3da   :  { %3684 = vmatpush.bf16.msra.mxu3 %v5744_v13  ;;  %3674 = vmatpush.bf16.msrb.mxu2 %v5436_v49  ;;  %v5632_v41 = vor.u32 %v6443_v58, %v5631_v57  ;;  %v5748_v49 = vor.u32 %v6468_v44, %v5745_v46  ;;  %v5493_v57 = vld [vmem:[%s9589_s8 + $0x284] sm:$0xf0]  ;;  %v6461_v58 = vld [vmem:[%s9589_s8 + $0x42c] sm:$0xf]  ;;  %v6374_v46 = vld [vmem:[%s9589_s8 + $0x170] sm:$0xf0] }
 0x3dd   :  { %3697 = vmatpush.bf16.msra.mxu0 %v5968_v3  ;;  %v6025_v3 = vld [vmem:[%s9589_s8 + $0x6ac] sm:$0xf0] }
 0x3de   :  { %3685 = vmatpush.bf16.msra.mxu3 %v5716_v23  ;;  %v6028_v13 = vor.u32 %v6538_v8, %v6025_v3  ;;  %3675 = vmatpush.bf16.msrb.mxu2 %v5408_v9  ;;  %v5804_v23 = vor.u32 %v6482_v54, %v5801_v21  ;;  %v6454_v8 = vld [vmem:[%s9589_s8 + $0x3f4] sm:$0xf]  ;;  %v5468_v3 = vor.u32 %v6398_v6, %v5465_v7  ;;  %v5689_v9 = vld [vmem:[%s9589_s8 + $0x40c] sm:$0xf0]  ;;  %v6384_v54 = vld [vmem:[%s9589_s8 + $0x1c4] sm:$0xf] }
 0x3df   :  { %v6003_v7 = vld [vmem:[%s9589_s8 + $0x660] sm:$0xf] }
 0x3e1   :  { %3698 = vmatpush.bf16.msra.mxu0 %v5940_v17  ;;  %v6000_v17 = vor.u32 %v6531_v15, %v5997_v16  ;;  %v6391_v15 = vld [vmem:[%s9589_s8 + $0x1fc] sm:$0xf]  ;;  %v5437_v16 = vld [vmem:[%s9589_s8 + $0x214] sm:$0xf0] }
 0x3e2   :  { %3686 = vmatpush.bf16.msra.mxu3 %v5688_v36  ;;  %v6349_v36 = vld [vmem:[%s9589_s8 + $0xac] sm:$0xf] }
 0x3e3   :  { %v5272_v27 = vor.u32 %v6349_v36, %v5269_v38  ;;  %v6549_v38 = vld [vmem:[%s9589_s8 + $0x6e8] sm:$0xf0] }
 0x3e5   :  { %3699 = vmatpush.bf16.msra.mxu0 %v5912_v28  ;;  %v6419_v28 = vld [vmem:[%s9589_s8 + $0x2dc] sm:$0xf] }
 0x3e6   :  { %3687 = vmatpush.bf16.msra.mxu3 %v5660_v50  ;;  %v5552_v31 = vor.u32 %v6419_v28, %v5549_v29  ;;  %v6510_v50 = vld [vmem:[%s9589_s8 + $0x5b4] sm:$0xf] }
 0x3e7   :  { %v5916_v55 = vor.u32 %v6510_v50, %v5913_v51  ;;  %v6542_v50 = vld [vmem:[%s9589_s8 + $0x6b0] sm:$0xf0] }
 0x3e9   :  { %3700 = vmatpush.bf16.msra.mxu0 %v5884_v42  ;;  %v5944_v42 = vor.u32 %v6517_v39, %v5941_v40 }
 0x3ea   :  { %3688 = vmatpush.bf16.msra.mxu3 %v5632_v41  ;;  %v5692_v41 = vor.u32 %v6454_v8, %v5689_v9  ;;  %v6535_v8 = vld [vmem:[%s9589_s8 + $0x678] sm:$0xf0] }
 0x3ed   :  { %3701 = vmatpush.bf16.msra.mxu0 %v5856_v63  ;;  %v6335_v63 = vld [vmem:[%s9589_s8 + $0x3c] sm:$0xf] }
 0x3ee   :  { %v5216_v1 = vor.u32 %v6335_v63, %v5213_v0 }
 0x450   :  { %v2049_v56 = vpop.f32.mrf.mxu3 }
 0x451   :  { %v2061_v61 = vpack.c.bf16 %v2049_v56, %v2049_v56  ;;  %2055 = vrot.lane.b32.xlu1 %v2049_v56, %s6591_s4  ;;  %v6405_v56 = vld [vmem:[%s9589_s8 + $0x26c] sm:$0xf] }
 0x452   :  { %v5496_v60 = vor.u32 %v6405_v56, %v5493_v57  ;;  %v6437_v56 = vld [vmem:[%s9589_s8 + $0x368] sm:$0xf0] }
 0x453   :  { %5177 = vmatmul.msk.bf16.vlgmr.msra.gmra.mxu1 %vm1932_vm1, %v2061_v61  ;;  %5178 = vmatmul.msk.bf16.vlgmr.msra.gmra.mxu2 %vm1932_vm1, %v2061_v61 }
 0x454   :  { %5179 = vmatmul.msk.bf16.vlgmr.msrb.gmra.mxu3 %vm1932_vm1, %v2061_v61  ;;  %5180 = vmatmul.msk.bf16.vlgmr.msrb.gmra.mxu0 %vm1932_vm1, %v2061_v61  ;;  %v5717_v61 = vld [vmem:[%s9589_s8 + $0x444] sm:$0xf0] }
 0x455   :  { %3707 = vmatpush.bf16.msra.mxu1 %v5384_v33  ;;  %3746 = vmatpush.bf16.msrb.mxu0 %v6056_v5  ;;  %v5720_v62 = vor.u32 %v6461_v58, %v5717_v61  ;;  %v5885_v33 = vld [vmem:[%s9589_s8 + $0x594] sm:$0xf0]  ;;  %v5835_v61 = vld [vmem:[%s9589_s8 + $0x510] sm:$0xf] }
 0x456   :  { %3720 = vmatpush.bf16.msra.mxu2 %v5608_v10  ;;  %3733 = vmatpush.bf16.msrb.mxu3 %v5832_v11  ;;  %v5888_v5 = vor.u32 %v6503_v2, %v5885_v33  ;;  %v6328_v10 = vld [vmem:[%s9589_s8 + $0x4] sm:$0xf]  ;;  %v5185_v11 = vld [vmem:[%s9589_s8 + $0x1c] sm:$0xf0]  ;;  %v6367_v33 = vld [vmem:[%s9589_s8 + $0x138] sm:$0xf0] }
 0x457   :  { %v5331_v2 = vld [vmem:[%s9589_s8 + $0x120] sm:$0xf] }
 0x459   :  { %3708 = vmatpush.bf16.msra.mxu1 %v5356_v12  ;;  %3747 = vmatpush.bf16.msrb.mxu0 %v6028_v13  ;;  %v6496_v12 = vld [vmem:[%s9589_s8 + $0x544] sm:$0xf]  ;;  %v5188_v13 = vor.u32 %v6328_v10, %v5185_v11  ;;  %v6430_v10 = vld [vmem:[%s9589_s8 + $0x330] sm:$0xf0] }
 0x45a   :  { %3721 = vmatpush.bf16.msra.mxu2 %v5580_v20  ;;  %3734 = vmatpush.bf16.msrb.mxu3 %v5804_v23  ;;  %v5860_v4 = vor.u32 %v6496_v12, %v5857_v14  ;;  %v5409_v20 = vld [vmem:[%s9589_s8 + $0x1dc] sm:$0xf0]  ;;  %v6440_v23 = vld [vmem:[%s9589_s8 + $0x384] sm:$0xf]  ;;  %v5332_v12 = vor.u32 %v6367_v33, %v5331_v2  ;;  %v6486_v14 = vld [vmem:[%s9589_s8 + $0x4f0] sm:$0xf0] }
 0x45b   :  { %v5412_v21 = vor.u32 %v6384_v54, %v5409_v20  ;;  %v5636_v24 = vor.u32 %v6440_v23, %v5633_v22  ;;  %v6423_v23 = vld [vmem:[%s9589_s8 + $0x2f8] sm:$0xf0]  ;;  %v5695_v2 = vld [vmem:[%s9589_s8 + $0x3f8] sm:$0xf]  ;;  %v6458_v33 = vld [vmem:[%s9589_s8 + $0x410] sm:$0xf0] }
 0x45d   :  { %3709 = vmatpush.bf16.msra.mxu1 %v5328_v52  ;;  %3748 = vmatpush.bf16.msrb.mxu0 %v6000_v17  ;;  %v6447_v52 = vld [vmem:[%s9589_s8 + $0x3bc] sm:$0xf]  ;;  %v5440_v17 = vor.u32 %v6391_v15, %v5437_v16  ;;  %v5303_v15 = vld [vmem:[%s9589_s8 + $0xe8] sm:$0xf]  ;;  %v6360_v16 = vld [vmem:[%s9589_s8 + $0x100] sm:$0xf0] }
 0x45e   :  { %3722 = vmatpush.bf16.msra.mxu2 %v5552_v31  ;;  %3735 = vmatpush.bf16.msrb.mxu3 %v5776_v37  ;;  %v5664_v19 = vor.u32 %v6447_v52, %v5661_v18  ;;  %v6059_v37 = vld [vmem:[%s9589_s8 + $0x6d0] sm:$0xf]  ;;  %v5975_v18 = vld [vmem:[%s9589_s8 + $0x628] sm:$0xf]  ;;  %v5304_v22 = vor.u32 %v6360_v16, %v5303_v15  ;;  %v5443_v15 = vld [vmem:[%s9589_s8 + $0x200] sm:$0xf] }
 0x45f   :  { %v6060_v44 = vor.u32 %v6549_v38, %v6059_v37  ;;  %v5751_v38 = vld [vmem:[%s9589_s8 + $0x468] sm:$0xf]  ;;  %v6395_v16 = vld [vmem:[%s9589_s8 + $0x218] sm:$0xf0] }
 0x461   :  { %3710 = vmatpush.bf16.msra.mxu1 %v5300_v25  ;;  %3749 = vmatpush.bf16.msrb.mxu0 %v5972_v30  ;;  %v2078_v25 = vld [vmem:[%s9590_s7] sm:$0xf] }
 0x462   :  { %3723 = vmatpush.bf16.msra.mxu2 %v5524_v45  ;;  %3736 = vmatpush.bf16.msrb.mxu3 %v5748_v49  ;;  %v2080_v26 = vperm.slane %v2078_v25, 0  ;;  %v2083_v28 = vperm.slane %v2078_v25, 3  ;;  %v2081_v40 = vperm.slane %v2078_v25, 1  ;;  %v5359_v45 = vld [vmem:[%s9589_s8 + $0x158] sm:$0xf] }
 0x463   :  { %v6031_v49 = vld [vmem:[%s9589_s8 + $0x698] sm:$0xf] }
 0x465   :  { %3711 = vmatpush.bf16.msra.mxu1 %v5272_v27  ;;  %3750 = vmatpush.bf16.msrb.mxu0 %v5944_v42  ;;  %v2082_v42 = vperm.slane %v2078_v25, 2 }
 0x466   :  { %3724 = vmatpush.bf16.msra.mxu2 %v5496_v60  ;;  %3737 = vmatpush.bf16.msrb.mxu3 %v5720_v62  ;;  %v5360_v60 = vor.u32 %v6374_v46, %v5359_v45  ;;  %v6493_v62 = vld [vmem:[%s9589_s8 + $0x528] sm:$0xf0]  ;;  %v6514_v45 = vld [vmem:[%s9589_s8 + $0x5d0] sm:$0xf0] }
 0x467   :  { %v5836_v9 = vor.u32 %v6493_v62, %v5835_v61  ;;  %v6507_v61 = vld [vmem:[%s9589_s8 + $0x598] sm:$0xf0] }
 0x469   :  { %3712 = vmatpush.bf16.msra.mxu1 %v5244_v53  ;;  %3751 = vmatpush.bf16.msrb.mxu0 %v5916_v55  ;;  %v5611_v55 = vld [vmem:[%s9589_s8 + $0x350] sm:$0xf] }
 0x46a   :  { %3725 = vmatpush.bf16.msra.mxu2 %v5468_v3  ;;  %3738 = vmatpush.bf16.msrb.mxu3 %v5692_v41  ;;  %v5612_v6 = vor.u32 %v6437_v56, %v5611_v55  ;;  %v5583_v41 = vld [vmem:[%s9589_s8 + $0x318] sm:$0xf]  ;;  %v5219_v56 = vld [vmem:[%s9589_s8 + $0x40] sm:$0xf] }
 0x46d   :  { %3713 = vmatpush.bf16.msra.mxu1 %v5216_v1  ;;  %3752 = vmatpush.bf16.msrb.mxu0 %v5888_v5  ;;  %v6032_v1 = vor.u32 %v6542_v50, %v6031_v49  ;;  %v6409_v49 = vld [vmem:[%s9589_s8 + $0x288] sm:$0xf0] }
 0x46e   :  { %3726 = vmatpush.bf16.msra.mxu2 %v5440_v17  ;;  %3739 = vmatpush.bf16.msrb.mxu3 %v5664_v19  ;;  %v5584_v17 = vor.u32 %v6430_v10, %v5583_v41  ;;  %v6528_v19 = vld [vmem:[%s9589_s8 + $0x640] sm:$0xf0]  ;;  %v6378_v10 = vld [vmem:[%s9589_s8 + $0x194] sm:$0xf] }
 0x46f   :  { %v5976_v25 = vor.u32 %v6528_v19, %v5975_v18  ;;  %v6451_v18 = vld [vmem:[%s9589_s8 + $0x3d8] sm:$0xf0] }
 0x471   :  { %3714 = vmatpush.bf16.msra.mxu1 %v5188_v13  ;;  %3753 = vmatpush.bf16.msrb.mxu0 %v5860_v4  ;;  %v5807_v13 = vld [vmem:[%s9589_s8 + $0x4d8] sm:$0xf]  ;;  %v6004_v4 = vor.u32 %v6535_v8, %v6003_v7  ;;  %v6332_v7 = vld [vmem:[%s9589_s8 + $0x20] sm:$0xf0]  ;;  %v5863_v8 = vld [vmem:[%s9589_s8 + $0x548] sm:$0xf] }
 0x472   :  { %3727 = vmatpush.bf16.msra.mxu2 %v5412_v21  ;;  %3740 = vmatpush.bf16.msrb.mxu3 %v5636_v24  ;;  %v5808_v20 = vor.u32 %v6486_v14, %v5807_v13  ;;  %v5555_v21 = vld [vmem:[%s9589_s8 + $0x2e0] sm:$0xf]  ;;  %v6546_v13 = vld [vmem:[%s9589_s8 + $0x6d4] sm:$0xf]  ;;  %v5696_v14 = vor.u32 %v6458_v33, %v5695_v2  ;;  %v6476_v2 = vld [vmem:[%s9589_s8 + $0x4a4] sm:$0xf] }
 0x473   :  { %v5779_v24 = vld [vmem:[%s9589_s8 + $0x4a0] sm:$0xf] }
 0x474   :  { %v5781_v33 = vld [vmem:[%s9589_s8 + $0x4bc] sm:$0xf0] }
 0x4c3   :  { %v2056_v59 = vpop.permute.xlu1 %2055 }
 0x4c4   :  { %2059 = vst.msk [vmem:[%s9586_s11] sm:$0x3] %vm2058_vm7, %v2056_v59  ;;  %v6479_v59 = vld [vmem:[%s9589_s8 + $0x4b8] sm:$0xf0] }
 0x4c5   :  { %v5780_v34 = vor.u32 %v6479_v59, %v5779_v24  ;;  %v6539_v24 = vld [vmem:[%s9589_s8 + $0x69c] sm:$0xf]  ;;  %v6033_v59 = vld [vmem:[%s9589_s8 + $0x6b4] sm:$0xf0] }
 0x4d0   :  { %v2180_v29 = vpop.f32.mrf.mxu1 }
 0x4d1   :  { %v2181_v30 = vadd.f32 %v2180_v29, %v2080_v26  ;;  %v2219_v31 = vpop.f32.mrf.mxu0  ;;  %v5275_v26 = vld [vmem:[%s9589_s8 + $0xb0] sm:$0xf]  ;;  %v5556_v29 = vor.u32 %v6423_v23, %v5555_v21  ;;  %v5444_v23 = vor.u32 %v6395_v16, %v5443_v15  ;;  %v5753_v15 = vld [vmem:[%s9589_s8 + $0x484] sm:$0xf0] }
 0x4d2   :  { %v2220_v36 = vadd.f32 %v2219_v31, %v2083_v28  ;;  %v6353_v28 = vld [vmem:[%s9589_s8 + $0xc8] sm:$0xf0] }
 0x4d3   :  { %v2223_v39 = vmax.f32 %v2181_v30, 0.0  ;;  %v5947_v30 = vld [vmem:[%s9589_s8 + $0x5f0] sm:$0xf]  ;;  %v6521_v31 = vld [vmem:[%s9589_s8 + $0x608] sm:$0xf0]  ;;  %v5276_v37 = vor.u32 %v6353_v28, %v5275_v26 }
 0x4d4   :  { %v2226_v27 = vmax.f32 %v2220_v36, 0.0  ;;  %v6416_v36 = vld [vmem:[%s9589_s8 + $0x2c0] sm:$0xf0]  ;;  %v5415_v26 = vld [vmem:[%s9589_s8 + $0x1c8] sm:$0xf] }
 0x4d5   :  { %v8519_v32 = vpack.c.bf16 %v2223_v39, %v2223_v39  ;;  %v6472_v39 = vld [vmem:[%s9589_s8 + $0x480] sm:$0xf0] }
 0x4d6   :  { %v8527_v47 = vpack.c.bf16 %v2226_v27, %v2226_v27  ;;  %v2193_v48 = vpop.f32.mrf.mxu2  ;;  %v5247_v27 = vld [vmem:[%s9589_s8 + $0x78] sm:$0xf]  ;;  %v5752_v46 = vor.u32 %v6472_v39, %v5751_v38  ;;  %v6388_v28 = vld [vmem:[%s9589_s8 + $0x1e0] sm:$0xf0]  ;;  %v6036_v38 = vor.u32 %v6539_v24, %v6033_v59  ;;  %v6462_v24 = vld [vmem:[%s9589_s8 + $0x434] sm:$0xf] }
 0x4d7   :  { %v2194_v51 = vadd.f32 %v2193_v48, %v2081_v40  ;;  %v2206_v53 = vpop.f32.mrf.mxu3  ;;  %3663 = vmatmul.bf16.vlgmr.msrb.gmra.mxu1 %v8519_v32  ;;  %v5948_v40 = vor.u32 %v6521_v31, %v5947_v30  ;;  %v5499_v48 = vld [vmem:[%s9589_s8 + $0x270] sm:$0xf]  ;;  %v6444_v30 = vld [vmem:[%s9589_s8 + $0x3a0] sm:$0xf0]  ;;  %v6434_v31 = vld [vmem:[%s9589_s8 + $0x354] sm:$0xf]  ;;  %v5416_v39 = vor.u32 %v6388_v28, %v5415_v26 }
 0x4d8   :  { %v2207_v57 = vadd.f32 %v2206_v53, %v2082_v42  ;;  %3702 = vmatmul.bf16.vlgmr.msra.gmra.mxu0 %v8527_v47  ;;  %3759 = vmatpush.bf16.msrb.mxu1 %v5388_v43  ;;  %v2182_v58 = vpop.f32.mrf.mxu1  ;;  %v6346_v42 = vld [vmem:[%s9589_s8 + $0x90] sm:$0xf0]  ;;  %v5528_v43 = vor.u32 %v6416_v36, %v5527_v35  ;;  %v6465_v53 = vld [vmem:[%s9589_s8 + $0x448] sm:$0xf0]  ;;  %v5725_v59 = vld [vmem:[%s9589_s8 + $0x44c] sm:$0xf0] }
 0x4d9   :  { %v2224_v63 = vmax.f32 %v2194_v51, 0.0  ;;  %3798 = vmatpush.bf16.msra.mxu0 %v6060_v44  ;;  %v2221_v0 = vpop.f32.mrf.mxu0  ;;  %v5919_v44 = vld [vmem:[%s9589_s8 + $0x5b8] sm:$0xf]  ;;  %v5248_v50 = vor.u32 %v6346_v42, %v5247_v27  ;;  %v5723_v51 = vld [vmem:[%s9589_s8 + $0x430] sm:$0xf]  ;;  %v5500_v58 = vor.u32 %v6409_v49, %v5499_v48 }
 0x4da   :  { %v2225_v5 = vmax.f32 %v2207_v57, 0.0  ;;  %v5920_v55 = vor.u32 %v6514_v45, %v5919_v44  ;;  %v6339_v57 = vld [vmem:[%s9589_s8 + $0x58] sm:$0xf0]  ;;  %v5724_v62 = vor.u32 %v6465_v53, %v5723_v51  ;;  %v6402_v0 = vld [vmem:[%s9589_s8 + $0x250] sm:$0xf0] }
 0x4db   :  { %v8561_v3 = vpack.c.bf16 %v2224_v63, %v2224_v63  ;;  %v5471_v63 = vld [vmem:[%s9589_s8 + $0x238] sm:$0xf]  ;;  %v6490_v36 = vld [vmem:[%s9589_s8 + $0x514] sm:$0xf]  ;;  %v5333_v27 = vld [vmem:[%s9589_s8 + $0x13c] sm:$0xf0] }
 0x4dc   :  { %v8569_v11 = vpack.c.bf16 %v2225_v5, %v2225_v5  ;;  %3760 = vmatpush.bf16.msrb.mxu1 %v5360_v60  ;;  %v5891_v60 = vld [vmem:[%s9589_s8 + $0x580] sm:$0xf]  ;;  %v5191_v5 = vld [vmem:[%s9589_s8 + $0x8] sm:$0xf]  ;;  %v5472_v41 = vor.u32 %v6402_v0, %v5471_v63  ;;  %v6532_v44 = vld [vmem:[%s9589_s8 + $0x664] sm:$0xf] }
 0x4dd   :  { %3799 = vmatpush.bf16.msra.mxu0 %v6032_v1  ;;  %3676 = vmatmul.bf16.vlgmr.msrb.gmra.mxu2 %v8561_v3  ;;  %v5220_v1 = vor.u32 %v6339_v57, %v5219_v56  ;;  %v6005_v45 = vld [vmem:[%s9589_s8 + $0x67c] sm:$0xf0]  ;;  %v6427_v48 = vld [vmem:[%s9589_s8 + $0x31c] sm:$0xf]  ;;  %v5585_v49 = vld [vmem:[%s9589_s8 + $0x334] sm:$0xf0] }
 0x4de   :  { %3689 = vmatmul.bf16.vlgmr.msra.gmra.mxu3 %v8569_v11  ;;  %3772 = vmatpush.bf16.msrb.mxu2 %v5612_v6  ;;  %v2195_v52 = vpop.f32.mrf.mxu2  ;;  %v5892_v6 = vor.u32 %v6507_v61, %v5891_v60  ;;  %v6483_v51 = vld [vmem:[%s9589_s8 + $0x4dc] sm:$0xf]  ;;  %v5809_v53 = vld [vmem:[%s9589_s8 + $0x4f4] sm:$0xf0]  ;;  %v6357_v56 = vld [vmem:[%s9589_s8 + $0xec] sm:$0xf] }
 0x4df   :  { %3785 = vmatpush.bf16.msra.mxu3 %v5836_v9  ;;  %v2208_v54 = vpop.f32.mrf.mxu3  ;;  %v6500_v9 = vld [vmem:[%s9589_s8 + $0x560] sm:$0xf0]  ;;  %v5192_v52 = vor.u32 %v6332_v7, %v5191_v5  ;;  %v5305_v57 = vld [vmem:[%s9589_s8 + $0x104] sm:$0xf0]  ;;  %v6525_v60 = vld [vmem:[%s9589_s8 + $0x62c] sm:$0xf] }
 0x4e0   :  { %3761 = vmatpush.bf16.msrb.mxu1 %v5332_v12  ;;  %v5389_v12 = vld [vmem:[%s9589_s8 + $0x1ac] sm:$0xf0]  ;;  %v5864_v19 = vor.u32 %v6500_v9, %v5863_v8  ;;  %v5977_v61 = vld [vmem:[%s9589_s8 + $0x644] sm:$0xf0]  ;;  %v6420_v63 = vld [vmem:[%s9589_s8 + $0x2e4] sm:$0xf] }
 0x4e1   :  { %3800 = vmatpush.bf16.msra.mxu0 %v6004_v4  ;;  %v6061_v4 = vld [vmem:[%s9589_s8 + $0x6ec] sm:$0xf0]  ;;  %v5392_v54 = vor.u32 %v6378_v10, %v5389_v12  ;;  %v5557_v0 = vld [vmem:[%s9589_s8 + $0x2fc] sm:$0xf0]  ;;  %v5980_v5 = vor.u32 %v6525_v60, %v5977_v61  ;;  %v6518_v9 = vld [vmem:[%s9589_s8 + $0x5f4] sm:$0xf]  ;;  %v5784_v10 = vor.u32 %v6476_v2, %v5781_v33 }
 0x4e2   :  { %3773 = vmatpush.bf16.msrb.mxu2 %v5584_v17  ;;  %v5667_v17 = vld [vmem:[%s9589_s8 + $0x3c0] sm:$0xf]  ;;  %v6064_v21 = vor.u32 %v6546_v13, %v6061_v4  ;;  %v5277_v7 = vld [vmem:[%s9589_s8 + $0xcc] sm:$0xf0]  ;;  %v5560_v8 = vor.u32 %v6420_v63, %v5557_v0  ;;  %v6413_v12 = vld [vmem:[%s9589_s8 + $0x2ac] sm:$0xf] }
 0x4e3   :  { %3786 = vmatpush.bf16.msra.mxu3 %v5808_v20  ;;  %v6371_v20 = vld [vmem:[%s9589_s8 + $0x15c] sm:$0xf]  ;;  %v5529_v13 = vld [vmem:[%s9589_s8 + $0x2c4] sm:$0xf0]  ;;  %v6469_v4 = vld [vmem:[%s9589_s8 + $0x46c] sm:$0xf] }
 0x4e4   :  { %3762 = vmatpush.bf16.msrb.mxu1 %v5304_v22  ;;  %v5361_v22 = vld [vmem:[%s9589_s8 + $0x174] sm:$0xf0]  ;;  %v6336_v26 = vld [vmem:[%s9589_s8 + $0x44] sm:$0xf]  ;;  %v5221_v28 = vld [vmem:[%s9589_s8 + $0x5c] sm:$0xf0] }
 0x4e5   :  { %3801 = vmatpush.bf16.msra.mxu0 %v5976_v25  ;;  %v5668_v25 = vor.u32 %v6451_v18, %v5667_v17  ;;  %v5364_v35 = vor.u32 %v6371_v20, %v5361_v22  ;;  %v5249_v17 = vld [vmem:[%s9589_s8 + $0x94] sm:$0xf0]  ;;  %v5532_v18 = vor.u32 %v6413_v12, %v5529_v13  ;;  %v5756_v20 = vor.u32 %v6469_v4, %v5753_v15  ;;  %v6039_v2 = vld [vmem:[%s9589_s8 + $0x6a0] sm:$0xf]  ;;  %v6543_v33 = vld [vmem:[%s9589_s8 + $0x6b8] sm:$0xf0] }
 0x4e6   :  { %3774 = vmatpush.bf16.msrb.mxu2 %v5556_v29  ;;  %v5639_v29 = vld [vmem:[%s9589_s8 + $0x388] sm:$0xf]  ;;  %v5843_v13 = vld [vmem:[%s9589_s8 + $0x518] sm:$0xf]  ;;  %v6040_v4 = vor.u32 %v6543_v33, %v6039_v2  ;;  %v6466_v33 = vld [vmem:[%s9589_s8 + $0x450] sm:$0xf0] }
 0x4e7   :  { %3787 = vmatpush.bf16.msra.mxu3 %v5780_v34  ;;  %3715 = vmatmul.bf16.vlgmr.msra.gmra.mxu1 %v8519_v32  ;;  %v5613_v34 = vld [vmem:[%s9589_s8 + $0x36c] sm:$0xf0]  ;;  %v5640_v42 = vor.u32 %v6444_v30, %v5639_v29  ;;  %v6504_v30 = vld [vmem:[%s9589_s8 + $0x584] sm:$0xf]  ;;  %v5731_v2 = vld [vmem:[%s9589_s8 + $0x438] sm:$0xf] }
 0x4e8   :  { %3754 = vmatmul.bf16.vlgmr.msrb.gmra.mxu0 %v8527_v47  ;;  %3763 = vmatpush.bf16.msrb.mxu1 %v5276_v37  ;;  %v5837_v37 = vld [vmem:[%s9589_s8 + $0x52c] sm:$0xf0] }
 0x4e9   :  { %3802 = vmatpush.bf16.msra.mxu0 %v5948_v40  ;;  %v6364_v40 = vld [vmem:[%s9589_s8 + $0x124] sm:$0xf] }
 0x4ea   :  { %3775 = vmatpush.bf16.msrb.mxu2 %v5528_v43  ;;  %v5616_v43 = vor.u32 %v6434_v31, %v5613_v34  ;;  %v5893_v31 = vld [vmem:[%s9589_s8 + $0x59c] sm:$0xf0]  ;;  %v5728_v34 = vor.u32 %v6462_v24, %v5725_v59  ;;  %v6487_v59 = vld [vmem:[%s9589_s8 + $0x4f8] sm:$0xf0] }
 0x4eb   :  { %3788 = vmatpush.bf16.msra.mxu3 %v5752_v46  ;;  %v5840_v46 = vor.u32 %v6490_v36, %v5837_v37  ;;  %v5473_v36 = vld [vmem:[%s9589_s8 + $0x254] sm:$0xf0]  ;;  %v5224_v37 = vor.u32 %v6336_v26, %v5221_v28  ;;  %v5815_v24 = vld [vmem:[%s9589_s8 + $0x4e0] sm:$0xf]  ;;  %v5311_v26 = vld [vmem:[%s9589_s8 + $0xf0] sm:$0xf] }
 0x4ec   :  { %3764 = vmatpush.bf16.msrb.mxu1 %v5248_v50  ;;  %v5336_v50 = vor.u32 %v6364_v40, %v5333_v27  ;;  %v6329_v40 = vld [vmem:[%s9589_s8 + $0xc] sm:$0xf]  ;;  %v5896_v27 = vor.u32 %v6504_v30, %v5893_v31  ;;  %v5983_v30 = vld [vmem:[%s9589_s8 + $0x630] sm:$0xf] }
 0x4ed   :  { %3803 = vmatpush.bf16.msra.mxu0 %v5920_v55  ;;  %3728 = vmatmul.bf16.vlgmr.msra.gmra.mxu2 %v8561_v3  ;;  %v6008_v55 = vor.u32 %v6532_v44, %v6005_v45  ;;  %v5865_v44 = vld [vmem:[%s9589_s8 + $0x564] sm:$0xf0]  ;;  %v6361_v28 = vld [vmem:[%s9589_s8 + $0x108] sm:$0xf0] }
 0x4ee   :  { %3741 = vmatmul.bf16.vlgmr.msrb.gmra.mxu3 %v8569_v11  ;;  %3776 = vmatpush.bf16.msrb.mxu2 %v5500_v58  ;;  %v5588_v58 = vor.u32 %v6427_v48, %v5585_v49  ;;  %v6382_v48 = vld [vmem:[%s9589_s8 + $0x1b0] sm:$0xf0]  ;;  %v6067_v49 = vld [vmem:[%s9589_s8 + $0x6d8] sm:$0xf]  ;;  %v6529_v31 = vld [vmem:[%s9589_s8 + $0x648] sm:$0xf0] }
 0x4ef   :  { %3789 = vmatpush.bf16.msra.mxu3 %v5724_v62  ;;  %v5812_v62 = vor.u32 %v6483_v51, %v5809_v53  ;;  %v6550_v51 = vld [vmem:[%s9589_s8 + $0x6f0] sm:$0xf0]  ;;  %v6392_v53 = vld [vmem:[%s9589_s8 + $0x204] sm:$0xf] }
 0x4f0   :  { %3765 = vmatpush.bf16.msrb.mxu1 %v5220_v1  ;;  %v5308_v1 = vor.u32 %v6357_v56, %v5305_v57  ;;  %v6448_v57 = vld [vmem:[%s9589_s8 + $0x3c4] sm:$0xf]  ;;  %v6068_v63 = vor.u32 %v6550_v51, %v6067_v49  ;;  %v6417_v49 = vld [vmem:[%s9589_s8 + $0x2c8] sm:$0xf0]  ;;  %v5759_v51 = vld [vmem:[%s9589_s8 + $0x470] sm:$0xf] }
 0x4f1   :  { %3804 = vmatpush.bf16.msra.mxu0 %v5892_v6  ;;  %v6350_v6 = vld [vmem:[%s9589_s8 + $0xb4] sm:$0xf] }
 0x4f2   :  { %3777 = vmatpush.bf16.msrb.mxu2 %v5472_v41  ;;  %v5949_v41 = vld [vmem:[%s9589_s8 + $0x60c] sm:$0xf0] }
 0x4f3   :  { %3790 = vmatpush.bf16.msra.mxu3 %v5696_v14  ;;  %v5280_v14 = vor.u32 %v6350_v6, %v5277_v7  ;;  %v5952_v16 = vor.u32 %v6518_v9, %v5949_v41  ;;  %v6385_v6 = vld [vmem:[%s9589_s8 + $0x1cc] sm:$0xf]  ;;  %v5417_v7 = vld [vmem:[%s9589_s8 + $0x1e4] sm:$0xf0]  ;;  %v5619_v41 = vld [vmem:[%s9589_s8 + $0x358] sm:$0xf] }
 0x4f4   :  { %3766 = vmatpush.bf16.msrb.mxu1 %v5192_v52  ;;  %v6343_v52 = vld [vmem:[%s9589_s8 + $0x7c] sm:$0xf]  ;;  %v5641_v9 = vld [vmem:[%s9589_s8 + $0x3a4] sm:$0xf0]  ;;  %v5420_v15 = vor.u32 %v6385_v6, %v5417_v7  ;;  %v6340_v7 = vld [vmem:[%s9589_s8 + $0x60] sm:$0xf0] }
 0x4f5   :  { %3805 = vmatpush.bf16.msra.mxu0 %v5864_v19  ;;  %v6511_v19 = vld [vmem:[%s9589_s8 + $0x5bc] sm:$0xf]  ;;  %v5252_v22 = vor.u32 %v6343_v52, %v5249_v17  ;;  %v6368_v52 = vld [vmem:[%s9589_s8 + $0x140] sm:$0xf0]  ;;  %v5227_v6 = vld [vmem:[%s9589_s8 + $0x48] sm:$0xf] }
 0x4f6   :  { %3778 = vmatpush.bf16.msrb.mxu2 %v5444_v23  ;;  %v5501_v23 = vld [vmem:[%s9589_s8 + $0x28c] sm:$0xf0] }
 0x4f7   :  { %3791 = vmatpush.bf16.msra.mxu3 %v5668_v25  ;;  %3767 = vmatmul.bf16.vlgmr.msrb.gmra.mxu1 %v8519_v32 }
 0x4f8   :  { %3811 = vmatpush.bf16.msra.mxu1 %v5392_v54  ;;  %3806 = vmatmul.bf16.vlgmr.msra.gmra.mxu0 %v8527_v47  ;;  %v5921_v54 = vld [vmem:[%s9589_s8 + $0x5d4] sm:$0xf0] }
 0x4f9   :  { %3850 = vmatpush.bf16.msrb.mxu0 %v6064_v21  ;;  %v6406_v21 = vld [vmem:[%s9589_s8 + $0x274] sm:$0xf]  ;;  %v5924_v25 = vor.u32 %v6511_v19, %v5921_v54  ;;  %v6011_v19 = vld [vmem:[%s9589_s8 + $0x668] sm:$0xf]  ;;  %v6536_v54 = vld [vmem:[%s9589_s8 + $0x680] sm:$0xf0] }
 0x4fa   :  { %3779 = vmatpush.bf16.msrb.mxu2 %v5416_v39  ;;  %v5504_v29 = vor.u32 %v6406_v21, %v5501_v23  ;;  %v5697_v39 = vld [vmem:[%s9589_s8 + $0x414] sm:$0xf0]  ;;  %v5591_v21 = vld [vmem:[%s9589_s8 + $0x320] sm:$0xf]  ;;  %v6431_v23 = vld [vmem:[%s9589_s8 + $0x338] sm:$0xf0] }
 0x4fb   :  { %3792 = vmatpush.bf16.msra.mxu3 %v5640_v42  ;;  %v5193_v42 = vld [vmem:[%s9589_s8 + $0x24] sm:$0xf0] }
 0x4fc   :  { %3812 = vmatpush.bf16.msra.mxu1 %v5364_v35  ;;  %v6399_v35 = vld [vmem:[%s9589_s8 + $0x23c] sm:$0xf]  ;;  %v5196_v56 = vor.u32 %v6329_v40, %v5193_v42  ;;  %v5984_v40 = vor.u32 %v6529_v31, %v5983_v30  ;;  %v6354_v42 = vld [vmem:[%s9589_s8 + $0xd0] sm:$0xf0] }
 0x4fd   :  { %3851 = vmatpush.bf16.msrb.mxu0 %v6036_v38  ;;  %3780 = vmatmul.bf16.vlgmr.msrb.gmra.mxu2 %v8561_v3  ;;  %v6455_v38 = vld [vmem:[%s9589_s8 + $0x3fc] sm:$0xf]  ;;  %v5476_v45 = vor.u32 %v6399_v35, %v5473_v36  ;;  %v5563_v35 = vld [vmem:[%s9589_s8 + $0x2e8] sm:$0xf]  ;;  %v6424_v36 = vld [vmem:[%s9589_s8 + $0x300] sm:$0xf0] }
 0x4fe   :  { %3824 = vmatpush.bf16.msra.mxu2 %v5616_v43  ;;  %3793 = vmatmul.bf16.vlgmr.msra.gmra.mxu3 %v8569_v11  ;;  %v6497_v43 = vld [vmem:[%s9589_s8 + $0x54c] sm:$0xf] }
 0x4ff   :  { %3837 = vmatpush.bf16.msrb.mxu3 %v5840_v46  ;;  %v5395_v46 = vld [vmem:[%s9589_s8 + $0x198] sm:$0xf]  ;;  %v5868_v60 = vor.u32 %v6497_v43, %v5865_v44  ;;  %v5564_v43 = vor.u32 %v6424_v36, %v5563_v35 }
 0x500   :  { %3813 = vmatpush.bf16.msra.mxu1 %v5336_v50  ;;  %v5700_v50 = vor.u32 %v6455_v38, %v5697_v39  ;;  %v5396_v61 = vor.u32 %v6382_v48, %v5395_v46  ;;  %v5787_v38 = vld [vmem:[%s9589_s8 + $0x4a8] sm:$0xf]  ;;  %v6480_v39 = vld [vmem:[%s9589_s8 + $0x4c0] sm:$0xf0]  ;;  %v5955_v44 = vld [vmem:[%s9589_s8 + $0x5f8] sm:$0xf] }
 0x501   :  { %3852 = vmatpush.bf16.msrb.mxu0 %v6008_v55  ;;  %v5445_v55 = vld [vmem:[%s9589_s8 + $0x21c] sm:$0xf0]  ;;  %v5788_v46 = vor.u32 %v6480_v39, %v5787_v38  ;;  %v5535_v48 = vld [vmem:[%s9589_s8 + $0x2b0] sm:$0xf]  ;;  %v6540_v38 = vld [vmem:[%s9589_s8 + $0x6a4] sm:$0xf] }
 0x502   :  { %3825 = vmatpush.bf16.msra.mxu2 %v5588_v58  ;;  %v5669_v58 = vld [vmem:[%s9589_s8 + $0x3dc] sm:$0xf0]  ;;  %v5448_v0 = vor.u32 %v6392_v53, %v5445_v55  ;;  %v6473_v53 = vld [vmem:[%s9589_s8 + $0x488] sm:$0xf0] }
 0x503   :  { %3838 = vmatpush.bf16.msrb.mxu3 %v5812_v62  ;;  %v5367_v62 = vld [vmem:[%s9589_s8 + $0x160] sm:$0xf] }
 0x504   :  { %3814 = vmatpush.bf16.msra.mxu1 %v5308_v1  ;;  %v6375_v1 = vld [vmem:[%s9589_s8 + $0x178] sm:$0xf0]  ;;  %v6041_v39 = vld [vmem:[%s9589_s8 + $0x6bc] sm:$0xf0] }
 0x505   :  { %3853 = vmatpush.bf16.msrb.mxu0 %v5980_v5  ;;  %v5672_v5 = vor.u32 %v6448_v57, %v5669_v58  ;;  %v5368_v12 = vor.u32 %v6375_v1, %v5367_v62  ;;  %v6347_v57 = vld [vmem:[%s9589_s8 + $0x98] sm:$0xf0]  ;;  %v5536_v58 = vor.u32 %v6417_v49, %v5535_v48  ;;  %v5760_v62 = vor.u32 %v6473_v53, %v5759_v51 }
 0x506   :  { %3826 = vmatpush.bf16.msra.mxu2 %v5560_v8  ;;  %v6441_v8 = vld [vmem:[%s9589_s8 + $0x38c] sm:$0xf]  ;;  %v6491_v49 = vld [vmem:[%s9589_s8 + $0x51c] sm:$0xf]  ;;  %v6044_v51 = vor.u32 %v6540_v38, %v6041_v39  ;;  %v5733_v39 = vld [vmem:[%s9589_s8 + $0x454] sm:$0xf0] }
 0x507   :  { %3839 = vmatpush.bf16.msrb.mxu3 %v5784_v10  ;;  %v6438_v10 = vld [vmem:[%s9589_s8 + $0x370] sm:$0xf0]  ;;  %v5644_v17 = vor.u32 %v6441_v8, %v5641_v9  ;;  %v5899_v9 = vld [vmem:[%s9589_s8 + $0x588] sm:$0xf]  ;;  %v6463_v38 = vld [vmem:[%s9589_s8 + $0x43c] sm:$0xf] }
 0x508   :  { %3815 = vmatpush.bf16.msra.mxu1 %v5280_v14  ;;  %v6494_v14 = vld [vmem:[%s9589_s8 + $0x530] sm:$0xf0] }
 0x509   :  { %3854 = vmatpush.bf16.msrb.mxu0 %v5952_v16  ;;  %v5339_v16 = vld [vmem:[%s9589_s8 + $0x128] sm:$0xf] }
 0x50a   :  { %3827 = vmatpush.bf16.msra.mxu2 %v5532_v18  ;;  %v5620_v18 = vor.u32 %v6438_v10, %v5619_v41  ;;  %v6508_v41 = vld [vmem:[%s9589_s8 + $0x5a0] sm:$0xf0]  ;;  %v5732_v10 = vor.u32 %v6466_v33, %v5731_v2  ;;  %v5817_v33 = vld [vmem:[%s9589_s8 + $0x4fc] sm:$0xf0] }
 0x50b   :  { %3840 = vmatpush.bf16.msrb.mxu3 %v5756_v20  ;;  %v5844_v20 = vor.u32 %v6494_v14, %v5843_v13  ;;  %v6403_v13 = vld [vmem:[%s9589_s8 + $0x258] sm:$0xf0]  ;;  %v5228_v14 = vor.u32 %v6340_v7, %v5227_v6  ;;  %v6484_v2 = vld [vmem:[%s9589_s8 + $0x4e4] sm:$0xf]  ;;  %v6358_v6 = vld [vmem:[%s9589_s8 + $0xf4] sm:$0xf] }
 0x50c   :  { %3816 = vmatpush.bf16.msra.mxu1 %v5252_v22  ;;  %v5340_v22 = vor.u32 %v6368_v52, %v5339_v16  ;;  %v5199_v16 = vld [vmem:[%s9589_s8 + $0x10] sm:$0xf]  ;;  %v5900_v52 = vor.u32 %v6508_v41, %v5899_v9  ;;  %v6526_v9 = vld [vmem:[%s9589_s8 + $0x634] sm:$0xf] }
 0x50d   :  { %3855 = vmatpush.bf16.msrb.mxu0 %v5924_v25  ;;  %v6012_v25 = vor.u32 %v6536_v54, %v6011_v19  ;;  %v6501_v19 = vld [vmem:[%s9589_s8 + $0x568] sm:$0xf0]  ;;  %v5313_v7 = vld [vmem:[%s9589_s8 + $0x10c] sm:$0xf0] }
 0x50e   :  { %3828 = vmatpush.bf16.msra.mxu2 %v5504_v29  ;;  %v5592_v29 = vor.u32 %v6431_v23, %v5591_v21  ;;  %v5397_v21 = vld [vmem:[%s9589_s8 + $0x1b4] sm:$0xf0]  ;;  %v6547_v23 = vld [vmem:[%s9589_s8 + $0x6dc] sm:$0xf]  ;;  %v5985_v41 = vld [vmem:[%s9589_s8 + $0x64c] sm:$0xf0] }
 0x50f   :  { %3841 = vmatpush.bf16.msrb.mxu3 %v5728_v34  ;;  %v5816_v34 = vor.u32 %v6487_v59, %v5815_v24  ;;  %v6069_v24 = vld [vmem:[%s9589_s8 + $0x6f4] sm:$0xf0]  ;;  %v5451_v59 = vld [vmem:[%s9589_s8 + $0x208] sm:$0xf] }
 0x510   :  { %3817 = vmatpush.bf16.msra.mxu1 %v5224_v37  ;;  %v5312_v37 = vor.u32 %v6361_v28, %v5311_v26  ;;  %v5675_v28 = vld [vmem:[%s9589_s8 + $0x3c8] sm:$0xf]  ;;  %v6072_v35 = vor.u32 %v6547_v23, %v6069_v24  ;;  %v5537_v23 = vld [vmem:[%s9589_s8 + $0x2cc] sm:$0xf0]  ;;  %v6470_v24 = vld [vmem:[%s9589_s8 + $0x474] sm:$0xf] }
 0x511   :  { %3856 = vmatpush.bf16.msrb.mxu0 %v5896_v27  ;;  %v5283_v27 = vld [vmem:[%s9589_s8 + $0xb8] sm:$0xf] }
 0x512   :  { %3829 = vmatpush.bf16.msra.mxu2 %v5476_v45  ;;  %v6522_v45 = vld [vmem:[%s9589_s8 + $0x610] sm:$0xf0] }
 0x513   :  { %3842 = vmatpush.bf16.msrb.mxu3 %v5700_v50  ;;  %v5284_v50 = vor.u32 %v6354_v42, %v5283_v27  ;;  %v5956_v55 = vor.u32 %v6522_v45, %v5955_v44  ;;  %v5423_v27 = vld [vmem:[%s9589_s8 + $0x1d0] sm:$0xf]  ;;  %v6389_v42 = vld [vmem:[%s9589_s8 + $0x1e8] sm:$0xf0]  ;;  %v6435_v45 = vld [vmem:[%s9589_s8 + $0x35c] sm:$0xf] }
 0x514   :  { %3818 = vmatpush.bf16.msra.mxu1 %v5196_v56  ;;  %v5255_v56 = vld [vmem:[%s9589_s8 + $0x80] sm:$0xf]  ;;  %v6445_v44 = vld [vmem:[%s9589_s8 + $0x3a8] sm:$0xf0]  ;;  %v5424_v53 = vor.u32 %v6389_v42, %v5423_v27  ;;  %v5229_v42 = vld [vmem:[%s9589_s8 + $0x64] sm:$0xf0] }
 0x515   :  { %3857 = vmatpush.bf16.msrb.mxu0 %v5868_v60  ;;  %v5927_v60 = vld [vmem:[%s9589_s8 + $0x5c0] sm:$0xf]  ;;  %v5256_v1 = vor.u32 %v6347_v57, %v5255_v56  ;;  %v5341_v56 = vld [vmem:[%s9589_s8 + $0x144] sm:$0xf0]  ;;  %v6337_v27 = vld [vmem:[%s9589_s8 + $0x4c] sm:$0xf] }
 0x516   :  { %3830 = vmatpush.bf16.msra.mxu2 %v5448_v0  ;;  %v6410_v0 = vld [vmem:[%s9589_s8 + $0x290] sm:$0xf0] }
 0x517   :  { %3843 = vmatpush.bf16.msrb.mxu3 %v5672_v5  ;;  %3819 = vmatmul.bf16.vlgmr.msra.gmra.mxu1 %v8519_v32 }
 0x518   :  { %3863 = vmatpush.bf16.msrb.mxu1 %v5396_v61  ;;  %3858 = vmatmul.bf16.vlgmr.msrb.gmra.mxu0 %v8527_v47  ;;  %v6515_v61 = vld [vmem:[%s9589_s8 + $0x5d8] sm:$0xf0] }
 0x519   :  { %3902 = vmatpush.bf16.msra.mxu0 %v6068_v63  ;;  %v5507_v63 = vld [vmem:[%s9589_s8 + $0x278] sm:$0xf]  ;;  %v5928_v5 = vor.u32 %v6515_v61, %v5927_v60  ;;  %v6533_v60 = vld [vmem:[%s9589_s8 + $0x66c] sm:$0xf]  ;;  %v6013_v61 = vld [vmem:[%s9589_s8 + $0x684] sm:$0xf0] }
 0x51a   :  { %3831 = vmatpush.bf16.msra.mxu2 %v5420_v15  ;;  %v5508_v8 = vor.u32 %v6410_v0, %v5507_v63  ;;  %v6459_v15 = vld [vmem:[%s9589_s8 + $0x418] sm:$0xf0]  ;;  %v6428_v63 = vld [vmem:[%s9589_s8 + $0x324] sm:$0xf]  ;;  %v5593_v0 = vld [vmem:[%s9589_s8 + $0x33c] sm:$0xf0] }
 0x51b   :  { %3844 = vmatpush.bf16.msrb.mxu3 %v5644_v17  ;;  %v6333_v17 = vld [vmem:[%s9589_s8 + $0x28] sm:$0xf0] }
 0x51c   :  { %3864 = vmatpush.bf16.msrb.mxu1 %v5368_v12  ;;  %v5479_v12 = vld [vmem:[%s9589_s8 + $0x240] sm:$0xf]  ;;  %v5200_v26 = vor.u32 %v6333_v17, %v5199_v16  ;;  %v5988_v16 = vor.u32 %v6526_v9, %v5985_v41  ;;  %v5285_v17 = vld [vmem:[%s9589_s8 + $0xd4] sm:$0xf0] }
 0x51d   :  { %3903 = vmatpush.bf16.msra.mxu0 %v6040_v4  ;;  %3832 = vmatmul.bf16.vlgmr.msra.gmra.mxu2 %v8561_v3  ;;  %v5703_v4 = vld [vmem:[%s9589_s8 + $0x400] sm:$0xf]  ;;  %v5480_v54 = vor.u32 %v6403_v13, %v5479_v12  ;;  %v6421_v12 = vld [vmem:[%s9589_s8 + $0x2ec] sm:$0xf]  ;;  %v5565_v13 = vld [vmem:[%s9589_s8 + $0x304] sm:$0xf0] }
 0x51e   :  { %3876 = vmatpush.bf16.msrb.mxu2 %v5620_v18  ;;  %3845 = vmatmul.bf16.vlgmr.msrb.gmra.mxu3 %v8569_v11  ;;  %v5871_v18 = vld [vmem:[%s9589_s8 + $0x550] sm:$0xf] }
 0x51f   :  { %3889 = vmatpush.bf16.msra.mxu3 %v5844_v20  ;;  %v6379_v20 = vld [vmem:[%s9589_s8 + $0x19c] sm:$0xf]  ;;  %v5872_v30 = vor.u32 %v6501_v19, %v5871_v18  ;;  %v5568_v18 = vor.u32 %v6421_v12, %v5565_v13 }
 0x520   :  { %3865 = vmatpush.bf16.msrb.mxu1 %v5340_v22  ;;  %v5704_v22 = vor.u32 %v6459_v15, %v5703_v4  ;;  %v5400_v31 = vor.u32 %v6379_v20, %v5397_v21  ;;  %v6477_v4 = vld [vmem:[%s9589_s8 + $0x4ac] sm:$0xf]  ;;  %v5789_v15 = vld [vmem:[%s9589_s8 + $0x4c4] sm:$0xf0]  ;;  %v6519_v19 = vld [vmem:[%s9589_s8 + $0x5fc] sm:$0xf] }
 0x521   :  { %3904 = vmatpush.bf16.msra.mxu0 %v6012_v25  ;;  %v6396_v25 = vld [vmem:[%s9589_s8 + $0x220] sm:$0xf0]  ;;  %v5792_v20 = vor.u32 %v6477_v4, %v5789_v15  ;;  %v6414_v21 = vld [vmem:[%s9589_s8 + $0x2b4] sm:$0xf]  ;;  %v6047_v4 = vld [vmem:[%s9589_s8 + $0x6a8] sm:$0xf] }
 0x522   :  { %3877 = vmatpush.bf16.msrb.mxu2 %v5592_v29  ;;  %v6452_v29 = vld [vmem:[%s9589_s8 + $0x3e0] sm:$0xf0]  ;;  %v5452_v36 = vor.u32 %v6396_v25, %v5451_v59  ;;  %v5761_v59 = vld [vmem:[%s9589_s8 + $0x48c] sm:$0xf0] }
 0x523   :  { %3890 = vmatpush.bf16.msra.mxu3 %v5816_v34  ;;  %v6372_v34 = vld [vmem:[%s9589_s8 + $0x164] sm:$0xf] }
 0x524   :  { %3866 = vmatpush.bf16.msrb.mxu1 %v5312_v37  ;;  %v5369_v37 = vld [vmem:[%s9589_s8 + $0x17c] sm:$0xf0]  ;;  %v6544_v15 = vld [vmem:[%s9589_s8 + $0x6c0] sm:$0xf0] }
 0x525   :  { %3905 = vmatpush.bf16.msra.mxu0 %v5984_v40  ;;  %v5676_v40 = vor.u32 %v6452_v29, %v5675_v28  ;;  %v5372_v48 = vor.u32 %v6372_v34, %v5369_v37  ;;  %v5257_v28 = vld [vmem:[%s9589_s8 + $0x9c] sm:$0xf0]  ;;  %v5540_v29 = vor.u32 %v6414_v21, %v5537_v23  ;;  %v5764_v34 = vor.u32 %v6470_v24, %v5761_v59 }
 0x526   :  { %3878 = vmatpush.bf16.msrb.mxu2 %v5564_v43  ;;  %v5647_v43 = vld [vmem:[%s9589_s8 + $0x390] sm:$0xf]  ;;  %v5851_v23 = vld [vmem:[%s9589_s8 + $0x520] sm:$0xf]  ;;  %v6048_v24 = vor.u32 %v6544_v15, %v6047_v4 }
 0x527   :  { %3891 = vmatpush.bf16.msra.mxu3 %v5788_v46  ;;  %v5621_v46 = vld [vmem:[%s9589_s8 + $0x374] sm:$0xf0]  ;;  %v5648_v57 = vor.u32 %v6445_v44, %v5647_v43  ;;  %v6505_v44 = vld [vmem:[%s9589_s8 + $0x58c] sm:$0xf]  ;;  %v5515_v15 = vld [vmem:[%s9589_s8 + $0x280] sm:$0xf] }
 0x528   :  { %3867 = vmatpush.bf16.msrb.mxu1 %v5284_v50  ;;  %v5845_v50 = vld [vmem:[%s9589_s8 + $0x534] sm:$0xf0] }
 0x529   :  { %3906 = vmatpush.bf16.msra.mxu0 %v5956_v55  ;;  %v6365_v55 = vld [vmem:[%s9589_s8 + $0x12c] sm:$0xf] }
 0x52a   :  { %3879 = vmatpush.bf16.msrb.mxu2 %v5536_v58  ;;  %v5624_v58 = vor.u32 %v6435_v45, %v5621_v46  ;;  %v5901_v45 = vld [vmem:[%s9589_s8 + $0x5a4] sm:$0xf0]  ;;  %v5736_v46 = vor.u32 %v6463_v38, %v5733_v39  ;;  %v6488_v39 = vld [vmem:[%s9589_s8 + $0x500] sm:$0xf0] }
 0x52b   :  { %3892 = vmatpush.bf16.msra.mxu3 %v5760_v62  ;;  %v5848_v62 = vor.u32 %v6491_v49, %v5845_v50  ;;  %v5481_v49 = vld [vmem:[%s9589_s8 + $0x25c] sm:$0xf0]  ;;  %v5232_v50 = vor.u32 %v6337_v27, %v5229_v42  ;;  %v5823_v38 = vld [vmem:[%s9589_s8 + $0x4e8] sm:$0xf]  ;;  %v5319_v27 = vld [vmem:[%s9589_s8 + $0xf8] sm:$0xf] }
 0x52c   :  { %3868 = vmatpush.bf16.msrb.mxu1 %v5256_v1  ;;  %v5344_v1 = vor.u32 %v6365_v55, %v5341_v56  ;;  %v6330_v55 = vld [vmem:[%s9589_s8 + $0x14] sm:$0xf]  ;;  %v5904_v56 = vor.u32 %v6505_v44, %v5901_v45  ;;  %v5991_v44 = vld [vmem:[%s9589_s8 + $0x638] sm:$0xf] }
 0x52d   :  { %3907 = vmatpush.bf16.msra.mxu0 %v5928_v5  ;;  %v6016_v5 = vor.u32 %v6533_v60, %v6013_v61  ;;  %v5873_v60 = vld [vmem:[%s9589_s8 + $0x56c] sm:$0xf0]  ;;  %v6362_v42 = vld [vmem:[%s9589_s8 + $0x110] sm:$0xf0] }
 0x52e   :  { %3880 = vmatpush.bf16.msrb.mxu2 %v5508_v8  ;;  %v5596_v8 = vor.u32 %v6428_v63, %v5593_v0  ;;  %v6383_v63 = vld [vmem:[%s9589_s8 + $0x1b8] sm:$0xf0]  ;;  %v6075_v0 = vld [vmem:[%s9589_s8 + $0x6e0] sm:$0xf]  ;;  %v6530_v45 = vld [vmem:[%s9589_s8 + $0x650] sm:$0xf0] }
 0x52f   :  { %3893 = vmatpush.bf16.msra.mxu3 %v5732_v10  ;;  %v5820_v10 = vor.u32 %v6484_v2, %v5817_v33  ;;  %v6551_v2 = vld [vmem:[%s9589_s8 + $0x6f8] sm:$0xf0]  ;;  %v6393_v33 = vld [vmem:[%s9589_s8 + $0x20c] sm:$0xf] }
 0x530   :  { %3869 = vmatpush.bf16.msrb.mxu1 %v5228_v14  ;;  %v5316_v14 = vor.u32 %v6358_v6, %v5313_v7  ;;  %v6449_v7 = vld [vmem:[%s9589_s8 + $0x3cc] sm:$0xf]  ;;  %v6076_v12 = vor.u32 %v6551_v2, %v6075_v0  ;;  %v6418_v2 = vld [vmem:[%s9589_s8 + $0x2d0] sm:$0xf0] }
 0x531   :  { %3908 = vmatpush.bf16.msra.mxu0 %v5900_v52  ;;  %v6351_v52 = vld [vmem:[%s9589_s8 + $0xbc] sm:$0xf] }
 0x532   :  { %3881 = vmatpush.bf16.msrb.mxu2 %v5480_v54  ;;  %v5957_v54 = vld [vmem:[%s9589_s8 + $0x614] sm:$0xf0] }
 0x533   :  { %3894 = vmatpush.bf16.msra.mxu3 %v5704_v22  ;;  %v5288_v22 = vor.u32 %v6351_v52, %v5285_v17  ;;  %v5960_v25 = vor.u32 %v6519_v19, %v5957_v54  ;;  %v6386_v52 = vld [vmem:[%s9589_s8 + $0x1d4] sm:$0xf]  ;;  %v5425_v17 = vld [vmem:[%s9589_s8 + $0x1ec] sm:$0xf0]  ;;  %v5627_v54 = vld [vmem:[%s9589_s8 + $0x360] sm:$0xf] }
 0x534   :  { %3870 = vmatpush.bf16.msrb.mxu1 %v5200_v26  ;;  %v6344_v26 = vld [vmem:[%s9589_s8 + $0x84] sm:$0xf]  ;;  %v5649_v19 = vld [vmem:[%s9589_s8 + $0x3ac] sm:$0xf0]  ;;  %v5428_v59 = vor.u32 %v6386_v52, %v5425_v17 }
 0x535   :  { %3909 = vmatpush.bf16.msra.mxu0 %v5872_v30  ;;  %v6512_v30 = vld [vmem:[%s9589_s8 + $0x5c4] sm:$0xf]  ;;  %v5260_v37 = vor.u32 %v6344_v26, %v5257_v28  ;;  %v6369_v26 = vld [vmem:[%s9589_s8 + $0x148] sm:$0xf0] }
 0x536   :  { %3882 = vmatpush.bf16.msrb.mxu2 %v5452_v36  ;;  %v5509_v36 = vld [vmem:[%s9589_s8 + $0x294] sm:$0xf0] }
 0x537   :  { %3895 = vmatpush.bf16.msra.mxu3 %v5676_v40  ;;  %3871 = vmatmul.bf16.vlgmr.msrb.gmra.mxu1 %v8519_v32 }
 0x538   :  { %3915 = vmatpush.bf16.msra.mxu1 %v5400_v31  ;;  %3910 = vmatmul.bf16.vlgmr.msra.gmra.mxu0 %v8527_v47  ;;  %v5929_v31 = vld [vmem:[%s9589_s8 + $0x5dc] sm:$0xf0] }
 0x539   :  { %3954 = vmatpush.bf16.msrb.mxu0 %v6072_v35  ;;  %v6407_v35 = vld [vmem:[%s9589_s8 + $0x27c] sm:$0xf]  ;;  %v5932_v40 = vor.u32 %v6512_v30, %v5929_v31  ;;  %v6019_v30 = vld [vmem:[%s9589_s8 + $0x670] sm:$0xf]  ;;  %v6537_v31 = vld [vmem:[%s9589_s8 + $0x688] sm:$0xf0] }
 0x53a   :  { %3883 = vmatpush.bf16.msrb.mxu2 %v5424_v53  ;;  %v5512_v43 = vor.u32 %v6407_v35, %v5509_v36  ;;  %v5705_v53 = vld [vmem:[%s9589_s8 + $0x41c] sm:$0xf0]  ;;  %v5599_v35 = vld [vmem:[%s9589_s8 + $0x328] sm:$0xf]  ;;  %v6432_v36 = vld [vmem:[%s9589_s8 + $0x340] sm:$0xf0] }
 0x53b   :  { %3896 = vmatpush.bf16.msra.mxu3 %v5648_v57  ;;  %v5201_v57 = vld [vmem:[%s9589_s8 + $0x2c] sm:$0xf0] }
 0x53c   :  { %3916 = vmatpush.bf16.msra.mxu1 %v5372_v48  ;;  %v6400_v48 = vld [vmem:[%s9589_s8 + $0x244] sm:$0xf]  ;;  %v5204_v6 = vor.u32 %v6330_v55, %v5201_v57  ;;  %v6481_v55 = vld [vmem:[%s9589_s8 + $0x4c8] sm:$0xf0]  ;;  %v5992_v57 = vor.u32 %v6530_v45, %v5991_v44 }
 0x53d   :  { %3955 = vmatpush.bf16.msrb.mxu0 %v6044_v51  ;;  %3884 = vmatmul.bf16.vlgmr.msrb.gmra.mxu2 %v8561_v3  ;;  %v6456_v51 = vld [vmem:[%s9589_s8 + $0x404] sm:$0xf]  ;;  %v5484_v61 = vor.u32 %v6400_v48, %v5481_v49  ;;  %v5571_v48 = vld [vmem:[%s9589_s8 + $0x2f0] sm:$0xf]  ;;  %v6425_v49 = vld [vmem:[%s9589_s8 + $0x308] sm:$0xf0] }
 0x53e   :  { %3928 = vmatpush.bf16.msra.mxu2 %v5624_v58  ;;  %3897 = vmatmul.bf16.vlgmr.msra.gmra.mxu3 %v8569_v11  ;;  %v6498_v58 = vld [vmem:[%s9589_s8 + $0x554] sm:$0xf] }
 0x53f   :  { %3941 = vmatpush.bf16.msrb.mxu3 %v5848_v62  ;;  %v5403_v62 = vld [vmem:[%s9589_s8 + $0x1a0] sm:$0xf]  ;;  %v5876_v9 = vor.u32 %v6498_v58, %v5873_v60  ;;  %v6355_v60 = vld [vmem:[%s9589_s8 + $0xd8] sm:$0xf0] }
 0x540   :  { %3917 = vmatpush.bf16.msra.mxu1 %v5344_v1  ;;  %v5708_v1 = vor.u32 %v6456_v51, %v5705_v53  ;;  %v5404_v41 = vor.u32 %v6383_v63, %v5403_v62  ;;  %v5320_v51 = vor.u32 %v6362_v42, %v5319_v27  ;;  %v5795_v53 = vld [vmem:[%s9589_s8 + $0x4b0] sm:$0xf]  ;;  %v5291_v58 = vld [vmem:[%s9589_s8 + $0xc0] sm:$0xf]  ;;  %v6523_v63 = vld [vmem:[%s9589_s8 + $0x618] sm:$0xf0] }
 0x541   :  { %3956 = vmatpush.bf16.msrb.mxu0 %v6016_v5  ;;  %v5453_v5 = vld [vmem:[%s9589_s8 + $0x224] sm:$0xf0]  ;;  %v5963_v62 = vld [vmem:[%s9589_s8 + $0x600] sm:$0xf]  ;;  %v5796_v0 = vor.u32 %v6481_v55, %v5795_v53  ;;  %v5879_v42 = vld [vmem:[%s9589_s8 + $0x558] sm:$0xf] }
 0x542   :  { %3929 = vmatpush.bf16.msra.mxu2 %v5596_v8  ;;  %v5677_v8 = vld [vmem:[%s9589_s8 + $0x3e4] sm:$0xf0]  ;;  %v5456_v13 = vor.u32 %v6393_v33, %v5453_v5  ;;  %v9414_v33 = vld [vmem:[%s9591_s9] sm:$0x7f]  ;;  %v5292_v5 = vor.u32 %v6355_v60, %v5291_v58  ;;  %v6453_v53 = vld [vmem:[%s9589_s8 + $0x3e8] sm:$0xf0] }
 0x543   :  { %3942 = vmatpush.bf16.msrb.mxu3 %v5820_v10  ;;  %v5375_v10 = vld [vmem:[%s9589_s8 + $0x168] sm:$0xf] }
 0x544   :  { %3918 = vmatpush.bf16.msra.mxu1 %v5316_v14  ;;  %v6376_v14 = vld [vmem:[%s9589_s8 + $0x180] sm:$0xf0] }
 0x545   :  { %3957 = vmatpush.bf16.msrb.mxu0 %v5988_v16  ;;  %v5680_v16 = vor.u32 %v6449_v7, %v5677_v8  ;;  %v5376_v21 = vor.u32 %v6376_v14, %v5375_v10  ;;  %v6474_v7 = vld [vmem:[%s9589_s8 + $0x490] sm:$0xf0]  ;;  %v5964_v8 = vor.u32 %v6523_v63, %v5963_v62  ;;  %v2489_v14 = vperm.slane %v9414_v33, 0  ;;  %v5431_v62 = vld [vmem:[%s9589_s8 + $0x1d8] sm:$0xf] }
 0x546   :  { %3930 = vmatpush.bf16.msra.mxu2 %v5568_v18  ;;  %v6442_v18 = vld [vmem:[%s9589_s8 + $0x394] sm:$0xf] }
 0x547   :  { %3943 = vmatpush.bf16.msrb.mxu3 %v5792_v20  ;;  %v6439_v20 = vld [vmem:[%s9589_s8 + $0x378] sm:$0xf0]  ;;  %v5652_v28 = vor.u32 %v6442_v18, %v5649_v19  ;;  %v5739_v18 = vld [vmem:[%s9589_s8 + $0x440] sm:$0xf]  ;;  %v6390_v63 = vld [vmem:[%s9589_s8 + $0x1f0] sm:$0xf0] }
 0x548   :  { %3919 = vmatpush.bf16.msra.mxu1 %v5288_v22  ;;  %v6495_v22 = vld [vmem:[%s9589_s8 + $0x538] sm:$0xf0] }
 0x549   :  { %3958 = vmatpush.bf16.msrb.mxu0 %v5960_v25  ;;  %v5347_v25 = vld [vmem:[%s9589_s8 + $0x130] sm:$0xf]  ;;  %v6467_v19 = vld [vmem:[%s9589_s8 + $0x458] sm:$0xf0] }
 0x54a   :  { %3931 = vmatpush.bf16.msra.mxu2 %v5540_v29  ;;  %v5628_v29 = vor.u32 %v6439_v20, %v5627_v54 }
 0x54b   :  { %3944 = vmatpush.bf16.msrb.mxu3 %v5764_v34  ;;  %v5852_v34 = vor.u32 %v6495_v22, %v5851_v23  ;;  %v6341_v23 = vld [vmem:[%s9589_s8 + $0x68] sm:$0xf0] }
 0x54c   :  { %3920 = vmatpush.bf16.msra.mxu1 %v5260_v37  ;;  %v5348_v37 = vor.u32 %v6369_v26, %v5347_v25  ;;  %v5740_v26 = vor.u32 %v6467_v19, %v5739_v18 }
 0x54d   :  { %3959 = vmatpush.bf16.msrb.mxu0 %v5932_v40  ;;  %v6020_v40 = vor.u32 %v6537_v31, %v6019_v30 }
 0x54e   :  { %3932 = vmatpush.bf16.msra.mxu2 %v5512_v43  ;;  %v5600_v43 = vor.u32 %v6432_v36, %v5599_v35  ;;  %v6460_v35 = vld [vmem:[%s9589_s8 + $0x420] sm:$0xf0] }
 0x54f   :  { %3945 = vmatpush.bf16.msrb.mxu3 %v5736_v46  ;;  %v5824_v46 = vor.u32 %v6488_v39, %v5823_v38  ;;  %v5207_v39 = vld [vmem:[%s9589_s8 + $0x18] sm:$0xf] }
 0x550   :  { %3921 = vmatpush.bf16.msra.mxu1 %v5232_v50 }
 0x551   :  { %3960 = vmatpush.bf16.msrb.mxu0 %v5904_v56 }
 0x552   :  { %3933 = vmatpush.bf16.msra.mxu2 %v5484_v61  ;;  %v5572_v61 = vor.u32 %v6425_v49, %v5571_v48  ;;  %v6397_v48 = vld [vmem:[%s9589_s8 + $0x228] sm:$0xf0] }
 0x553   :  { %3946 = vmatpush.bf16.msrb.mxu3 %v5708_v1  ;;  %v5543_v1 = vld [vmem:[%s9589_s8 + $0x2b8] sm:$0xf] }
 0x554   :  { %3922 = vmatpush.bf16.msra.mxu1 %v5204_v6  ;;  %v3664_v50 = vpop.f32.mrf.mxu1  ;;  %v5767_v6 = vld [vmem:[%s9589_s8 + $0x478] sm:$0xf]  ;;  %v5544_v10 = vor.u32 %v6418_v2, %v5543_v1  ;;  %v6446_v1 = vld [vmem:[%s9589_s8 + $0x3b0] sm:$0xf0] }
 0x555   :  { %3961 = vmatpush.bf16.msrb.mxu0 %v5876_v9  ;;  %v9391_v56 = vpop.f32.mrf.mxu0  ;;  %v5263_v9 = vld [vmem:[%s9589_s8 + $0x88] sm:$0xf]  ;;  %v5768_v4 = vor.u32 %v6474_v7, %v5767_v6  ;;  %v3665_v25 = vadd.f32 %v3664_v50, %v2489_v14 }
 0x556   :  { %3934 = vmatpush.bf16.msra.mxu2 %v5456_v13  ;;  %v6516_v13 = vld [vmem:[%s9589_s8 + $0x5e0] sm:$0xf0] }
 0x557   :  { %3947 = vmatpush.bf16.msrb.mxu3 %v5680_v16  ;;  %3923 = vmatmul.bf16.vlgmr.msra.gmra.mxu1 %v8519_v32  ;;  %v6411_v16 = vld [vmem:[%s9589_s8 + $0x298] sm:$0xf0] }
 0x558   :  { %3967 = vmatpush.bf16.msrb.mxu1 %v5404_v41  ;;  %3962 = vmatmul.bf16.vlgmr.msrb.gmra.mxu0 %v8527_v47  ;;  %v6348_v41 = vld [vmem:[%s9589_s8 + $0xa0] sm:$0xf0]  ;;  %v5516_v22 = vor.u32 %v6411_v16, %v5515_v15 }
 0x559   :  { %4006 = vmatpush.bf16.msra.mxu0 %v6076_v12  ;;  %v5935_v12 = vld [vmem:[%s9589_s8 + $0x5c8] sm:$0xf]  ;;  %v5264_v17 = vor.u32 %v6348_v41, %v5263_v9 }
 0x55a   :  { %3935 = vmatpush.bf16.msra.mxu2 %v5428_v59  ;;  %v5936_v20 = vor.u32 %v6516_v13, %v5935_v12  ;;  %v6509_v59 = vld [vmem:[%s9589_s8 + $0x5a8] sm:$0xf0] }
 0x55b   :  { %3948 = vmatpush.bf16.msrb.mxu3 %v5652_v28  ;;  %v5487_v28 = vld [vmem:[%s9589_s8 + $0x248] sm:$0xf] }
 0x55c   :  { %3968 = vmatpush.bf16.msrb.mxu1 %v5376_v21  ;;  %v3666_v52 = vpop.f32.mrf.mxu1  ;;  %v5235_v21 = vld [vmem:[%s9589_s8 + $0x50] sm:$0xf] }
 0x55d   :  { %4007 = vmatpush.bf16.msra.mxu0 %v6048_v24  ;;  %3936 = vmatmul.bf16.vlgmr.msra.gmra.mxu2 %v8561_v3  ;;  %v3705_v54 = vpop.f32.mrf.mxu0  ;;  %v5907_v24 = vld [vmem:[%s9589_s8 + $0x590] sm:$0xf]  ;;  %v5236_v31 = vor.u32 %v6341_v23, %v5235_v21 }
 0x55e   :  { %3980 = vmatpush.bf16.msrb.mxu2 %v5628_v29  ;;  %3949 = vmatmul.bf16.vlgmr.msrb.gmra.mxu3 %v8569_v11  ;;  %v6404_v29 = vld [vmem:[%s9589_s8 + $0x260] sm:$0xf0]  ;;  %v5908_v38 = vor.u32 %v6509_v59, %v5907_v24 }
 0x55f   :  { %3993 = vmatpush.bf16.msra.mxu3 %v5852_v34  ;;  %v5711_v34 = vld [vmem:[%s9589_s8 + $0x408] sm:$0xf]  ;;  %v5488_v27 = vor.u32 %v6404_v29, %v5487_v28 }
 0x560   :  { %3969 = vmatpush.bf16.msrb.mxu1 %v5348_v37  ;;  %v3677_v30 = vpop.f32.mrf.mxu2  ;;  %v5712_v45 = vor.u32 %v6460_v35, %v5711_v34 }
 0x561   :  { %4008 = vmatpush.bf16.msra.mxu0 %v6020_v40  ;;  %v3678_v36 = vadd.f32 %v3677_v30, %v3665_v25  ;;  %v3690_v37 = vpop.f32.mrf.mxu3  ;;  %v6334_v40 = vld [vmem:[%s9589_s8 + $0x30] sm:$0xf0]  ;;  %v2492_v30 = vperm.slane %v9414_v33, 3 }
 0x562   :  { %3981 = vmatpush.bf16.msrb.mxu2 %v5600_v43  ;;  %v6502_v43 = vld [vmem:[%s9589_s8 + $0x570] sm:$0xf0]  ;;  %v5208_v50 = vor.u32 %v6334_v40, %v5207_v39 }
 0x563   :  { %3994 = vmatpush.bf16.msra.mxu3 %v5824_v46  ;;  %v3691_v44 = vadd.f32 %v3690_v37, %v3678_v36  ;;  %v5459_v46 = vld [vmem:[%s9589_s8 + $0x210] sm:$0xf]  ;;  %v5880_v58 = vor.u32 %v6502_v43, %v5879_v42 }
 0x564   :  { %3970 = vmatpush.bf16.msrb.mxu1 %v5320_v51  ;;  %v3716_v49 = vpop.f32.mrf.mxu1  ;;  %v5683_v51 = vld [vmem:[%s9589_s8 + $0x3d0] sm:$0xf]  ;;  %v5460_v60 = vor.u32 %v6397_v48, %v5459_v46 }
 0x565   :  { %4009 = vmatpush.bf16.msra.mxu0 %v5992_v57  ;;  %v3704_v55 = vadd.f32 %v9391_v56, %v3691_v44  ;;  %v3755_v57 = vpop.f32.mrf.mxu0  ;;  %v5655_v56 = vld [vmem:[%s9589_s8 + $0x398] sm:$0xf] }
 0x566   :  { %3982 = vmatpush.bf16.msrb.mxu2 %v5572_v61  ;;  %v5684_v61 = vor.u32 %v6453_v53, %v5683_v51  ;;  %v5656_v6 = vor.u32 %v6446_v1, %v5655_v56 }
 0x567   :  { %3995 = vmatpush.bf16.msra.mxu3 %v5796_v0  ;;  %v6077_v25 = vmul.f32 -1.442695, %v3704_v55 }
 0x568   :  { %3971 = vmatpush.bf16.msrb.mxu1 %v5292_v5  ;;  %v3679_v0 = vpop.f32.mrf.mxu2  ;;  %v5432_v5 = vor.u32 %v6390_v63, %v5431_v62 }
 0x569   :  { %4010 = vmatpush.bf16.msra.mxu0 %v5964_v8  ;;  %v3692_v2 = vpop.f32.mrf.mxu3 }
 0x56a   :  { %3983 = vmatpush.bf16.msrb.mxu2 %v5544_v10 }
 0x56b   :  { %3996 = vmatpush.bf16.msra.mxu3 %v5768_v4  ;;  %v2490_v4 = vperm.slane %v9414_v33, 1 }
 0x56c   :  { %3972 = vmatpush.bf16.msrb.mxu1 %v5264_v17  ;;  %v3718_v7 = vpop.f32.mrf.mxu1 }
 0x56d   :  { %4011 = vmatpush.bf16.msra.mxu0 %v5936_v20  ;;  %v3757_v8 = vpop.f32.mrf.mxu0  ;;  %v3717_v16 = vadd.f32 %v3716_v49, %v2490_v4 }
 0x56e   :  { %3984 = vmatpush.bf16.msrb.mxu2 %v5516_v22 }
 0x56f   :  { %3997 = vmatpush.bf16.msra.mxu3 %v5740_v26 }
 0x570   :  { %3973 = vmatpush.bf16.msrb.mxu1 %v5236_v31  ;;  %v3729_v9 = vpop.f32.mrf.mxu2 }
 0x571   :  { %4012 = vmatpush.bf16.msra.mxu0 %v5908_v38  ;;  %v3742_v41 = vpop.f32.mrf.mxu3  ;;  %v3730_v18 = vadd.f32 %v3729_v9, %v3717_v16 }
 0x572   :  { %3985 = vmatpush.bf16.msrb.mxu2 %v5488_v27 }
 0x573   :  { %3998 = vmatpush.bf16.msra.mxu3 %v5712_v45  ;;  %v3743_v20 = vadd.f32 %v3742_v41, %v3730_v18 }
 0x574   :  { %3974 = vmatpush.bf16.msrb.mxu1 %v5208_v50  ;;  %v3768_v10 = vpop.f32.mrf.mxu1 }
 0x575   :  { %4013 = vmatpush.bf16.msra.mxu0 %v5880_v58  ;;  %v3807_v12 = vpop.f32.mrf.mxu0  ;;  %v3756_v23 = vadd.f32 %v3755_v57, %v3743_v20 }
 0x576   :  { %3986 = vmatpush.bf16.msrb.mxu2 %v5460_v60 }
 0x577   :  { %3999 = vmatpush.bf16.msra.mxu3 %v5684_v61  ;;  %3975 = vmatmul.bf16.vlgmr.msrb.gmra.mxu1 %v8519_v32  ;;  %v6078_v24 = vmul.f32 -1.442695, %v3756_v23 }
 0x578   :  { %4014 = vmatmul.bf16.vlgmr.msra.gmra.mxu0 %v8527_v47  ;;  %v3731_v13 = vpop.f32.mrf.mxu2  ;;  %v2491_v47 = vperm.slane %v9414_v33, 2 }
 0x579   :  { %v3744_v14 = vpop.f32.mrf.mxu3  ;;  %6555 = vpow2.f32 %v6078_v24 }
 0x57a   :  { %3987 = vmatpush.bf16.msrb.mxu2 %v5432_v5  ;;  %v3769_v19 = vadd.f32 %v3768_v10, %v2491_v47  ;;  %v2493_v10 = vperm.slane %v9414_v33, 4 }
 0x57b   :  { %4000 = vmatpush.bf16.msra.mxu3 %v5656_v6 }
 0x57c   :  { %v3770_v32 = vpop.f32.mrf.mxu1 }
 0x57d   :  { %3988 = vmatmul.bf16.vlgmr.msrb.gmra.mxu2 %v8561_v3  ;;  %v3809_v15 = vpop.f32.mrf.mxu0 }
 0x57e   :  { %4001 = vmatmul.bf16.vlgmr.msra.gmra.mxu3 %v8569_v11 }
 0x57f   :  { %v6556_v29 = vpop.eup %6555 }
 0x580   :  { %v3781_v52 = vpop.f32.mrf.mxu2  ;;  %v4041_v37 = vadd.f32 1.0, %v6556_v29 }
 0x581   :  { %v3794_v17 = vpop.f32.mrf.mxu3  ;;  %v3782_v54 = vadd.f32 %v3781_v52, %v3769_v19 }
 0x582   :  { %v4071_v9 = vand.u32 2147483647, %v4041_v37  ;;  %v4073_v41 = vand.u32 2147483648, %v4041_v37  ;;  %vm4067_vm9 = vweird.f32 %v4041_v37 }
 0x583   :  { %v3795_v3 = vadd.f32 %v3794_v17, %v3782_v54 }
 0x584   :  { %vm4072_vm15 = vcmp.eq.f32.partialorder %v4071_v9, 8.507059e+37  ;;  %v4074_v18 = vor.u32 1.1754944e-38, %v4073_v41  ;;  %v2495_v41 = vperm.slane %v9414_v33, 6 }
 0x585   :  { %v3808_v22 = vadd.f32 %v3807_v12, %v3795_v3 }
 0x587   :  { %v6079_v59 = vmul.f32 -1.442695, %v3808_v22 }
 0x588   :  { %v3783_v21 = vpop.f32.mrf.mxu2 }
 0x589   :  { %v3796_v11 = vpop.f32.mrf.mxu3  ;;  %6557 = vpow2.f32 %v6079_v59 }
 0x58a   :  { %6559 = vpow2.f32 %v6077_v25 }
 0x58b   :  { %6561 = vrcp.f32 %v4041_v37 }
 0x58f   :  { %v6558_v34 = vpop.eup %6557 }
 0x590   :  { %v6560_v36 = vpop.eup %6559  ;;  %v9515_v39 = vadd.f32 1.0, %v6558_v34 }
 0x591   :  { %v9517_v27 = vadd.f32 1.0, %v6560_v36  ;;  %v6562_v48 = vpop.eup %6561 }
 0x592   :  { %6563 = vrcp.f32 %v9515_v39  ;;  %v4063_v55 = vmul.f32 %v6562_v48, %v4041_v37  ;;  %vm4068_vm8 = vweird.f32 %v6562_v48  ;;  %v4088_v15 = vand.u32 2147483648, %v9515_v39 }
 0x593   :  { %6565 = vrcp.f32 %v9517_v27  ;;  %vm4052_vm11 = vweird.f32 %v9517_v27  ;;  %vm9531_vm13 = vmor %vm4067_vm9, %vm4068_vm8  ;;  %vm4082_vm14 = vweird.f32 %v9515_v39  ;;  %v4086_v52 = vand.u32 2147483647, %v9515_v39 }
 0x594   :  { %v3820_v26 = vpop.f32.mrf.mxu1  ;;  %v4064_v61 = vsub.f32 1.0, %v4063_v55  ;;  %v4058_v22 = vand.u32 2147483648, %v9517_v27  ;;  %v4089_v59 = vor.u32 1.1754944e-38, %v4088_v15  ;;  %v4056_v29 = vand.u32 2147483647, %v9517_v27 }
 0x595   :  { %v3859_v28 = vpop.f32.mrf.mxu0  ;;  %v3821_v38 = vadd.f32 %v3820_v26, %v2492_v30  ;;  %vm4087_vm3 = vcmp.eq.f32.partialorder %v4086_v52, 8.507059e+37  ;;  %vm4166_vm8 = vcmask 1045508   ;;  %v2494_v55 = vperm.slane %v9414_v33, 5 }
 0x596   :  { %v4065_v2 = vmul.f32 %v6562_v48, %v4064_v61  ;;  %vm4057_vm9 = vcmp.eq.f32.partialorder %v4056_v29, 8.507059e+37 }
 0x598   :  { %v6564_v51 = vpop.eup %6563  ;;  %v4066_v7 = vadd.f32 %v6562_v48, %v4065_v2 }
 0x599   :  { %v9521_v53 = vpop.eup %6565  ;;  %v4078_v57 = vmul.f32 %v6564_v51, %v9515_v39  ;;  %vm4083_vm10 = vweird.f32 %v6564_v51  ;;  %v4059_v39 = vor.u32 1.1754944e-38, %v4058_v22 }
 0x59a   :  { %v4048_v58 = vmul.f32 %v9521_v53, %v9517_v27  ;;  %vm4053_vm12 = vweird.f32 %v9521_v53  ;;  %v4070_v16 = vsel %vm9531_vm13, %v6562_v48, %v4066_v7  ;;  %vm9541_vm0 = vmor %vm4082_vm14, %vm4083_vm10  ;;  %vm4168_vm10 = vcmask 1043456  }
 0x59b   :  { %v4079_v63 = vsub.f32 1.0, %v4078_v57  ;;  %v4075_v24 = vsel %vm4072_vm15, %v4074_v18, %v4070_v16  ;;  %vm9552_vm2 = vmor %vm4052_vm11, %vm4053_vm12  ;;  %vm4175_vm14 = vcmask 1043458  }
 0x59c   :  { %v3822_v31 = vpop.f32.mrf.mxu1  ;;  %v4049_v56 = vsub.f32 1.0, %v4048_v58  ;;  %v4159_v37 = vrot.slane %v4075_v24, 6 }
 0x59d   :  { %v3861_v35 = vpop.f32.mrf.mxu0  ;;  %v4080_v5 = vmul.f32 %v6564_v51, %v4079_v63 }
 0x59e   :  { %v4050_v6 = vmul.f32 %v9521_v53, %v4049_v56 }
 0x59f   :  { %v4081_v12 = vadd.f32 %v6564_v51, %v4080_v5 }
 0x5a0   :  { %v3833_v40 = vpop.f32.mrf.mxu2  ;;  %v4051_v4 = vadd.f32 %v9521_v53, %v4050_v6 }
 0x5a1   :  { %v3834_v42 = vadd.f32 %v3833_v40, %v3821_v38  ;;  %v3846_v43 = vpop.f32.mrf.mxu3  ;;  %v4085_v3 = vsel %vm9541_vm0, %v6564_v51, %v4081_v12 }
 0x5a2   :  { %v4090_v31 = vsel %vm4087_vm3, %v4089_v59, %v4085_v3  ;;  %v4055_v36 = vsel %vm9552_vm2, %v9521_v53, %v4051_v4  ;;  %vm9569_vm2 = vmor %vm4175_vm14, %vm4164_vm5 }
 0x5a3   :  { %v3847_v44 = vadd.f32 %v3846_v43, %v3834_v42  ;;  %v4160_v42 = vrot.slane %v4090_v31, 4 }
 0x5a5   :  { %v3860_v45 = vadd.f32 %v3859_v28, %v3847_v44  ;;  %v4060_v44 = vsel %vm4057_vm9, %v4059_v39, %v4055_v36 }
 0x5a7   :  { %v6080_v46 = vmul.f32 -1.442695, %v3860_v45  ;;  %v4165_v45 = vsel %vm4164_vm5, %v4060_v44, %v4159_v37 }
 0x5a8   :  { %v3835_v49 = vpop.f32.mrf.mxu2 }
 0x5a9   :  { %6567 = vpow2.f32 %v6080_v46  ;;  %v3848_v50 = vpop.f32.mrf.mxu3 }
 0x5af   :  { %v6568_v60 = vpop.eup %6567 }
 0x5b0   :  { %v4043_v62 = vadd.f32 1.0, %v6568_v60 }
 0x5b2   :  { %6569 = vrcp.f32 %v4043_v62  ;;  %v4103_v54 = vand.u32 2147483648, %v4043_v62  ;;  %v4101_v11 = vand.u32 2147483647, %v4043_v62  ;;  %vm4097_vm4 = vweird.f32 %v4043_v62 }
 0x5b4   :  { %v3872_v0 = vpop.f32.mrf.mxu1  ;;  %v4104_v34 = vor.u32 1.1754944e-38, %v4103_v54  ;;  %vm4102_vm7 = vcmp.eq.f32.partialorder %v4101_v11, 8.507059e+37 }
 0x5b5   :  { %v3911_v1 = vpop.f32.mrf.mxu0  ;;  %v3873_v20 = vadd.f32 %v3872_v0, %v2493_v10 }
 0x5b8   :  { %v6570_v8 = vpop.eup %6569 }
 0x5b9   :  { %v4093_v13 = vmul.f32 %v6570_v8, %v4043_v62  ;;  %vm4098_vm1 = vweird.f32 %v6570_v8 }
 0x5ba   :  { %vm4099_vm6 = vmor %vm4097_vm4, %vm4098_vm1 }
 0x5bb   :  { %v4094_v17 = vsub.f32 1.0, %v4093_v13 }
 0x5bc   :  { %v3874_v14 = vpop.f32.mrf.mxu1 }
 0x5bd   :  { %v3913_v47 = vpop.f32.mrf.mxu0  ;;  %v4095_v21 = vmul.f32 %v6570_v8, %v4094_v17 }
 0x5bf   :  { %v4096_v30 = vadd.f32 %v6570_v8, %v4095_v21 }
 0x5c0   :  { %v3885_v23 = vpop.f32.mrf.mxu2 }
 0x5c1   :  { %v3886_v25 = vadd.f32 %v3885_v23, %v3873_v20  ;;  %v3898_v26 = vpop.f32.mrf.mxu3  ;;  %v4100_v38 = vsel %vm4099_vm6, %v6570_v8, %v4096_v30 }
 0x5c2   :  { %v4105_v40 = vsel %vm4102_vm7, %v4104_v34, %v4100_v38 }
 0x5c3   :  { %v3899_v35 = vadd.f32 %v3898_v26, %v3886_v25  ;;  %v4161_v43 = vrot.slane %v4105_v40, 2 }
 0x5c5   :  { %v3912_v27 = vadd.f32 %v3911_v1, %v3899_v35  ;;  %v4167_v46 = vsel %vm4166_vm8, %v4160_v42, %v4161_v43  ;;  %vm4177_vm8 = vcmask 128004  }
 0x5c6   :  { %v4169_v49 = vsel %vm4168_vm10, %v4165_v45, %v4167_v46 }
 0x5c7   :  { %4174 = vst [vmem:[%s9592_s10] sm:$0xff] %v4169_v49  ;;  %v6081_v8 = vmul.f32 -1.442695, %v3912_v27 }
 0x5c8   :  { %v3887_v48 = vpop.f32.mrf.mxu2 }
 0x5c9   :  { %v3900_v50 = vpop.f32.mrf.mxu3 }
 0x5d4   :  { %v3924_v51 = vpop.f32.mrf.mxu1 }
 0x5d5   :  { %v3963_v53 = vpop.f32.mrf.mxu0  ;;  %v3925_v60 = vadd.f32 %v3924_v51, %v2494_v55 }
 0x5dc   :  { %v3926_v57 = vpop.f32.mrf.mxu1 }
 0x5dd   :  { %v3965_v58 = vpop.f32.mrf.mxu0 }
 0x5e0   :  { %v3937_v61 = vpop.f32.mrf.mxu2 }
 0x5e1   :  { %v3938_v62 = vadd.f32 %v3937_v61, %v3925_v60  ;;  %v3950_v63 = vpop.f32.mrf.mxu3 }
 0x5e3   :  { %v3951_v0 = vadd.f32 %v3950_v63, %v3938_v62 }
 0x5e5   :  { %v3964_v1 = vadd.f32 %v3963_v53, %v3951_v0 }
 0x5e7   :  { %v6082_v5 = vmul.f32 -1.442695, %v3964_v1 }
 0x5e8   :  { %v3939_v56 = vpop.f32.mrf.mxu2 }
 0x5e9   :  { %v3952_v2 = vpop.f32.mrf.mxu3  ;;  %6571 = vpow2.f32 %v6082_v5 }
 0x5ea   :  { %6573 = vpow2.f32 %v6081_v8 }
 0x5ef   :  { %v6572_v9 = vpop.eup %6571 }
 0x5f0   :  { %v4045_v12 = vadd.f32 1.0, %v6572_v9  ;;  %v6574_v4 = vpop.eup %6573 }
 0x5f1   :  { %v4044_v16 = vadd.f32 1.0, %v6574_v4 }
 0x5f2   :  { %6575 = vrcp.f32 %v4045_v12  ;;  %v4133_v26 = vand.u32 2147483648, %v4045_v12  ;;  %vm4127_vm12 = vweird.f32 %v4045_v12  ;;  %v4131_v30 = vand.u32 2147483647, %v4045_v12 }
 0x5f3   :  { %6577 = vrcp.f32 %v4044_v16  ;;  %v4118_v35 = vand.u32 2147483648, %v4044_v16  ;;  %vm4112_vm3 = vweird.f32 %v4044_v16  ;;  %v4116_v44 = vand.u32 2147483647, %v4044_v16 }
 0x5f4   :  { %v3976_v6 = vpop.f32.mrf.mxu1  ;;  %v4134_v36 = vor.u32 1.1754944e-38, %v4133_v26  ;;  %vm4132_vm0 = vcmp.eq.f32.partialorder %v4131_v30, 8.507059e+37 }
 0x5f5   :  { %v4015_v7 = vpop.f32.mrf.mxu0  ;;  %v3977_v14 = vadd.f32 %v3976_v6, %v2495_v41  ;;  %v4119_v50 = vor.u32 1.1754944e-38, %v4118_v35 }
 0x5f8   :  { %v6576_v18 = vpop.eup %6575 }
 0x5f9   :  { %v4123_v3 = vmul.f32 %v6576_v18, %v4045_v12  ;;  %v6578_v33 = vpop.eup %6577  ;;  %vm4128_vm11 = vweird.f32 %v6576_v18 }
 0x5fa   :  { %v4108_v23 = vmul.f32 %v6578_v33, %v4044_v16  ;;  %vm4129_vm13 = vmor %vm4127_vm12, %vm4128_vm11  ;;  %vm4113_vm15 = vweird.f32 %v6578_v33  ;;  %vm4117_vm11 = vcmp.eq.f32.partialorder %v4116_v44, 8.507059e+37 }
 0x5fb   :  { %v4124_v21 = vsub.f32 1.0, %v4123_v3  ;;  %vm4114_vm4 = vmor %vm4112_vm3, %vm4113_vm15 }
 0x5fc   :  { %v3978_v10 = vpop.f32.mrf.mxu1  ;;  %v4109_v59 = vsub.f32 1.0, %v4108_v23  ;;  %vm4178_vm12 = vmor %vm4177_vm8, %vm9569_vm2 }
 0x5fd   :  { %v4017_v13 = vpop.f32.mrf.mxu0  ;;  %v4125_v24 = vmul.f32 %v6576_v18, %v4124_v21 }
 0x5fe   :  { %v4110_v29 = vmul.f32 %v6578_v33, %v4109_v59 }
 0x5ff   :  { %v4126_v25 = vadd.f32 %v6576_v18, %v4125_v24 }
 0x600   :  { %v3989_v32 = vpop.f32.mrf.mxu2  ;;  %v4111_v38 = vadd.f32 %v6578_v33, %v4110_v29 }
 0x601   :  { %v3990_v15 = vadd.f32 %v3989_v32, %v3977_v14  ;;  %v4002_v47 = vpop.f32.mrf.mxu3  ;;  %v4130_v34 = vsel %vm4129_vm13, %v6576_v18, %v4126_v25 }
 0x602   :  { %v4135_v40 = vsel %vm4132_vm0, %v4134_v36, %v4130_v34  ;;  %v4115_v46 = vsel %vm4114_vm4, %v6578_v33, %v4111_v38 }
 0x603   :  { %v4003_v52 = vadd.f32 %v4002_v47, %v3990_v15  ;;  %v4162_v48 = vrot.slane %v4135_v40, 6  ;;  %v4120_v55 = vsel %vm4117_vm11, %v4119_v50, %v4115_v46 }
 0x605   :  { %v4016_v17 = vadd.f32 %v4015_v7, %v4003_v52  ;;  %v4170_v58 = vsel %vm4164_vm5, %v4120_v55, %v4162_v48 }
 0x607   :  { %v6083_v19 = vmul.f32 -1.442695, %v4016_v17 }
 0x608   :  { %v3991_v54 = vpop.f32.mrf.mxu2 }
 0x609   :  { %6579 = vpow2.f32 %v6083_v19  ;;  %v4004_v20 = vpop.f32.mrf.mxu3 }
 0x60f   :  { %v6580_v11 = vpop.eup %6579 }
 0x610   :  { %v4046_v22 = vadd.f32 1.0, %v6580_v11 }
 0x612   :  { %6581 = vrcp.f32 %v4046_v22  ;;  %v4148_v39 = vand.u32 2147483648, %v4046_v22  ;;  %v4146_v42 = vand.u32 2147483647, %v4046_v22  ;;  %vm4142_vm6 = vweird.f32 %v4046_v22 }
 0x614   :  { %v4149_v49 = vor.u32 1.1754944e-38, %v4148_v39  ;;  %vm4147_vm9 = vcmp.eq.f32.partialorder %v4146_v42, 8.507059e+37 }
 0x618   :  { %v6582_v28 = vpop.eup %6581 }
 0x619   :  { %v4138_v31 = vmul.f32 %v6582_v28, %v4046_v22  ;;  %vm4143_vm1 = vweird.f32 %v6582_v28 }
 0x61a   :  { %vm4144_vm7 = vmor %vm4142_vm6, %vm4143_vm1 }
 0x61b   :  { %v4139_v37 = vsub.f32 1.0, %v4138_v31 }
 0x61d   :  { %v4140_v27 = vmul.f32 %v6582_v28, %v4139_v37 }
 0x61f   :  { %v4141_v45 = vadd.f32 %v6582_v28, %v4140_v27 }
 0x621   :  { %v4145_v51 = vsel %vm4144_vm7, %v6582_v28, %v4141_v45 }
 0x622   :  { %v4150_v53 = vsel %vm4147_vm9, %v4149_v49, %v4145_v51 }
 0x623   :  { %v4163_v57 = vrot.slane %v4150_v53, 4 }
 0x625   :  { %v4171_v60 = vsel %vm4168_vm10, %v4170_v58, %v4163_v57 }
 0x626   :  { %4179 = vst.msk [vmem:[%s9592_s10 + $0x8] sm:$0x3f] %vm4178_vm12, %v4171_v60 }

</bundles_post_ra>
